<compile_context>
chip_gen: v7x
topology: tpu7x:2x2x1
jax: 0.10.0
libtpu: 0.0.40
codegen_flags: <defaults>
</compile_context>

<pallas_src>
import functools

import jax
import jax.numpy as jnp
from jax.experimental import pallas as pl
from jax.experimental.pallas import tpu as pltpu

HAND_DIM, POS_DIM, ORNT_DIM = 23, 3, 4
IN_DIM = HAND_DIM + POS_DIM + ORNT_DIM  # 30


# ------------------------------------------------------------------ kernel ---
def input_process_kernel(x_ref, w1f, b1f, w2c, b2c, wc2, bc2, o_ref):
    """Three MXU matmuls per row tile; f32 accumulation / bias / ReLU."""
    x = x_ref[...]                                              # (tile, 30) f32

    w1 = w1f[...]                                               # (30, 3H)
    h = jnp.dot(x.astype(w1.dtype), w1, preferred_element_type=jnp.float32)
    h = jnp.maximum(h + b1f[...], 0.0)                          # (tile, 3H) f32

    w2 = w2c[...]                                               # (3H, 2L)
    h2 = jnp.dot(h.astype(w2.dtype), w2, preferred_element_type=jnp.float32)
    h2 = jnp.maximum(h2 + b2c[...], 0.0)                        # (tile, 2L) f32

    w3 = wc2[...]                                               # (2L, Lpad)
    out = jnp.dot(h2.astype(w3.dtype), w3, preferred_element_type=jnp.float32)
    o_ref[...] = (out + bc2[...]).astype(o_ref.dtype)           # (tile, Lpad)


# ---------------------------------------------------------- param fusion -----
def _round_up(x, m):
    return ((x + m - 1) // m) * m


def _block_diag(ws):
    rows = sum(w.shape[0] for w in ws)
    cols = sum(w.shape[1] for w in ws)
    out = jnp.zeros((rows, cols), ws[0].dtype)
    r = c = 0
    for w in ws:
        out = out.at[r:r + w.shape[0], c:c + w.shape[1]].set(w)
        r += w.shape[0]
        c += w.shape[1]
    return out


def prepare_params(params, nn_latents, matmul_dtype=jnp.float32):
    """One-time parameter preparation (call once at load time, not per step).

    Returns [w1f, b1f, w2c, b2c, wc2, bc2]:
      w1f (30, 3H)   block-diagonal first branch layer
      w2c (3H, 2L)   blockdiag(branch layer-2) composed with cat_feats layer-1
      wc2 (2L, Lpad) cat_feats layer-2, columns padded to a 128-lane multiple
    Matmul weights are cast to `matmul_dtype`; biases stay f32.
    """
    (wh1, bh1, wh2, bh2,
     wp1, bp1, wp2, bp2,
     wo1, bo1, wo2, bo2,
     wc1, bc1, wc2, bc2) = params

    w1f = _block_diag([wh1, wp1, wo1])                       # (30, 3H)
    b1f = jnp.concatenate([bh1, bp1, bo1], axis=-1)          # (1, 3H)
    w2f = _block_diag([wh2, wp2, wo2])                       # (3H, 3L)
    b2f = jnp.concatenate([bh2, bp2, bo2], axis=-1)          # (1, 3L)

    # No nonlinearity between the branch second layer and the first cat layer,
    # so they compose exactly.  Done once, at full f32 precision.
    hp = jax.lax.Precision.HIGHEST
    w2c = jnp.dot(w2f, wc1, precision=hp)                    # (3H, 2L)
    b2c = jnp.dot(b2f, wc1, precision=hp) + bc1              # (1, 2L)

    # Keep the output store lane-dense even if nn_latents % 128 != 0.
    l_pad = _round_up(nn_latents, 128)
    if l_pad != nn_latents:
        wc2 = jnp.pad(wc2, ((0, 0), (0, l_pad - nn_latents)))
        bc2 = jnp.pad(bc2, ((0, 0), (0, l_pad - nn_latents)))

    w1f = w1f.astype(matmul_dtype)
    w2c = w2c.astype(matmul_dtype)
    wc2 = wc2.astype(matmul_dtype)
    return [w1f, b1f.astype(jnp.float32), w2c, b2c.astype(jnp.float32),
            wc2, bc2.astype(jnp.float32)]


# ----------------------------------------------------------------- wrapper ---
@functools.partial(
    jax.jit,
    static_argnames=("nn_latents", "nn_history", "row_tile",
                     "single_buffer_weights"))
def input_process(in_feats, fused, *, nn_latents, nn_history=20, row_tile=512,
                  single_buffer_weights=True):
    """fused: output of prepare_params (6 arrays)."""
    b = in_feats.shape[0]
    x = in_feats.reshape(b * nn_history, IN_DIM).astype(jnp.float32)
    n = x.shape[0]
    l_pad = fused[4].shape[1]            # padded output width (lane-aligned)

    # Row tile: multiple of 8, no bigger than needed, default 512.
    tile = min(row_tile, _round_up(n, 8))
    tile = max(8, _round_up(tile, 8))
    if n > 16:
        # Guarantee >= 2 grid steps so the "parallel" axis can shard across
        # both TensorCores on v7x; harmless extra step on 1-TC v5e/v6e.
        tile = min(tile, _round_up((n + 1) // 2, 8))
    n_pad = _round_up(n, tile)
    if n_pad != n:
        x = jnp.pad(x, ((0, n_pad - n), (0, 0)))   # padded rows sliced off below

    # Weights/biases: constant index_map (resident across grid steps).
    w_kwargs = {"pipeline_mode": pl.Buffered(1)} if single_buffer_weights else {}

    def w_spec(p):
        return pl.BlockSpec(p.shape, lambda i: (0, 0), **w_kwargs)

    in_specs = [pl.BlockSpec((tile, IN_DIM), lambda i: (i, 0))]
    in_specs += [w_spec(p) for p in fused]
    out_spec = pl.BlockSpec((tile, l_pad), lambda i: (i, 0))

    out = pl.pallas_call(
        input_process_kernel,
        out_shape=jax.ShapeDtypeStruct((n_pad, l_pad), jnp.float32),
        grid_spec=pltpu.PrefetchScalarGridSpec(
            num_scalar_prefetch=0,
            grid=(n_pad // tile,),
            in_specs=in_specs,
            out_specs=out_spec,
        ),
        compiler_params=pltpu.CompilerParams(
            dimension_semantics=("parallel",),
            # Working set at tile=512: activations ~4 MiB + weights <3 MiB f32
            # (half that in bf16) -> 32 MiB scoped VMEM is ample on v5e/v6e/v7x.
            vmem_limit_bytes=32 * 1024 * 1024,
        ),
    )(x, *fused)

    return out[:n, :nn_latents].reshape(b, nn_history, nn_latents)


# ------------------------------------------------------------------- params --
def xavier_uniform(key, fan_in, fan_out):
    bound = (6.0 / (fan_in + fan_out)) ** 0.5
    # stored (in, out): y = x @ W + b   (torch stores (out, in), y = x @ W.T + b)
    return jax.random.uniform(key, (fan_in, fan_out), jnp.float32, -bound, bound)


def init_params(key, nn_latents):
    L, H = nn_latents, nn_latents // 2
    shapes = [
        (HAND_DIM, H), (H, L),        # hand_qpos branch
        (POS_DIM, H), (H, L),         # obj_pos branch
        (ORNT_DIM, H), (H, L),        # obj_ornt branch
        (3 * L, 2 * L), (2 * L, L),   # cat_feats head
    ]
    keys = jax.random.split(key, len(shapes))
    params = []
    for k, (fi, fo) in zip(keys, shapes):
        params += [xavier_uniform(k, fi, fo), jnp.zeros((1, fo), jnp.float32)]
    return params


# --------------------------------------------------------------- reference ---
def input_process_ref(in_feats, params, nn_latents, nn_history=20):
    (wh1, bh1, wh2, bh2, wp1, bp1, wp2, bp2,
     wo1, bo1, wo2, bo2, wc1, bc1, wc2, bc2) = params
    b = in_feats.shape[0]
    x = in_feats.reshape(b, nn_history, IN_DIM)
    hand = x[..., :HAND_DIM]
    pos = x[..., HAND_DIM:HAND_DIM + POS_DIM]
    ornt = x[..., HAND_DIM + POS_DIM:]

    def mlp(v, w1, b1, w2, b2):
        return jnp.maximum(v @ w1 + b1, 0.0) @ w2 + b2

    hf = mlp(hand, wh1, bh1, wh2, bh2)
    pf = mlp(pos, wp1, bp1, wp2, bp2)
    of = mlp(ornt, wo1, bo1, wo2, bo2)
    cat = jnp.concatenate([hf, pf, of], axis=-1)
    return mlp(cat, wc1, bc1, wc2, bc2)


# -------------------------------------------------------------------- main ---
if __name__ == "__main__":
    nn_latents = 256     # module default
    nn_history = 20      # module default
    batch = 3            # -> 60 rows: exercises padding + 2-step parallel grid

    key = jax.random.PRNGKey(0)
    k_params, k_x = jax.random.split(key)
    params = init_params(k_params, nn_latents)
    in_feats = jax.random.normal(k_x, (batch, nn_history * IN_DIM), jnp.float32)

    # One-time parameter preparation (exact f32 path and fast bf16-matmul path).
    fused_f32 = prepare_params(params, nn_latents, matmul_dtype=jnp.float32)
    fused_bf16 = prepare_params(params, nn_latents, matmul_dtype=jnp.bfloat16)

    def run(fused, single_buffer):
        return jax.block_until_ready(
            input_process(in_feats, fused, nn_latents=nn_latents,
                          nn_history=nn_history, row_tile=512,
                          single_buffer_weights=single_buffer))

    # Exact f32 path (validated tight).  Fall back to double-buffered weight
    # specs if pl.Buffered(1) is rejected by this jax/Mosaic version.
    try:
        out_f32 = run(fused_f32, True)
        single_buffer = True
    except Exception:
        out_f32 = run(fused_f32, False)
        single_buffer = False

    ref = input_process_ref(in_feats, params, nn_latents, nn_history=nn_history)
    assert out_f32.shape == (batch, nn_history, nn_latents)
    assert jnp.allclose(out_f32, ref, atol=2e-4, rtol=2e-4), "f32 mismatch vs reference"

    # bf16 MXU-operand path (f32 accumulation); relaxed tolerance per review.
    out_bf16 = run(fused_bf16, single_buffer)
    assert out_bf16.shape == (batch, nn_history, nn_latents)
    assert jnp.allclose(out_bf16, ref, atol=3e-2, rtol=3e-2), "bf16 mismatch vs reference"

    print("KERNEL_OK")
</pallas_src>

<mosaic_0001>
module attributes {stable_mosaic.version = 11 : i64} {
  func.func @input_process_kernel(%arg0: i32, %arg1: memref<32x30xf32, #tpu.memory_space<vmem>>, %arg2: memref<30x384xf32, #tpu.memory_space<vmem>>, %arg3: memref<1x384xf32, #tpu.memory_space<vmem>>, %arg4: memref<384x512xf32, #tpu.memory_space<vmem>>, %arg5: memref<1x512xf32, #tpu.memory_space<vmem>>, %arg6: memref<512x256xf32, #tpu.memory_space<vmem>>, %arg7: memref<1x256xf32, #tpu.memory_space<vmem>>, %arg8: memref<32x256xf32, #tpu.memory_space<vmem>>) attributes {dimension_semantics = [#tpu.dimension_semantics<parallel>], iteration_bounds = array<i64: 2>, scalar_prefetch = 0 : i64, scratch_operands = 0 : i64, tpu.core_type = #tpu.core_type<tc>, window_params = [{transform_indices = @transform_0, window_bounds = array<i64: 32, 30>}, {pipeline_mode = #tpu.pipeline_mode<synchronous>, transform_indices = @transform_1, window_bounds = array<i64: 30, 384>}, {pipeline_mode = #tpu.pipeline_mode<synchronous>, transform_indices = @transform_2, window_bounds = array<i64: 1, 384>}, {pipeline_mode = #tpu.pipeline_mode<synchronous>, transform_indices = @transform_3, window_bounds = array<i64: 384, 512>}, {pipeline_mode = #tpu.pipeline_mode<synchronous>, transform_indices = @transform_4, window_bounds = array<i64: 1, 512>}, {pipeline_mode = #tpu.pipeline_mode<synchronous>, transform_indices = @transform_5, window_bounds = array<i64: 512, 256>}, {pipeline_mode = #tpu.pipeline_mode<synchronous>, transform_indices = @transform_6, window_bounds = array<i64: 1, 256>}, {transform_indices = @transform_7, window_bounds = array<i64: 32, 256>}]} {
    %c0 = arith.constant 0 : index
    %c0_0 = arith.constant 0 : index
    %0 = vector.load %arg1[%c0, %c0_0] : memref<32x30xf32, #tpu.memory_space<vmem>>, vector<32x30xf32>
    %c0_1 = arith.constant 0 : index
    %c0_2 = arith.constant 0 : index
    %1 = vector.load %arg2[%c0_1, %c0_2] : memref<30x384xf32, #tpu.memory_space<vmem>>, vector<30x384xf32>
    %cst = arith.constant dense<0.000000e+00> : vector<32x384xf32>
    %2 = tpu.matmul %0, %1, %cst {dimension_numbers = #tpu.dot_dimension_numbers<[1], [0], [0], [1], [0, 0, 1, 1], [], []>} : vector<32x30xf32>, vector<30x384xf32>, vector<32x384xf32> -> vector<32x384xf32>
    %c0_3 = arith.constant 0 : index
    %c0_4 = arith.constant 0 : index
    %3 = vector.load %arg3[%c0_3, %c0_4] : memref<1x384xf32, #tpu.memory_space<vmem>>, vector<1x384xf32>
    %4 = vector.broadcast %3 : vector<1x384xf32> to vector<32x384xf32>
    %5 = arith.addf %2, %4 : vector<32x384xf32>
    %cst_5 = arith.constant 0.000000e+00 : f32
    %6 = vector.broadcast %cst_5 : f32 to vector<32x384xf32>
    %7 = arith.maximumf %5, %6 : vector<32x384xf32>
    %c0_6 = arith.constant 0 : index
    %c0_7 = arith.constant 0 : index
    %8 = vector.load %arg4[%c0_6, %c0_7] : memref<384x512xf32, #tpu.memory_space<vmem>>, vector<384x512xf32>
    %cst_8 = arith.constant dense<0.000000e+00> : vector<32x512xf32>
    %9 = tpu.matmul %7, %8, %cst_8 {dimension_numbers = #tpu.dot_dimension_numbers<[1], [0], [0], [1], [0, 0, 1, 1], [], []>} : vector<32x384xf32>, vector<384x512xf32>, vector<32x512xf32> -> vector<32x512xf32>
    %c0_9 = arith.constant 0 : index
    %c0_10 = arith.constant 0 : index
    %10 = vector.load %arg5[%c0_9, %c0_10] : memref<1x512xf32, #tpu.memory_space<vmem>>, vector<1x512xf32>
    %11 = vector.broadcast %10 : vector<1x512xf32> to vector<32x512xf32>
    %12 = arith.addf %9, %11 : vector<32x512xf32>
    %cst_11 = arith.constant 0.000000e+00 : f32
    %13 = vector.broadcast %cst_11 : f32 to vector<32x512xf32>
    %14 = arith.maximumf %12, %13 : vector<32x512xf32>
    %c0_12 = arith.constant 0 : index
    %c0_13 = arith.constant 0 : index
    %15 = vector.load %arg6[%c0_12, %c0_13] : memref<512x256xf32, #tpu.memory_space<vmem>>, vector<512x256xf32>
    %cst_14 = arith.constant dense<0.000000e+00> : vector<32x256xf32>
    %16 = tpu.matmul %14, %15, %cst_14 {dimension_numbers = #tpu.dot_dimension_numbers<[1], [0], [0], [1], [0, 0, 1, 1], [], []>} : vector<32x512xf32>, vector<512x256xf32>, vector<32x256xf32> -> vector<32x256xf32>
    %c0_15 = arith.constant 0 : index
    %c0_16 = arith.constant 0 : index
    %17 = vector.load %arg7[%c0_15, %c0_16] : memref<1x256xf32, #tpu.memory_space<vmem>>, vector<1x256xf32>
    %18 = vector.broadcast %17 : vector<1x256xf32> to vector<32x256xf32>
    %19 = arith.addf %16, %18 : vector<32x256xf32>
    %c0_17 = arith.constant 0 : index
    %c0_18 = arith.constant 0 : index
    %20 = vector.load %arg8[%c0_17, %c0_18] : memref<32x256xf32, #tpu.memory_space<vmem>>, vector<32x256xf32>
    tpu.vector_store %arg8[%c0_17, %c0_18], %19 {strides = array<i32>} : memref<32x256xf32, #tpu.memory_space<vmem>>, vector<32x256xf32>,
    return
  }
  func.func @transform_0(%arg0: i32) -> (i32, i32) {
    %c0_i32 = arith.constant 0 : i32
    %c0_i32_0 = arith.constant 0 : i32
    return %arg0, %c0_i32 : i32, i32
  }
  func.func @transform_1(%arg0: i32) -> (i32, i32) {
    %c0_i32 = arith.constant 0 : i32
    %c0_i32_0 = arith.constant 0 : i32
    %c0_i32_1 = arith.constant 0 : i32
    return %c0_i32, %c0_i32_0 : i32, i32
  }
  func.func @transform_2(%arg0: i32) -> (i32, i32) {
    %c0_i32 = arith.constant 0 : i32
    %c0_i32_0 = arith.constant 0 : i32
    %c0_i32_1 = arith.constant 0 : i32
    return %c0_i32, %c0_i32_0 : i32, i32
  }
  func.func @transform_3(%arg0: i32) -> (i32, i32) {
    %c0_i32 = arith.constant 0 : i32
    %c0_i32_0 = arith.constant 0 : i32
    %c0_i32_1 = arith.constant 0 : i32
    return %c0_i32, %c0_i32_0 : i32, i32
  }
  func.func @transform_4(%arg0: i32) -> (i32, i32) {
    %c0_i32 = arith.constant 0 : i32
    %c0_i32_0 = arith.constant 0 : i32
    %c0_i32_1 = arith.constant 0 : i32
    return %c0_i32, %c0_i32_0 : i32, i32
  }
  func.func @transform_5(%arg0: i32) -> (i32, i32) {
    %c0_i32 = arith.constant 0 : i32
    %c0_i32_0 = arith.constant 0 : i32
    %c0_i32_1 = arith.constant 0 : i32
    return %c0_i32, %c0_i32_0 : i32, i32
  }
  func.func @transform_6(%arg0: i32) -> (i32, i32) {
    %c0_i32 = arith.constant 0 : i32
    %c0_i32_0 = arith.constant 0 : i32
    %c0_i32_1 = arith.constant 0 : i32
    return %c0_i32, %c0_i32_0 : i32, i32
  }
  func.func @transform_7(%arg0: i32) -> (i32, i32) {
    %c0_i32 = arith.constant 0 : i32
    %c0_i32_0 = arith.constant 0 : i32
    return %arg0, %c0_i32 : i32, i32
  }
}

module attributes {stable_mosaic.version = 11 : i64} {
  func.func @input_process_kernel(%arg0: i32, %arg1: memref<32x30xf32, #tpu.memory_space<vmem>>, %arg2: memref<30x384xf32, #tpu.memory_space<vmem>>, %arg3: memref<1x384xf32, #tpu.memory_space<vmem>>, %arg4: memref<384x512xf32, #tpu.memory_space<vmem>>, %arg5: memref<1x512xf32, #tpu.memory_space<vmem>>, %arg6: memref<512x256xf32, #tpu.memory_space<vmem>>, %arg7: memref<1x256xf32, #tpu.memory_space<vmem>>, %arg8: memref<32x256xf32, #tpu.memory_space<vmem>>) attributes {dimension_semantics = [#tpu.dimension_semantics<parallel>], iteration_bounds = array<i64: 2>, scalar_prefetch = 0 : i64, scratch_operands = 0 : i64, tpu.core_type = #tpu.core_type<tc>, window_params = [{transform_indices = @transform_0, window_bounds = array<i64: 32, 30>}, {pipeline_mode = #tpu.pipeline_mode<synchronous>, transform_indices = @transform_1, window_bounds = array<i64: 30, 384>}, {pipeline_mode = #tpu.pipeline_mode<synchronous>, transform_indices = @transform_2, window_bounds = array<i64: 1, 384>}, {pipeline_mode = #tpu.pipeline_mode<synchronous>, transform_indices = @transform_3, window_bounds = array<i64: 384, 512>}, {pipeline_mode = #tpu.pipeline_mode<synchronous>, transform_indices = @transform_4, window_bounds = array<i64: 1, 512>}, {pipeline_mode = #tpu.pipeline_mode<synchronous>, transform_indices = @transform_5, window_bounds = array<i64: 512, 256>}, {pipeline_mode = #tpu.pipeline_mode<synchronous>, transform_indices = @transform_6, window_bounds = array<i64: 1, 256>}, {transform_indices = @transform_7, window_bounds = array<i64: 32, 256>}]} {
    %c0 = arith.constant 0 : index
    %c0_0 = arith.constant 0 : index
    %0 = vector.load %arg1[%c0, %c0_0] : memref<32x30xf32, #tpu.memory_space<vmem>>, vector<32x30xf32>
    %c0_1 = arith.constant 0 : index
    %c0_2 = arith.constant 0 : index
    %1 = vector.load %arg2[%c0_1, %c0_2] : memref<30x384xf32, #tpu.memory_space<vmem>>, vector<30x384xf32>
    %cst = arith.constant dense<0.000000e+00> : vector<32x384xf32>
    %2 = tpu.matmul %0, %1, %cst {dimension_numbers = #tpu.dot_dimension_numbers<[1], [0], [0], [1], [0, 0, 1, 1], [], []>} : vector<32x30xf32>, vector<30x384xf32>, vector<32x384xf32> -> vector<32x384xf32>
    %c0_3 = arith.constant 0 : index
    %c0_4 = arith.constant 0 : index
    %3 = vector.load %arg3[%c0_3, %c0_4] : memref<1x384xf32, #tpu.memory_space<vmem>>, vector<1x384xf32>
    %4 = vector.broadcast %3 : vector<1x384xf32> to vector<32x384xf32>
    %5 = arith.addf %2, %4 : vector<32x384xf32>
    %cst_5 = arith.constant 0.000000e+00 : f32
    %6 = vector.broadcast %cst_5 : f32 to vector<32x384xf32>
    %7 = arith.maximumf %5, %6 : vector<32x384xf32>
    %c0_6 = arith.constant 0 : index
    %c0_7 = arith.constant 0 : index
    %8 = vector.load %arg4[%c0_6, %c0_7] : memref<384x512xf32, #tpu.memory_space<vmem>>, vector<384x512xf32>
    %cst_8 = arith.constant dense<0.000000e+00> : vector<32x512xf32>
    %9 = tpu.matmul %7, %8, %cst_8 {dimension_numbers = #tpu.dot_dimension_numbers<[1], [0], [0], [1], [0, 0, 1, 1], [], []>} : vector<32x384xf32>, vector<384x512xf32>, vector<32x512xf32> -> vector<32x512xf32>
    %c0_9 = arith.constant 0 : index
    %c0_10 = arith.constant 0 : index
    %10 = vector.load %arg5[%c0_9, %c0_10] : memref<1x512xf32, #tpu.memory_space<vmem>>, vector<1x512xf32>
    %11 = vector.broadcast %10 : vector<1x512xf32> to vector<32x512xf32>
    %12 = arith.addf %9, %11 : vector<32x512xf32>
    %cst_11 = arith.constant 0.000000e+00 : f32
    %13 = vector.broadcast %cst_11 : f32 to vector<32x512xf32>
    %14 = arith.maximumf %12, %13 : vector<32x512xf32>
    %c0_12 = arith.constant 0 : index
    %c0_13 = arith.constant 0 : index
    %15 = vector.load %arg6[%c0_12, %c0_13] : memref<512x256xf32, #tpu.memory_space<vmem>>, vector<512x256xf32>
    %cst_14 = arith.constant dense<0.000000e+00> : vector<32x256xf32>
    %16 = tpu.matmul %14, %15, %cst_14 {dimension_numbers = #tpu.dot_dimension_numbers<[1], [0], [0], [1], [0, 0, 1, 1], [], []>} : vector<32x512xf32>, vector<512x256xf32>, vector<32x256xf32> -> vector<32x256xf32>
    %c0_15 = arith.constant 0 : index
    %c0_16 = arith.constant 0 : index
    %17 = vector.load %arg7[%c0_15, %c0_16] : memref<1x256xf32, #tpu.memory_space<vmem>>, vector<1x256xf32>
    %18 = vector.broadcast %17 : vector<1x256xf32> to vector<32x256xf32>
    %19 = arith.addf %16, %18 : vector<32x256xf32>
    %c0_17 = arith.constant 0 : index
    %c0_18 = arith.constant 0 : index
    %20 = vector.load %arg8[%c0_17, %c0_18] : memref<32x256xf32, #tpu.memory_space<vmem>>, vector<32x256xf32>
    tpu.vector_store %arg8[%c0_17, %c0_18], %19 {strides = array<i32>} : memref<32x256xf32, #tpu.memory_space<vmem>>, vector<32x256xf32>,
    return
  }
  func.func @transform_0(%arg0: i32) -> (i32, i32) {
    %c0_i32 = arith.constant 0 : i32
    %c0_i32_0 = arith.constant 0 : i32
    return %arg0, %c0_i32 : i32, i32
  }
  func.func @transform_1(%arg0: i32) -> (i32, i32) {
    %c0_i32 = arith.constant 0 : i32
    %c0_i32_0 = arith.constant 0 : i32
    %c0_i32_1 = arith.constant 0 : i32
    return %c0_i32, %c0_i32_0 : i32, i32
  }
  func.func @transform_2(%arg0: i32) -> (i32, i32) {
    %c0_i32 = arith.constant 0 : i32
    %c0_i32_0 = arith.constant 0 : i32
    %c0_i32_1 = arith.constant 0 : i32
    return %c0_i32, %c0_i32_0 : i32, i32
  }
  func.func @transform_3(%arg0: i32) -> (i32, i32) {
    %c0_i32 = arith.constant 0 : i32
    %c0_i32_0 = arith.constant 0 : i32
    %c0_i32_1 = arith.constant 0 : i32
    return %c0_i32, %c0_i32_0 : i32, i32
  }
  func.func @transform_4(%arg0: i32) -> (i32, i32) {
    %c0_i32 = arith.constant 0 : i32
    %c0_i32_0 = arith.constant 0 : i32
    %c0_i32_1 = arith.constant 0 : i32
    return %c0_i32, %c0_i32_0 : i32, i32
  }
  func.func @transform_5(%arg0: i32) -> (i32, i32) {
    %c0_i32 = arith.constant 0 : i32
    %c0_i32_0 = arith.constant 0 : i32
    %c0_i32_1 = arith.constant 0 : i32
    return %c0_i32, %c0_i32_0 : i32, i32
  }
  func.func @transform_6(%arg0: i32) -> (i32, i32) {
    %c0_i32 = arith.constant 0 : i32
    %c0_i32_0 = arith.constant 0 : i32
    %c0_i32_1 = arith.constant 0 : i32
    return %c0_i32, %c0_i32_0 : i32, i32
  }
  func.func @transform_7(%arg0: i32) -> (i32, i32) {
    %c0_i32 = arith.constant 0 : i32
    %c0_i32_0 = arith.constant 0 : i32
    return %arg0, %c0_i32 : i32, i32
  }
}

</mosaic_0001>

<bundles_post_ra>
// kernel: input_process.1
= control target key start
LH: loop header
LB: loop body
LE: loop exit
PB: predicated region body
PF: predicated region fallthrough
CT: control target
= control target key end

     0   :  { %12 = vsyncpa [#allocation3], 0  ;;  %s2452_s0 = inlined_call_operand.vmem [shape: f32[64,30], index: 0, kind: input, shape index: {}]   ;;  %s2453_s1 = inlined_call_operand.vmem [shape: f32[30,384], index: 1, kind: input, shape index: {}]   ;;  %s2454_s2 = inlined_call_operand.vmem [shape: f32[1,384], index: 2, kind: input, shape index: {}]   ;;  %s2455_s3 = inlined_call_operand.hbm [shape: f32[384,512], index: 3, kind: input, shape index: {}]   ;;  %s2456_s4 = inlined_call_operand.vmem [shape: f32[1,512], index: 4, kind: input, shape index: {}]   ;;  %s2457_s5 = inlined_call_operand.hbm [shape: f32[512,256], index: 5, kind: input, shape index: {}]   ;;  %s2458_s6 = inlined_call_operand.vmem [shape: f32[1,256], index: 6, kind: input, shape index: {}]   ;;  %s2459_s7 = inlined_call_operand.vmem [shape: f32[64,256], index: 7, kind: output, shape index: {}]  }
   0x1   :  { %13 = vsyncpa [#allocation5], 0  ;;  %s2141_s24 = smov 0  }
   0x2 LB: > { %s2093_s25 = smov [#allocation2]   ;;  %s1548_s27 = sadd.s32 4294967295, %s2091_s24   ;;  %s2091_s24 = sphi %s2141_s24, %s19_s24  }
   0x3   : > { %s220_s26 = sshll.u32 %s2093_s25, 4  ;;  %p1550_p0 = scmp.ge.s32.totalorder %s2091_s24, 1  ;;  %s221_s26 = int_to_ptr.vmem [resolvable:$true] %s220_s26 }
   0x4   : > { %p202_p1 = scmp.lt.s32.totalorder %s2091_s24, 3  ;;  %p2155_p3 = scmp.eq.s32.totalorder %s1548_s27, 0 }
   0x5   : > { %s2094_s30 = smov [#allocation4]   ;;  %s2021_s12 = scalar_lea.hbm %s2455_s3, 24576 }
   0x6   : > { %p2149_p2 = pnand %p1550_p0, %p202_p1  ;;  %s236_s8 = sshll.u32 %s2094_s30, 4  ;;  %s2167_s8 = int_to_ptr.vmem [resolvable:$true] %s236_s8 }
   0x7   : > { %s2464_s29 = scalar_select %p2155_p3, 1, 0 }
   0x8   : > { %s2463_s28 = scalar_select %p2149_p2, 1, 0 }
   0x9   : > { %p1994_p4 = pneg %p2149_p2  ;;  %p2022_p6 = scmp.ne.s32.totalorder %s2455_s3, %s2021_s12 }
   0xa   : > { %p2028_p10 = scmp.lt.u32.totalorder %s2021_s12, %s2455_s3 }
   0xb   : > { %p2163_p5 = pnand %p2155_p3, %p1994_p4 }
   0xd   : > { %p2023_p7 = pneg %p2163_p5 }
   0xf   : > { %p2024_p8 = pnand %p2023_p7, %p2022_p6 }
  0x11   : > { %p2025_p9 = pneg %p2024_p8 }
  0x13   : > { %p2030_p11 = pnand %p2028_p10, %p2025_p9 }
  0x15   : > { %2033 = shalt.err (!%p2030_p11)
}
  0x16   : > { %s2034_s17 = scalar_lea.vmem %s221_s26, 24576  ;;  %p2042_p1 = scmp.lt.s32.totalorder %s221_s26, %s221_s26 }
  0x17   : > { %p2035_p12 = scmp.ne.s32.totalorder %s221_s26, %s2034_s17  ;;  %p2043_p4 = scmp.lt.s32.totalorder %s2034_s17, %s2034_s17 }
  0x19   : > { %p2037_p13 = pnand %p2035_p12, %p2023_p7  ;;  %p2044_p3 = por %p2043_p4, %p2042_p1 }
  0x1b   : > { %p2038_p0 = pneg %p2037_p13 }
  0x1d   : > { %p2045_p2 = pnand %p2044_p3, %p2038_p0 }
  0x1f   : > { %2048 = shalt.err (!%p2045_p2)
}
  0x20   : > { %s2095_s18 = smov 512   ;;  %s2096_s19 = smov 32  }
  0x21   : > { %1997 = dma.hbm_to_vmem [thread:$0]  (!%p2163_p5), %s2455_s3, 24576, %s221_s26, [#allocation3], %s2095_s18, %s2095_s18, %s2096_s19  }
  0x22   : > { %s2049_s25 = scalar_lea.hbm %s2457_s5, 16384 }
  0x23   : > { %p2050_p6 = scmp.ne.s32.totalorder %s2457_s5, %s2049_s25  ;;  %p2056_p8 = scmp.lt.u32.totalorder %s2049_s25, %s2457_s5 }
  0x25   : > { %p2052_p2 = pnand %p2050_p6, %p2023_p7 }
  0x27   : > { %p2053_p3 = pneg %p2052_p2 }
  0x29   : > { %p2058_p9 = pnand %p2056_p8, %p2053_p3 }
  0x2b   : > { %2061 = shalt.err (!%p2058_p9)
}
  0x2c   : > { %s2062_s26 = scalar_lea.vmem %s2167_s8, 16384  ;;  %p2070_p13 = scmp.lt.s32.totalorder %s2167_s8, %s2167_s8 }
  0x2d   : > { %p2063_p10 = scmp.ne.s32.totalorder %s2167_s8, %s2062_s26  ;;  %p2071_p0 = scmp.lt.s32.totalorder %s2062_s26, %s2062_s26 }
  0x2f   : > { %p2065_p11 = pnand %p2063_p10, %p2023_p7  ;;  %p2072_p1 = por %p2071_p0, %p2070_p13 }
  0x31   : > { %p2066_p12 = pneg %p2065_p11 }
  0x33   : > { %p2073_p4 = pnand %p2072_p1, %p2066_p12 }
  0x35   : > { %2076 = shalt.err (!%p2073_p4)
}
  0x36   : > { %s2097_s13 = smov 256   ;;  %s2098_s14 = smov 16  }
  0x37   : > { %2000 = dma.hbm_to_vmem [thread:$0]  (!%p2163_p5), %s2457_s5, 16384, %s2167_s8, [#allocation5], %s2097_s13, %s2097_s13, %s2098_s14  }
  0x38   : > { %p2466_p6 = scmp.ne.s32.totalorder %s2463_s28, 0 }
  0x39   : > { %p2467_p7 = scmp.ne.s32.totalorder (!%p2466_p6), %s2464_s29, 0 }
  0x3a   : > { %264 = sbr.rel (%p2466_p6) target bundleno = 840 (0x348), region = 48 }
  0x41   : > { %2082 = dma.done.wait (%p2467_p7), [#allocation3], 24576  }
  0x42   : > { %2084 = vsyncadd (%p2467_p7), [#allocation3], 4294942720 }
  0x43   : > { %2086 = dma.done.wait (%p2467_p7), [#allocation5], 16384  }
  0x44   : > { %2088 = vsyncadd (%p2467_p7), [#allocation5], 4294950912  ;;  %s1557_s9 = sshll.u32 %s1548_s27, 2  ;;  %v2099_v0 = vmov 0.0   ;;  %vm360_vm0 = vcmask 1045504   ;;  %vm2100_vm1 = vmmov 1  }
  0x45   : > { %434 = vmatprep.mubr.f32.mxu0 %v2099_v0  ;;  %p302_p5 = scmp.lt.s32.totalorder %s1557_s9, 7  ;;  %vm2231_vm2 = vmpackc.low %vm360_vm0, %vm2100_vm1  ;;  %v319_v2 = vld [vmem:[%s2453_s1 + $0x8] sm:$0xff]  ;;  %v322_v3 = vld [vmem:[%s2453_s1 + $0x20] sm:$0xff]  ;;  %vm347_vm3 = vcmask 244736  }
  0x46   : > { %v318_v4 = vld [vmem:[%s2453_s1] sm:$0xff]  ;;  %v1598_v5 = vpack.c.bf16 %v322_v3, %v319_v2  ;;  %v321_v6 = vld [vmem:[%s2453_s1 + $0x18] sm:$0xff]  ;;  %v320_v7 = vld [vmem:[%s2453_s1 + $0x10] sm:$0xff] }
  0x47   : > { %s2471_s9 = smov (!%p302_p5, %s1557_s9), 7  ;;  %v323_v8 = vld [vmem:[%s2453_s1 + $0x28] sm:$0xff]  ;;  %v1600_v9 = vpack.c.bf16 %v321_v6, %v318_v4  ;;  %v325_v11 = vld [vmem:[%s2453_s1 + $0x38] sm:$0xff]  ;;  %v328_v12 = vld [vmem:[%s2453_s1 + $0x50] sm:$0x3f] }
  0x48   : > { %s1558_s28 = sshll.u32 %s2471_s9, 3  ;;  %v1608_v10 = vpack.c.bf16 %v323_v8, %v320_v7  ;;  %v324_v13 = vld [vmem:[%s2453_s1 + $0x30] sm:$0xff]  ;;  %1599 = vmatprep.subr.bf16.mxu0 %v1598_v5  ;;  %v1602_v14 = vpack.c.bf16 %v328_v12, %v325_v11  ;;  %v327_v15 = vld [vmem:[%s2453_s1 + $0x48] sm:$0x3f]  ;;  %v326_v16 = vld [vmem:[%s2453_s1 + $0x40] sm:$0xff]  ;;  %s1575_s10 = sshll.u32 %s2471_s9, 4 }
  0x49   : > { %s2266_s8 = scalar_lea.vmem %s2452_s0, %s1558_s28  ;;  %v329_v17 = vld [vmem:[%s2453_s1 + $0x58] sm:$0x3f]  ;;  %1601 = vmatpush1.bf16.msra.mxu0 %v1600_v9  ;;  %v1605_v18 = vpack.c.bf16 %v327_v15, %v324_v13  ;;  %v557_v21 = vld [vmem:[#allocation2 + $0x8] sm:$0xff]  ;;  %v556_v24 = vld [vmem:[#allocation2] sm:$0xff]  ;;  %s312_s26 = scalar_lea.vmem %s2459_s7, %s1575_s10 }
  0x4a   : > { %1609 = vmatprep.subr.bf16.mxu1 %v1608_v10  ;;  %v1612_v19 = vpack.c.bf16 %v329_v17, %v326_v16  ;;  %1604 = vmatprep.subr.msk.bf16.mxu0 %vm2231_vm2, %v1602_v14  ;;  %v314_v20 = vld [vmem:[%s2266_s8] sm:$0xff]  ;;  %v561_v22 = vld [vmem:[#allocation2 + $0x28] sm:$0xff]  ;;  %v316_v35 = vld [vmem:[%s2266_s8 + $0x10] sm:$0xff] }
  0x4b   : > { %1611 = vmatpush3.bf16.msra.mxu1 %v1608_v10  ;;  %1592 = vmatprep.mubr.msk.f32.mxu1 %vm347_vm3, %v314_v20  ;;  %v1618_v23 = vpack.c.bf16 %v561_v22, %v557_v21  ;;  %v560_v25 = vld [vmem:[#allocation2 + $0x20] sm:$0xff]  ;;  %v565_v26 = vld [vmem:[#allocation2 + $0x48] sm:$0xff]  ;;  %v317_v40 = vld [vmem:[%s2266_s8 + $0x18] sm:$0xff] }
  0x4c   : > { %1614 = vmatprep.subr.msk.bf16.mxu1 %vm2231_vm2, %v1612_v19  ;;  %v569_v27 = vld [vmem:[#allocation2 + $0x68] sm:$0xff]  ;;  %v1620_v29 = vpack.c.bf16 %v560_v25, %v556_v24  ;;  %v564_v31 = vld [vmem:[#allocation2 + $0x40] sm:$0xff] }
  0x4d   : > { %1607 = vmatpush1.bf16.msk.msra.mxu0 %vm2231_vm2, %v1605_v18  ;;  %v315_v28 = vld [vmem:[%s2266_s8 + $0x8] sm:$0xff]  ;;  %v1622_v30 = vpack.c.bf16 %v569_v27, %v565_v26  ;;  %v568_v32 = vld [vmem:[#allocation2 + $0x60] sm:$0xff] }
  0x4e   : > { %v573_v33 = vld [vmem:[#allocation2 + $0x88] sm:$0xff]  ;;  %v1624_v36 = vpack.c.bf16 %v568_v32, %v564_v31  ;;  %v572_v38 = vld [vmem:[#allocation2 + $0x80] sm:$0xff] }
  0x4f   : > { %1617 = vmatpush3.bf16.msk.msra.mxu1 %vm2231_vm2, %v1612_v19  ;;  %v577_v34 = vld [vmem:[#allocation2 + $0xa8] sm:$0xff]  ;;  %v576_v39 = vld [vmem:[#allocation2 + $0xa0] sm:$0xff] }
  0x50   : > { %1619 = vmatprep.subr.bf16.mxu1 %v1618_v23  ;;  %1564 = vmatmul.mubr.msk.f32.vlgmr.msra.gmra.mrb[0].mxu0 %vm347_vm3, %v314_v20  ;;  %v1626_v37 = vpack.c.bf16 %v577_v34, %v573_v33  ;;  %v581_v41 = vld [vmem:[#allocation2 + $0xc8] sm:$0xff]  ;;  %v1628_v43 = vpack.c.bf16 %v576_v39, %v572_v38  ;;  %v580_v47 = vld [vmem:[#allocation2 + $0xc0] sm:$0xff] }
  0x51   : > { %440 = vmatprep.mubr.f32.mxu0 %v2099_v0  ;;  %v585_v42 = vld [vmem:[#allocation2 + $0xe8] sm:$0xff]  ;;  %v584_v48 = vld [vmem:[#allocation2 + $0xe0] sm:$0xff] }
  0x52   : > { %1593 = vmatmul.mubr.msk.f32.vlgmr.msra.gmra.mrb[0].mxu1 %vm347_vm3, %v315_v28  ;;  %v685_v44 = vld [vmem:[#allocation2 + $0x408] sm:$0xff]  ;;  %v1630_v46 = vpack.c.bf16 %v585_v42, %v581_v41  ;;  %v684_v50 = vld [vmem:[#allocation2 + $0x400] sm:$0xff]  ;;  %v1632_v57 = vpack.c.bf16 %v584_v48, %v580_v47 }
  0x53   : > { %1595 = vmatprep.mubr.msk.f32.mxu1 %vm347_vm3, %v316_v35  ;;  %1621 = vmatpush1.bf16.msra.mxu1 %v1620_v29  ;;  %v689_v45 = vld [vmem:[#allocation2 + $0x428] sm:$0xff]  ;;  %v688_v53 = vld [vmem:[#allocation2 + $0x420] sm:$0xff] }
  0x54   : > { %1623 = vmatprep.subr.bf16.mxu1 %v1622_v30  ;;  %1565 = vmatmul.mubr.msk.f32.gmra.mrb[2].mxu0 %vm347_vm3, %v315_v28  ;;  %v1682_v49 = vpack.c.bf16 %v689_v45, %v685_v44  ;;  %v589_v51 = vld [vmem:[#allocation2 + $0x108] sm:$0xff]  ;;  %v1684_v54 = vpack.c.bf16 %v688_v53, %v684_v50  ;;  %v692_v59 = vld [vmem:[#allocation2 + $0x440] sm:$0xff] }
  0x55   : > { %446 = vmatprep.mubr.f32.mxu0 %v2099_v0  ;;  %v593_v52 = vld [vmem:[#allocation2 + $0x128] sm:$0xff]  ;;  %v696_v60 = vld [vmem:[#allocation2 + $0x460] sm:$0xff] }
  0x56   : > { %1596 = vmatmul.mubr.msk.f32.gmra.mrb[2].mxu1 %vm347_vm3, %v317_v40  ;;  %1683 = vmatprep.subr.bf16.mxu0 %v1682_v49  ;;  %v693_v55 = vld [vmem:[#allocation2 + $0x448] sm:$0xff]  ;;  %v1634_v61 = vpack.c.bf16 %v593_v52, %v589_v51  ;;  %v588_v62 = vld [vmem:[#allocation2 + $0x100] sm:$0xff]  ;;  %v1688_v1 = vpack.c.bf16 %v696_v60, %v692_v59 }
  0x57   : > { %1625 = vmatpush1.bf16.msra.mxu1 %v1624_v36  ;;  %v697_v56 = vld [vmem:[#allocation2 + $0x468] sm:$0xff]  ;;  %v592_v63 = vld [vmem:[#allocation2 + $0x120] sm:$0xff]  ;;  %1685 = vmatpush1.bf16.msra.mxu0 %v1684_v54 }
  0x58   : > { %1627 = vmatprep.subr.bf16.mxu1 %v1626_v37  ;;  %1566 = vmatmul.mubr.msk.f32.gmra.mrb[4].mxu0 %vm347_vm3, %v316_v35  ;;  %v1686_v58 = vpack.c.bf16 %v697_v56, %v693_v55  ;;  %v701_v2 = vld [vmem:[#allocation2 + $0x488] sm:$0xff]  ;;  %v700_v7 = vld [vmem:[#allocation2 + $0x480] sm:$0xff]  ;;  %v1636_v9 = vpack.c.bf16 %v592_v63, %v588_v62 }
  0x59   : > { %452 = vmatprep.mubr.f32.mxu0 %v2099_v0  ;;  %v597_v3 = vld [vmem:[#allocation2 + $0x148] sm:$0xff]  ;;  %v704_v8 = vld [vmem:[#allocation2 + $0x4a0] sm:$0xff] }
  0x5a   : > { %v601_v4 = vld [vmem:[#allocation2 + $0x168] sm:$0xff]  ;;  %1687 = vmatprep.subr.bf16.mxu0 %v1686_v58  ;;  %v596_v13 = vld [vmem:[#allocation2 + $0x140] sm:$0xff]  ;;  %v1692_v16 = vpack.c.bf16 %v704_v8, %v700_v7 }
  0x5b   : > { %1629 = vmatpush1.bf16.msra.mxu1 %v1628_v43  ;;  %v705_v5 = vld [vmem:[#allocation2 + $0x4a8] sm:$0xff]  ;;  %v1638_v12 = vpack.c.bf16 %v601_v4, %v597_v3  ;;  %v600_v14 = vld [vmem:[#allocation2 + $0x160] sm:$0xff]  ;;  %1689 = vmatpush1.bf16.msra.mxu0 %v1688_v1 }
  0x5c   : > { %1631 = vmatprep.subr.bf16.mxu1 %v1630_v46  ;;  %1567 = vmatmul.mubr.msk.f32.gmra.mrb[6].mxu0 %vm347_vm3, %v317_v40  ;;  %v1690_v6 = vpack.c.bf16 %v705_v5, %v701_v2  ;;  %v709_v10 = vld [vmem:[#allocation2 + $0x4c8] sm:$0xff]  ;;  %v708_v19 = vld [vmem:[#allocation2 + $0x4c0] sm:$0xff]  ;;  %v1640_v23 = vpack.c.bf16 %v600_v14, %v596_v13 }
  0x5d   : > { %923 = vmatprep.mubr.f32.mxu0 %v2099_v0  ;;  %v713_v11 = vld [vmem:[#allocation2 + $0x4e8] sm:$0xff]  ;;  %v712_v20 = vld [vmem:[#allocation2 + $0x4e0] sm:$0xff] }
  0x5e   : > { %v605_v15 = vld [vmem:[#allocation2 + $0x188] sm:$0xff]  ;;  %1691 = vmatprep.subr.bf16.mxu0 %v1690_v6  ;;  %v1694_v18 = vpack.c.bf16 %v713_v11, %v709_v10  ;;  %v604_v25 = vld [vmem:[#allocation2 + $0x180] sm:$0xff]  ;;  %v1696_v28 = vpack.c.bf16 %v712_v20, %v708_v19 }
  0x5f   : > { %1633 = vmatpush1.bf16.msra.mxu1 %v1632_v57  ;;  %v609_v17 = vld [vmem:[#allocation2 + $0x1a8] sm:$0xff]  ;;  %v608_v26 = vld [vmem:[#allocation2 + $0x1a0] sm:$0xff]  ;;  %1693 = vmatpush1.bf16.msra.mxu0 %v1692_v16 }
  0x60   : > { %1635 = vmatprep.subr.bf16.mxu1 %v1634_v61  ;;  %v717_v21 = vld [vmem:[#allocation2 + $0x508] sm:$0xff]  ;;  %v1642_v24 = vpack.c.bf16 %v609_v17, %v605_v15  ;;  %1695 = vmatprep.subr.bf16.mxu0 %v1694_v18  ;;  %v716_v31 = vld [vmem:[#allocation2 + $0x500] sm:$0xff]  ;;  %v1644_v35 = vpack.c.bf16 %v608_v26, %v604_v25 }
  0x61   : > { %v721_v22 = vld [vmem:[#allocation2 + $0x528] sm:$0xff]  ;;  %v720_v32 = vld [vmem:[#allocation2 + $0x520] sm:$0xff] }
  0x62   : > { %v613_v27 = vld [vmem:[#allocation2 + $0x1c8] sm:$0xff]  ;;  %v1698_v30 = vpack.c.bf16 %v721_v22, %v717_v21  ;;  %v612_v37 = vld [vmem:[#allocation2 + $0x1c0] sm:$0xff]  ;;  %v1700_v40 = vpack.c.bf16 %v720_v32, %v716_v31 }
  0x63   : > { %1637 = vmatpush1.bf16.msra.mxu1 %v1636_v9  ;;  %v617_v29 = vld [vmem:[#allocation2 + $0x1e8] sm:$0xff]  ;;  %v616_v38 = vld [vmem:[#allocation2 + $0x1e0] sm:$0xff]  ;;  %1697 = vmatpush1.bf16.msra.mxu0 %v1696_v28 }
  0x64   : > { %1639 = vmatprep.subr.bf16.mxu1 %v1638_v12  ;;  %v725_v33 = vld [vmem:[#allocation2 + $0x548] sm:$0xff]  ;;  %v1646_v36 = vpack.c.bf16 %v617_v29, %v613_v27  ;;  %1699 = vmatprep.subr.bf16.mxu0 %v1698_v30  ;;  %v724_v43 = vld [vmem:[#allocation2 + $0x540] sm:$0xff]  ;;  %v1648_v45 = vpack.c.bf16 %v616_v38, %v612_v37 }
  0x65   : > { %v729_v34 = vld [vmem:[#allocation2 + $0x568] sm:$0xff]  ;;  %v728_v44 = vld [vmem:[#allocation2 + $0x560] sm:$0xff] }
  0x66   : > { %v621_v39 = vld [vmem:[#allocation2 + $0x208] sm:$0xff]  ;;  %v1702_v42 = vpack.c.bf16 %v729_v34, %v725_v33  ;;  %v620_v47 = vld [vmem:[#allocation2 + $0x200] sm:$0xff]  ;;  %v1704_v49 = vpack.c.bf16 %v728_v44, %v724_v43  ;;  %v563_v43 = vld [vmem:[#allocation2 + $0x38] sm:$0xff] }
  0x67   : > { %1641 = vmatpush1.bf16.msra.mxu1 %v1640_v23  ;;  %v625_v41 = vld [vmem:[#allocation2 + $0x228] sm:$0xff]  ;;  %v624_v48 = vld [vmem:[#allocation2 + $0x220] sm:$0xff]  ;;  %1701 = vmatpush1.bf16.msra.mxu0 %v1700_v40 }
  0x68   : > { %1643 = vmatprep.subr.bf16.mxu1 %v1642_v24  ;;  %v1650_v46 = vpack.c.bf16 %v625_v41, %v621_v39  ;;  %v629_v50 = vld [vmem:[#allocation2 + $0x248] sm:$0xff]  ;;  %1703 = vmatprep.subr.bf16.mxu0 %v1702_v42  ;;  %v1652_v52 = vpack.c.bf16 %v624_v48, %v620_v47  ;;  %v628_v54 = vld [vmem:[#allocation2 + $0x240] sm:$0xff]  ;;  %v559_v41 = vld [vmem:[#allocation2 + $0x18] sm:$0xff] }
  0x69   : > { %v633_v51 = vld [vmem:[#allocation2 + $0x268] sm:$0xff]  ;;  %v632_v55 = vld [vmem:[#allocation2 + $0x260] sm:$0xff]  ;;  %v1714_v44 = vpack.c.bf16 %v563_v43, %v559_v41  ;;  %v1145_v47 = vld [vmem:[#allocation4 + $0x18] sm:$0xff] }
  0x6a   : > { %v1654_v53 = vpack.c.bf16 %v633_v51, %v629_v50  ;;  %v637_v56 = vld [vmem:[#allocation2 + $0x288] sm:$0xff]  ;;  %v1656_v58 = vpack.c.bf16 %v632_v55, %v628_v54  ;;  %v636_v60 = vld [vmem:[#allocation2 + $0x280] sm:$0xff]  ;;  %v578_v41 = vld [vmem:[#allocation2 + $0xb0] sm:$0xff] }
  0x6b   : > { %1645 = vmatpush1.bf16.msra.mxu1 %v1644_v35  ;;  %1705 = vmatpush1.bf16.msra.mxu0 %v1704_v49  ;;  %v641_v57 = vld [vmem:[#allocation2 + $0x2a8] sm:$0xff]  ;;  %v640_v61 = vld [vmem:[#allocation2 + $0x2a0] sm:$0xff] }
  0x6c   : > { %1647 = vmatprep.subr.bf16.mxu1 %v1646_v36  ;;  %v1658_v59 = vpack.c.bf16 %v641_v57, %v637_v56  ;;  %v645_v62 = vld [vmem:[#allocation2 + $0x2c8] sm:$0xff]  ;;  %v1660_v1 = vpack.c.bf16 %v640_v61, %v636_v60  ;;  %v644_v3 = vld [vmem:[#allocation2 + $0x2c0] sm:$0xff] }
  0x6d   : > { %v649_v63 = vld [vmem:[#allocation2 + $0x2e8] sm:$0xff]  ;;  %v648_v4 = vld [vmem:[#allocation2 + $0x2e0] sm:$0xff] }
  0x6e   : > { %v1662_v2 = vpack.c.bf16 %v649_v63, %v645_v62  ;;  %v653_v5 = vld [vmem:[#allocation2 + $0x308] sm:$0xff]  ;;  %v1664_v7 = vpack.c.bf16 %v648_v4, %v644_v3  ;;  %v652_v9 = vld [vmem:[#allocation2 + $0x300] sm:$0xff]  ;;  %v562_v62 = vld [vmem:[#allocation2 + $0x30] sm:$0xff] }
  0x6f   : > { %1649 = vmatpush1.bf16.msra.mxu1 %v1648_v45  ;;  %v657_v6 = vld [vmem:[#allocation2 + $0x328] sm:$0xff]  ;;  %v656_v10 = vld [vmem:[#allocation2 + $0x320] sm:$0xff]  ;;  %v332_v45 = vlaneseq  ;;  %v567_v63 = vld [vmem:[#allocation2 + $0x58] sm:$0xff] }
  0x70   : > { %1651 = vmatprep.subr.bf16.mxu1 %v1650_v46  ;;  %v1666_v8 = vpack.c.bf16 %v657_v6, %v653_v5  ;;  %v661_v11 = vld [vmem:[#allocation2 + $0x348] sm:$0xff]  ;;  %v1668_v13 = vpack.c.bf16 %v656_v10, %v652_v9  ;;  %v660_v15 = vld [vmem:[#allocation2 + $0x340] sm:$0xff]  ;;  %v1144_v5 = vld [vmem:[#allocation4 + $0x10] sm:$0xff] }
  0x71   : > { %v665_v12 = vld [vmem:[#allocation2 + $0x368] sm:$0xff]  ;;  %v664_v16 = vld [vmem:[#allocation2 + $0x360] sm:$0xff]  ;;  %v2301_v49 = vshrl.u32 %v332_v45, 7  ;;  %v1149_v9 = vld [vmem:[#allocation4 + $0x38] sm:$0xff] }
  0x72   : > { %v1670_v14 = vpack.c.bf16 %v665_v12, %v661_v11  ;;  %v669_v17 = vld [vmem:[#allocation2 + $0x388] sm:$0xff]  ;;  %v1672_v19 = vpack.c.bf16 %v664_v16, %v660_v15  ;;  %v668_v21 = vld [vmem:[#allocation2 + $0x380] sm:$0xff]  ;;  %v587_v45 = vld [vmem:[#allocation2 + $0xf8] sm:$0xff] }
  0x73   : > { %1653 = vmatpush1.bf16.msra.mxu1 %v1652_v52  ;;  %v673_v18 = vld [vmem:[#allocation2 + $0x3a8] sm:$0xff]  ;;  %v672_v22 = vld [vmem:[#allocation2 + $0x3a0] sm:$0xff]  ;;  %v2304_v50 = vsub.s32 0, %v2301_v49  ;;  %v2310_v52 = vsub.s32 1, %v2301_v49 }
  0x74   : > { %1655 = vmatprep.subr.bf16.mxu1 %v1654_v53  ;;  %v1674_v20 = vpack.c.bf16 %v673_v18, %v669_v17  ;;  %v1676_v23 = vpack.c.bf16 %v672_v22, %v668_v21  ;;  %v733_v24 = vld [vmem:[#allocation2 + $0x588] sm:$0xff]  ;;  %v732_v29 = vld [vmem:[#allocation2 + $0x580] sm:$0xff]  ;;  %v342_v53 = vsub.s32 2, %v2301_v49 }
  0x75   : > { %v737_v25 = vld [vmem:[#allocation2 + $0x5a8] sm:$0xff]  ;;  %v736_v31 = vld [vmem:[#allocation2 + $0x5a0] sm:$0xff] }
  0x76   : > { %v1706_v26 = vpack.c.bf16 %v737_v25, %v733_v24  ;;  %v677_v27 = vld [vmem:[#allocation2 + $0x3c8] sm:$0xff]  ;;  %v676_v32 = vld [vmem:[#allocation2 + $0x3c0] sm:$0xff]  ;;  %v1708_v34 = vpack.c.bf16 %v736_v31, %v732_v29  ;;  %v579_v24 = vld [vmem:[#allocation2 + $0xb8] sm:$0xff] }
  0x77   : > { %1657 = vmatpush1.bf16.msra.mxu1 %v1656_v58  ;;  %v681_v28 = vld [vmem:[#allocation2 + $0x3e8] sm:$0xff]  ;;  %v680_v33 = vld [vmem:[#allocation2 + $0x3e0] sm:$0xff]  ;;  %v558_v58 = vld [vmem:[#allocation2 + $0x10] sm:$0xff] }
  0x78   : > { %1659 = vmatprep.subr.bf16.mxu1 %v1658_v59  ;;  %v1678_v30 = vpack.c.bf16 %v681_v28, %v677_v27  ;;  %1707 = vmatprep.subr.bf16.mxu0 %v1706_v26  ;;  %v1680_v35 = vpack.c.bf16 %v680_v33, %v676_v32  ;;  %v741_v36 = vld [vmem:[#allocation2 + $0x5c8] sm:$0xff]  ;;  %v740_v39 = vld [vmem:[#allocation2 + $0x5c0] sm:$0xff]  ;;  %v1716_v12 = vpack.c.bf16 %v562_v62, %v558_v58  ;;  %v1148_v28 = vld [vmem:[#allocation4 + $0x30] sm:$0xff] }
  0x79   : > { %v745_v37 = vld [vmem:[#allocation2 + $0x5e8] sm:$0xff]  ;;  %1709 = vmatpush1.bf16.msra.mxu0 %v1708_v34  ;;  %v744_v40 = vld [vmem:[#allocation2 + $0x5e0] sm:$0xff]  ;;  %v1153_v33 = vld [vmem:[#allocation4 + $0x58] sm:$0xff] }
  0x7a   : > { %v1710_v38 = vpack.c.bf16 %v745_v37, %v741_v36  ;;  %v1712_v42 = vpack.c.bf16 %v744_v40, %v740_v39  ;;  %v1143_v46 = vld [vmem:[#allocation4 + $0x8] sm:$0xff]  ;;  %v330_v51 = vld [vmem:[%s2454_s2] sm:$0x7]  ;;  %v574_v40 = vld [vmem:[#allocation2 + $0x90] sm:$0xff] }
  0x7b   : > { %1661 = vmatpush1.bf16.msra.mxu1 %v1660_v1  ;;  %v1810_v48 = vpack.c.bf16 %v1145_v47, %v1143_v46  ;;  %v2314_v54 = vrot.slane %v330_v51, %v2304_v50  ;;  %v2317_v55 = vrot.slane %v330_v51, %v2310_v52  ;;  %v2321_v56 = vrot.slane %v330_v51, %v342_v53  ;;  %v571_v1 = vld [vmem:[#allocation2 + $0x78] sm:$0xff]  ;;  %v1142_v4 = vld [vmem:[#allocation4] sm:$0xff]  ;;  %v1151_v32 = vld [vmem:[#allocation4 + $0x48] sm:$0xff] }
  0x7c   : > { %1663 = vmatprep.subr.bf16.mxu1 %v1662_v2  ;;  %1711 = vmatprep.subr.bf16.mxu0 %v1710_v38  ;;  %v1812_v22 = vpack.c.bf16 %v1144_v5, %v1142_v4  ;;  %v1146_v27 = vld [vmem:[#allocation4 + $0x20] sm:$0xff]  ;;  %v1818_v46 = vpack.c.bf16 %v1153_v33, %v1151_v32  ;;  %v603_v33 = vld [vmem:[#allocation2 + $0x178] sm:$0xff] }
  0x7d   : > { %1713 = vmatpush1.bf16.msra.mxu0 %v1712_v42  ;;  %v583_v42 = vld [vmem:[#allocation2 + $0xd8] sm:$0xff]  ;;  %v1816_v43 = vpack.c.bf16 %v1148_v28, %v1146_v27  ;;  %v1150_v47 = vld [vmem:[#allocation4 + $0x40] sm:$0xff]  ;;  %v594_v27 = vld [vmem:[#allocation2 + $0x130] sm:$0xff] }
  0x7e   : > { %1811 = vmatprep.subr.bf16.mxu0 %v1810_v48  ;;  %v1152_v48 = vld [vmem:[#allocation4 + $0x50] sm:$0xff]  ;;  %v1726_v5 = vpack.c.bf16 %v587_v45, %v583_v42  ;;  %v599_v28 = vld [vmem:[#allocation2 + $0x158] sm:$0xff] }
  0x7f   : > { %1665 = vmatpush1.bf16.msra.mxu1 %v1664_v7  ;;  %v1734_v42 = vpack.c.bf16 %v603_v33, %v599_v28  ;;  %v602_v45 = vld [vmem:[#allocation2 + $0x170] sm:$0xff] }
  0x80   : > { %1667 = vmatprep.subr.bf16.mxu1 %v1666_v8  ;;  %v1147_v8 = vld [vmem:[#allocation4 + $0x28] sm:$0xff] }
  0x81   : > { %v1814_v26 = vpack.c.bf16 %v1149_v9, %v1147_v8  ;;  %v582_v8 = vld [vmem:[#allocation2 + $0xd0] sm:$0xff]  ;;  %v591_v9 = vld [vmem:[#allocation2 + $0x118] sm:$0xff] }
  0x83   : > { %1669 = vmatpush1.bf16.msra.mxu1 %v1668_v13  ;;  %v1718_v13 = vpack.c.bf16 %v571_v1, %v567_v63  ;;  %v1724_v1 = vpack.c.bf16 %v578_v41, %v574_v40  ;;  %v1165_v40 = vld [vmem:[#allocation4 + $0xb8] sm:$0xff] }
  0x84   : > { %1671 = vmatprep.subr.bf16.mxu1 %v1670_v14  ;;  %v566_v14 = vld [vmem:[#allocation2 + $0x50] sm:$0xff] }
  0x87   : > { %1673 = vmatpush1.bf16.msra.mxu1 %v1672_v19  ;;  %v570_v19 = vld [vmem:[#allocation2 + $0x70] sm:$0xff] }
  0x88   : > { %1675 = vmatprep.subr.bf16.mxu1 %v1674_v20  ;;  %v575_v20 = vld [vmem:[#allocation2 + $0x98] sm:$0xff]  ;;  %v1720_v36 = vpack.c.bf16 %v570_v19, %v566_v14 }
  0x89   : > { %v1722_v39 = vpack.c.bf16 %v579_v24, %v575_v20 }
  0x8b   : > { %1677 = vmatpush1.bf16.msra.mxu1 %v1676_v23 }
  0x8c   : > { %1679 = vmatprep.subr.bf16.mxu1 %v1678_v30 }
  0x8f   : > { %1681 = vmatpush1.bf16.msra.mxu1 %v1680_v35 }
  0x90   : > { %1715 = vmatprep.subr.bf16.mxu1 %v1714_v44 }
 0x123   : > { %v436_v57 = vpop.f32.mrb[0].mxu0 }
 0x124   : > { %v2324_v59 = vadd.f32 %v436_v57, %v2314_v54  ;;  %v438_v60 = vpop.f32.mrb[1].mxu0 }
 0x125   : > { %v1594_v61 = vpop.f32.mrb[0].mxu1  ;;  %v2327_v2 = vadd.f32 %v438_v60, %v2317_v55  ;;  %v1155_v60 = vld [vmem:[#allocation4 + $0x68] sm:$0xff] }
 0x126   : > { %v525_v3 = vpop.f32.mrb[1].mxu1  ;;  %v2330_v6 = vadd.f32 %v1594_v61, %v2321_v56  ;;  %v544_v15 = vmax.f32 %v2324_v59, 0.0  ;;  %v1157_v61 = vld [vmem:[#allocation4 + $0x78] sm:$0xff] }
 0x127   : > { %v2333_v7 = vadd.f32 %v525_v3, %v2321_v56  ;;  %v545_v10 = vmax.f32 %v2327_v2, 0.0  ;;  %v442_v11 = vpop.f32.mrb[2].mxu0  ;;  %v1822_v14 = vpack.c.bf16 %v1157_v61, %v1155_v60  ;;  %v1162_v61 = vld [vmem:[#allocation4 + $0xa0] sm:$0xff] }
 0x128   : > { %v2338_v16 = vadd.f32 %v442_v11, %v2314_v54  ;;  %v444_v18 = vpop.f32.mrb[3].mxu0  ;;  %v549_v29 = vmax.f32 %v2330_v6, 0.0  ;;  %v1820_v11 = vpack.c.bf16 %v1152_v48, %v1150_v47  ;;  %v611_v48 = vld [vmem:[#allocation2 + $0x1b8] sm:$0xff] }
 0x129   : > { %v546_v17 = vmax.f32 %v2333_v7, 0.0  ;;  %v1597_v21 = vpop.f32.mrb[2].mxu1  ;;  %v2342_v23 = vadd.f32 %v444_v18, %v2317_v55  ;;  %834 = vmatprep.mubr.f32.mxu1 %v545_v10  ;;  %v1154_v18 = vld [vmem:[#allocation4 + $0x60] sm:$0xff] }
 0x12a   : > { %v535_v25 = vpop.f32.mrb[3].mxu1  ;;  %v547_v30 = vmax.f32 %v2338_v16, 0.0  ;;  %835 = vmatmul.mubr.f32.vlgmr.msra.gmra.mrb[4].mxu1 %v544_v15  ;;  %v2371_v57 = vadd.f32 %v1597_v21, %v2321_v56  ;;  %v1161_v21 = vld [vmem:[#allocation4 + $0x98] sm:$0xff]  ;;  %v2429_v7 = vld [vmem:[%s2456_s4] sm:$0xf] }
 0x12b   : > { %924 = vmatmul.mubr.f32.vlgmr.msra.gmra.mrb[8].mxu0 %v546_v17  ;;  %v2353_v31 = vadd.f32 %v535_v25, %v2321_v56  ;;  %v548_v34 = vmax.f32 %v2342_v23, 0.0  ;;  %1717 = vmatpush1.bf16.msra.mxu1 %v1716_v12  ;;  %v448_v35 = vpop.f32.mrb[4].mxu0  ;;  %v586_v56 = vld [vmem:[#allocation2 + $0xf0] sm:$0xff]  ;;  %v757_v6 = vrot.slane %v2429_v7, %v2310_v52 }
 0x12c   : > { %929 = vmatprep.mubr.f32.mxu0 %v2099_v0  ;;  %v2358_v37 = vadd.f32 %v448_v35, %v2314_v54  ;;  %v450_v38 = vpop.f32.mrb[5].mxu0  ;;  %1719 = vmatprep.subr.bf16.mxu1 %v1718_v13  ;;  %v595_v13 = vld [vmem:[#allocation2 + $0x138] sm:$0xff]  ;;  %v555_v20 = vmax.f32 %v2371_v57, 0.0  ;;  %v1728_v24 = vpack.c.bf16 %v586_v56, %v582_v8  ;;  %v610_v8 = vld [vmem:[#allocation2 + $0x1b0] sm:$0xff]  ;;  %v1206_v57 = vld [vmem:[#allocation4 + $0x200] sm:$0xff] }
 0x12d   : > { %1813 = vmatpush1.bf16.msra.mxu0 %v1812_v22  ;;  %v2361_v44 = vadd.f32 %v450_v38, %v2317_v55  ;;  %840 = vmatprep.mubr.f32.mxu1 %v548_v34  ;;  %v552_v58 = vmax.f32 %v2353_v31, 0.0  ;;  %v1730_v25 = vpack.c.bf16 %v595_v13, %v591_v9  ;;  %v1160_v38 = vld [vmem:[#allocation4 + $0x90] sm:$0xff]  ;;  %v615_v56 = vld [vmem:[#allocation2 + $0x1d8] sm:$0xff] }
 0x12e   : > { %1815 = vmatprep.subr.bf16.mxu0 %v1814_v26  ;;  %v550_v51 = vmax.f32 %v2358_v37, 0.0  ;;  %841 = vmatmul.mubr.f32.gmra.mrb[6].mxu1 %v547_v30  ;;  %v590_v26 = vld [vmem:[#allocation2 + $0x110] sm:$0xff] }
 0x12f   : > { %930 = vmatmul.mubr.f32.gmra.mrb[10].mxu0 %v549_v29  ;;  %v551_v62 = vmax.f32 %v2361_v44, 0.0  ;;  %1721 = vmatpush1.bf16.msra.mxu1 %v1720_v36  ;;  %v454_v63 = vpop.f32.mrb[6].mxu0  ;;  %v1158_v36 = vld [vmem:[#allocation4 + $0x80] sm:$0xff]  ;;  %v1732_v41 = vpack.c.bf16 %v594_v27, %v590_v26  ;;  %v618_v26 = vld [vmem:[#allocation2 + $0x1f0] sm:$0xff]  ;;  %v623_v27 = vld [vmem:[#allocation2 + $0x218] sm:$0xff] }
 0x130   : > { %935 = vmatprep.mubr.f32.mxu0 %v2099_v0  ;;  %v2377_v3 = vadd.f32 %v454_v63, %v2314_v54  ;;  %v456_v4 = vpop.f32.mrb[7].mxu0  ;;  %1723 = vmatprep.subr.bf16.mxu1 %v1722_v39  ;;  %v1156_v54 = vld [vmem:[#allocation4 + $0x70] sm:$0xff]  ;;  %v1163_v39 = vld [vmem:[#allocation4 + $0xa8] sm:$0xff]  ;;  %v1828_v47 = vpack.c.bf16 %v1160_v38, %v1158_v36 }
 0x131   : > { %1817 = vmatpush1.bf16.msra.mxu0 %v1816_v43  ;;  %v2380_v12 = vadd.f32 %v456_v4, %v2317_v55  ;;  %846 = vmatprep.mubr.f32.mxu1 %v551_v62  ;;  %v1159_v55 = vld [vmem:[#allocation4 + $0x88] sm:$0xff]  ;;  %v1824_v32 = vpack.c.bf16 %v1156_v54, %v1154_v18  ;;  %v598_v43 = vld [vmem:[#allocation2 + $0x150] sm:$0xff]  ;;  %v1830_v60 = vpack.c.bf16 %v1165_v40, %v1163_v39  ;;  %v1169_v4 = vld [vmem:[#allocation4 + $0xd8] sm:$0xff] }
 0x132   : > { %1819 = vmatprep.subr.bf16.mxu0 %v1818_v46  ;;  %v553_v19 = vmax.f32 %v2377_v3, 0.0  ;;  %847 = vmatmul.mubr.f32.gmra.mrb[8].mxu1 %v550_v51  ;;  %v1826_v35 = vpack.c.bf16 %v1161_v21, %v1159_v55  ;;  %v607_v46 = vld [vmem:[#allocation2 + $0x198] sm:$0xff]  ;;  %v1164_v63 = vld [vmem:[#allocation4 + $0xb0] sm:$0xff]  ;;  %v1171_v54 = vld [vmem:[#allocation4 + $0xe8] sm:$0xff] }
 0x133   : > { %936 = vmatmul.mubr.f32.gmra.mrb[12].mxu0 %v552_v58  ;;  %v554_v22 = vmax.f32 %v2380_v12, 0.0  ;;  %1725 = vmatpush1.bf16.msra.mxu1 %v1724_v1  ;;  %v1167_v1 = vld [vmem:[#allocation4 + $0xc8] sm:$0xff]  ;;  %v1738_v2 = vpack.c.bf16 %v611_v48, %v607_v46  ;;  %v1832_v9 = vpack.c.bf16 %v1164_v63, %v1162_v61  ;;  %v1168_v18 = vld [vmem:[#allocation4 + $0xd0] sm:$0xff]  ;;  %v1173_v55 = vld [vmem:[#allocation4 + $0xf8] sm:$0xff] }
 0x134   : > { %941 = vmatprep.mubr.f32.mxu0 %v2099_v0  ;;  %1727 = vmatprep.subr.bf16.mxu1 %v1726_v5  ;;  %v1736_v5 = vpack.c.bf16 %v602_v45, %v598_v43  ;;  %v1834_v13 = vpack.c.bf16 %v1169_v4, %v1167_v1  ;;  %v1838_v33 = vpack.c.bf16 %v1173_v55, %v1171_v54  ;;  %v1172_v36 = vld [vmem:[#allocation4 + $0xf0] sm:$0xff]  ;;  %v1175_v38 = vld [vmem:[#allocation4 + $0x108] sm:$0xff]  ;;  %v1177_v39 = vld [vmem:[#allocation4 + $0x118] sm:$0xff] }
 0x135   : > { %1821 = vmatpush1.bf16.msra.mxu0 %v1820_v11  ;;  %852 = vmatprep.mubr.f32.mxu1 %v554_v22  ;;  %v619_v11 = vld [vmem:[#allocation2 + $0x1f8] sm:$0xff]  ;;  %v626_v43 = vld [vmem:[#allocation2 + $0x230] sm:$0xff]  ;;  %v1842_v48 = vpack.c.bf16 %v1177_v39, %v1175_v38  ;;  %v1179_v63 = vld [vmem:[#allocation4 + $0x128] sm:$0xff] }
 0x136   : > { %1823 = vmatprep.subr.bf16.mxu0 %v1822_v14  ;;  %853 = vmatmul.mubr.f32.gmra.mrb[10].mxu1 %v553_v19  ;;  %v1166_v14 = vld [vmem:[#allocation4 + $0xc0] sm:$0xff]  ;;  %v631_v45 = vld [vmem:[#allocation2 + $0x258] sm:$0xff]  ;;  %v1176_v61 = vld [vmem:[#allocation4 + $0x110] sm:$0xff] }
 0x137   : > { %942 = vmatmul.mubr.f32.gmra.mrb[14].mxu0 %v555_v20  ;;  %1729 = vmatpush1.bf16.msra.mxu1 %v1728_v24  ;;  %v1742_v24 = vpack.c.bf16 %v619_v11, %v615_v56  ;;  %v1836_v28 = vpack.c.bf16 %v1168_v18, %v1166_v14  ;;  %v1181_v1 = vld [vmem:[#allocation4 + $0x138] sm:$0xff]  ;;  %v1180_v14 = vld [vmem:[#allocation4 + $0x130] sm:$0xff]  ;;  %v1183_v18 = vld [vmem:[#allocation4 + $0x148] sm:$0xff] }
 0x138   : > { %1012 = vmatprep.mubr.f32.mxu1 %v545_v10  ;;  %1731 = vmatprep.subr.bf16.mxu1 %v1730_v25  ;;  %v606_v10 = vld [vmem:[#allocation2 + $0x190] sm:$0xff]  ;;  %v1846_v11 = vpack.c.bf16 %v1181_v1, %v1179_v63  ;;  %v1185_v54 = vld [vmem:[#allocation4 + $0x158] sm:$0xff] }
 0x139   : > { %1825 = vmatpush1.bf16.msra.mxu0 %v1824_v32  ;;  %v1740_v21 = vpack.c.bf16 %v610_v8, %v606_v10  ;;  %v614_v25 = vld [vmem:[#allocation2 + $0x1d0] sm:$0xff]  ;;  %v627_v32 = vld [vmem:[#allocation2 + $0x238] sm:$0xff] }
 0x13a   : > { %1827 = vmatprep.subr.bf16.mxu0 %v1826_v35  ;;  %v1170_v35 = vld [vmem:[#allocation4 + $0xe0] sm:$0xff]  ;;  %v1744_v40 = vpack.c.bf16 %v618_v26, %v614_v25  ;;  %v634_v10 = vld [vmem:[#allocation2 + $0x270] sm:$0xff]  ;;  %v639_v8 = vld [vmem:[#allocation2 + $0x298] sm:$0xff] }
 0x13b   : > { %1733 = vmatpush1.bf16.msra.mxu1 %v1732_v41  ;;  %v1746_v41 = vpack.c.bf16 %v627_v32, %v623_v27  ;;  %v1840_v46 = vpack.c.bf16 %v1172_v36, %v1170_v35  ;;  %v642_v25 = vld [vmem:[#allocation2 + $0x2b0] sm:$0xff]  ;;  %v647_v26 = vld [vmem:[#allocation2 + $0x2d8] sm:$0xff]  ;;  %v1850_v32 = vpack.c.bf16 %v1185_v54, %v1183_v18  ;;  %v1187_v36 = vld [vmem:[#allocation4 + $0x168] sm:$0xff] }
 0x13c   : > { %1735 = vmatprep.subr.bf16.mxu1 %v1734_v42  ;;  %v622_v42 = vld [vmem:[#allocation2 + $0x210] sm:$0xff]  ;;  %v1189_v38 = vld [vmem:[#allocation4 + $0x178] sm:$0xff] }
 0x13d   : > { %1829 = vmatpush1.bf16.msra.mxu0 %v1828_v47  ;;  %v635_v47 = vld [vmem:[#allocation2 + $0x278] sm:$0xff]  ;;  %v1748_v4 = vpack.c.bf16 %v626_v43, %v622_v42  ;;  %v1184_v35 = vld [vmem:[#allocation4 + $0x150] sm:$0xff] }
 0x13e   : > { %1831 = vmatprep.subr.bf16.mxu0 %v1830_v60  ;;  %v1174_v60 = vld [vmem:[#allocation4 + $0x100] sm:$0xff]  ;;  %v650_v42 = vld [vmem:[#allocation2 + $0x2f0] sm:$0xff]  ;;  %v655_v43 = vld [vmem:[#allocation2 + $0x318] sm:$0xff] }
 0x13f   : > { %1737 = vmatpush1.bf16.msra.mxu1 %v1736_v5  ;;  %v1750_v5 = vpack.c.bf16 %v635_v47, %v631_v45  ;;  %v1844_v56 = vpack.c.bf16 %v1176_v61, %v1174_v60  ;;  %v1854_v47 = vpack.c.bf16 %v1189_v38, %v1187_v36  ;;  %v1188_v60 = vld [vmem:[#allocation4 + $0x170] sm:$0xff]  ;;  %v1191_v61 = vld [vmem:[#allocation4 + $0x188] sm:$0xff]  ;;  %v1193_v63 = vld [vmem:[#allocation4 + $0x198] sm:$0xff] }
 0x140   : > { %1739 = vmatprep.subr.bf16.mxu1 %v1738_v2  ;;  %v630_v2 = vld [vmem:[#allocation2 + $0x250] sm:$0xff]  ;;  %v1197_v18 = vld [vmem:[#allocation4 + $0x1b8] sm:$0xff] }
 0x141   : > { %1833 = vmatpush1.bf16.msra.mxu0 %v1832_v9  ;;  %v643_v9 = vld [vmem:[#allocation2 + $0x2b8] sm:$0xff]  ;;  %v1752_v55 = vpack.c.bf16 %v634_v10, %v630_v2  ;;  %v658_v2 = vld [vmem:[#allocation2 + $0x330] sm:$0xff] }
 0x142   : > { %1835 = vmatprep.subr.bf16.mxu0 %v1834_v13  ;;  %v1178_v13 = vld [vmem:[#allocation4 + $0x120] sm:$0xff]  ;;  %v663_v10 = vld [vmem:[#allocation2 + $0x358] sm:$0xff]  ;;  %v670_v38 = vld [vmem:[#allocation2 + $0x390] sm:$0xff] }
 0x143   : > { %1741 = vmatpush1.bf16.msra.mxu1 %v1740_v21  ;;  %v1754_v21 = vpack.c.bf16 %v643_v9, %v639_v8  ;;  %v1848_v27 = vpack.c.bf16 %v1180_v14, %v1178_v13  ;;  %v1858_v9 = vpack.c.bf16 %v1193_v63, %v1191_v61  ;;  %v1192_v13 = vld [vmem:[#allocation4 + $0x190] sm:$0xff]  ;;  %v1195_v14 = vld [vmem:[#allocation4 + $0x1a8] sm:$0xff]  ;;  %v1201_v3 = vld [vmem:[#allocation4 + $0x1d8] sm:$0xff] }
 0x144   : > { %1743 = vmatprep.subr.bf16.mxu1 %v1742_v24  ;;  %v638_v24 = vld [vmem:[#allocation2 + $0x290] sm:$0xff] }
 0x145   : > { %1837 = vmatpush1.bf16.msra.mxu0 %v1836_v28  ;;  %v651_v28 = vld [vmem:[#allocation2 + $0x2f8] sm:$0xff]  ;;  %v1756_v39 = vpack.c.bf16 %v642_v25, %v638_v24  ;;  %v666_v24 = vld [vmem:[#allocation2 + $0x370] sm:$0xff] }
 0x146   : > { %1839 = vmatprep.subr.bf16.mxu0 %v1838_v33  ;;  %v1182_v33 = vld [vmem:[#allocation4 + $0x140] sm:$0xff]  ;;  %v671_v25 = vld [vmem:[#allocation2 + $0x398] sm:$0xff]  ;;  %v710_v23 = vld [vmem:[#allocation2 + $0x4d0] sm:$0xff] }
 0x147   : > { %1745 = vmatpush1.bf16.msra.mxu1 %v1744_v40  ;;  %v1758_v40 = vpack.c.bf16 %v651_v28, %v647_v26  ;;  %v1852_v45 = vpack.c.bf16 %v1184_v35, %v1182_v33  ;;  %v1862_v28 = vpack.c.bf16 %v1197_v18, %v1195_v14  ;;  %v1196_v33 = vld [vmem:[#allocation4 + $0x1b0] sm:$0xff] }
 0x148   : > { %1747 = vmatprep.subr.bf16.mxu1 %v1746_v41  ;;  %v646_v41 = vld [vmem:[#allocation2 + $0x2d0] sm:$0xff] }
 0x149   : > { %1841 = vmatpush1.bf16.msra.mxu0 %v1840_v46  ;;  %v659_v46 = vld [vmem:[#allocation2 + $0x338] sm:$0xff]  ;;  %v1760_v1 = vpack.c.bf16 %v650_v42, %v646_v41  ;;  %v718_v44 = vld [vmem:[#allocation2 + $0x510] sm:$0xff] }
 0x14a   : > { %1843 = vmatprep.subr.bf16.mxu0 %v1842_v48  ;;  %v1186_v48 = vld [vmem:[#allocation4 + $0x160] sm:$0xff]  ;;  %v679_v41 = vld [vmem:[#allocation2 + $0x3d8] sm:$0xff]  ;;  %v730_v12 = vld [vmem:[#allocation2 + $0x570] sm:$0xff] }
 0x14b   : > { %1749 = vmatpush1.bf16.msra.mxu1 %v1748_v4  ;;  %v1762_v4 = vpack.c.bf16 %v659_v46, %v655_v43  ;;  %v1856_v8 = vpack.c.bf16 %v1188_v60, %v1186_v48  ;;  %v683_v42 = vld [vmem:[#allocation2 + $0x3f8] sm:$0xff]  ;;  %v678_v46 = vld [vmem:[#allocation2 + $0x3d0] sm:$0xff] }
 0x14c   : > { %1751 = vmatprep.subr.bf16.mxu1 %v1750_v5  ;;  %v654_v5 = vld [vmem:[#allocation2 + $0x310] sm:$0xff]  ;;  %v687_v48 = vld [vmem:[#allocation2 + $0x418] sm:$0xff] }
 0x14d   : > { %1845 = vmatpush1.bf16.msra.mxu0 %v1844_v56  ;;  %v667_v56 = vld [vmem:[#allocation2 + $0x378] sm:$0xff]  ;;  %v1764_v54 = vpack.c.bf16 %v658_v2, %v654_v5 }
 0x14e   : > { %1847 = vmatprep.subr.bf16.mxu0 %v1846_v11  ;;  %v1190_v11 = vld [vmem:[#allocation4 + $0x180] sm:$0xff]  ;;  %v691_v60 = vld [vmem:[#allocation2 + $0x438] sm:$0xff] }
 0x14f   : > { %1753 = vmatpush1.bf16.msra.mxu1 %v1752_v55  ;;  %v1766_v55 = vpack.c.bf16 %v667_v56, %v663_v10  ;;  %v1860_v26 = vpack.c.bf16 %v1192_v13, %v1190_v11  ;;  %v1778_v63 = vpack.c.bf16 %v691_v60, %v687_v48  ;;  %v695_v5 = vld [vmem:[#allocation2 + $0x458] sm:$0xff]  ;;  %v694_v56 = vld [vmem:[#allocation2 + $0x450] sm:$0xff] }
 0x150   : > { %1755 = vmatprep.subr.bf16.mxu1 %v1754_v21  ;;  %v662_v21 = vld [vmem:[#allocation2 + $0x350] sm:$0xff]  ;;  %v699_v2 = vld [vmem:[#allocation2 + $0x478] sm:$0xff] }
 0x151   : > { %1849 = vmatpush1.bf16.msra.mxu0 %v1848_v27  ;;  %v675_v27 = vld [vmem:[#allocation2 + $0x3b8] sm:$0xff]  ;;  %v1768_v35 = vpack.c.bf16 %v666_v24, %v662_v21  ;;  %v742_v48 = vld [vmem:[#allocation2 + $0x5d0] sm:$0xff] }
 0x152   : > { %1851 = vmatprep.subr.bf16.mxu0 %v1850_v32  ;;  %v1194_v32 = vld [vmem:[#allocation4 + $0x1a0] sm:$0xff]  ;;  %v1770_v36 = vpack.c.bf16 %v675_v27, %v671_v25  ;;  %v703_v11 = vld [vmem:[#allocation2 + $0x498] sm:$0xff] }
 0x153   : > { %1757 = vmatpush1.bf16.msra.mxu1 %v1756_v39  ;;  %v674_v39 = vld [vmem:[#allocation2 + $0x3b0] sm:$0xff]  ;;  %v707_v13 = vld [vmem:[#allocation2 + $0x4b8] sm:$0xff] }
 0x154   : > { %1759 = vmatprep.subr.bf16.mxu1 %v1758_v40  ;;  %v1864_v40 = vpack.c.bf16 %v1196_v33, %v1194_v32  ;;  %v1772_v43 = vpack.c.bf16 %v674_v39, %v670_v38  ;;  %v1786_v18 = vpack.c.bf16 %v707_v13, %v703_v11  ;;  %v711_v21 = vld [vmem:[#allocation2 + $0x4d8] sm:$0xff]  ;;  %v738_v38 = vld [vmem:[#allocation2 + $0x5b0] sm:$0xff] }
 0x155   : > { %1853 = vmatpush1.bf16.msra.mxu0 %v1852_v45  ;;  %v1774_v45 = vpack.c.bf16 %v683_v42, %v679_v41  ;;  %v715_v24 = vld [vmem:[#allocation2 + $0x4f8] sm:$0xff]  ;;  %v1199_v41 = vld [vmem:[#allocation4 + $0x1c8] sm:$0xff] }
 0x156   : > { %1855 = vmatprep.subr.bf16.mxu0 %v1854_v47  ;;  %v682_v47 = vld [vmem:[#allocation2 + $0x3f0] sm:$0xff]  ;;  %v719_v25 = vld [vmem:[#allocation2 + $0x518] sm:$0xff]  ;;  %v1866_v42 = vpack.c.bf16 %v1201_v3, %v1199_v41 }
 0x157   : > { %1761 = vmatpush1.bf16.msra.mxu1 %v1760_v1  ;;  %v1776_v61 = vpack.c.bf16 %v682_v47, %v678_v46  ;;  %v686_v1 = vld [vmem:[#allocation2 + $0x410] sm:$0xff]  ;;  %v727_v27 = vld [vmem:[#allocation2 + $0x558] sm:$0xff] }
 0x158   : > { %1763 = vmatprep.subr.bf16.mxu1 %v1762_v4  ;;  %v690_v4 = vld [vmem:[#allocation2 + $0x430] sm:$0xff]  ;;  %v739_v33 = vld [vmem:[#allocation2 + $0x5b8] sm:$0xff] }
 0x159   : > { %1857 = vmatpush1.bf16.msra.mxu0 %v1856_v8  ;;  %v1780_v10 = vpack.c.bf16 %v690_v4, %v686_v1  ;;  %v1782_v8 = vpack.c.bf16 %v699_v2, %v695_v5  ;;  %v1205_v1 = vld [vmem:[#allocation4 + $0x1f8] sm:$0xff]  ;;  %v1202_v5 = vld [vmem:[#allocation4 + $0x1e0] sm:$0xff]  ;;  %v1204_v2 = vld [vmem:[#allocation4 + $0x1f0] sm:$0xff] }
 0x15a   : > { %1859 = vmatprep.subr.bf16.mxu0 %v1858_v9  ;;  %v698_v9 = vld [vmem:[#allocation2 + $0x470] sm:$0xff] }
 0x15b   : > { %1765 = vmatpush1.bf16.msra.mxu1 %v1764_v54  ;;  %v1784_v14 = vpack.c.bf16 %v698_v9, %v694_v56  ;;  %v702_v54 = vld [vmem:[#allocation2 + $0x490] sm:$0xff]  ;;  %v1207_v56 = vld [vmem:[#allocation4 + $0x208] sm:$0xff]  ;;  %v1209_v9 = vld [vmem:[#allocation4 + $0x218] sm:$0xff] }
 0x15c   : > { %1767 = vmatprep.subr.bf16.mxu1 %v1766_v55  ;;  %v706_v55 = vld [vmem:[#allocation2 + $0x4b0] sm:$0xff]  ;;  %v1874_v11 = vpack.c.bf16 %v1209_v9, %v1207_v56  ;;  %v1218_v56 = vld [vmem:[#allocation4 + $0x260] sm:$0xff] }
 0x15d   : > { %1861 = vmatpush1.bf16.msra.mxu0 %v1860_v26  ;;  %v1788_v59 = vpack.c.bf16 %v706_v55, %v702_v54  ;;  %v723_v26 = vld [vmem:[#allocation2 + $0x538] sm:$0xff]  ;;  %v1220_v9 = vld [vmem:[#allocation4 + $0x270] sm:$0xff] }
 0x15e   : > { %1863 = vmatprep.subr.bf16.mxu0 %v1862_v28  ;;  %v731_v28 = vld [vmem:[#allocation2 + $0x578] sm:$0xff] }
 0x15f   : > { %1769 = vmatpush1.bf16.msra.mxu1 %v1768_v35  ;;  %v1798_v37 = vpack.c.bf16 %v731_v28, %v727_v27  ;;  %v1210_v27 = vld [vmem:[#allocation4 + $0x220] sm:$0xff]  ;;  %v1212_v28 = vld [vmem:[#allocation4 + $0x230] sm:$0xff] }
 0x160   : > { %1771 = vmatprep.subr.bf16.mxu1 %v1770_v36  ;;  %v734_v36 = vld [vmem:[#allocation2 + $0x590] sm:$0xff] }
 0x161   : > { %1865 = vmatpush1.bf16.msra.mxu0 %v1864_v40  ;;  %v743_v40 = vld [vmem:[#allocation2 + $0x5d8] sm:$0xff]  ;;  %v1804_v47 = vpack.c.bf16 %v738_v38, %v734_v36 }
 0x162   : > { %1867 = vmatprep.subr.bf16.mxu0 %v1866_v42  ;;  %v1216_v42 = vld [vmem:[#allocation4 + $0x250] sm:$0xff] }
 0x163   : > { %1773 = vmatpush1.bf16.msra.mxu1 %v1772_v43  ;;  %v1198_v43 = vld [vmem:[#allocation4 + $0x1c0] sm:$0xff] }
 0x164   : > { %1775 = vmatprep.subr.bf16.mxu1 %v1774_v45  ;;  %v1200_v45 = vld [vmem:[#allocation4 + $0x1d0] sm:$0xff] }
 0x165   : > { %v1868_v46 = vpack.c.bf16 %v1200_v45, %v1198_v43  ;;  %v1219_v45 = vld [vmem:[#allocation4 + $0x268] sm:$0xff] }
 0x167   : > { %1777 = vmatpush1.bf16.msra.mxu1 %v1776_v61  ;;  %v746_v61 = vld [vmem:[#allocation2 + $0x5f0] sm:$0xff]  ;;  %1869 = vmatpush1.bf16.msra.mxu0 %v1868_v46  ;;  %v1221_v46 = vld [vmem:[#allocation4 + $0x278] sm:$0xff] }
 0x168   : > { %1779 = vmatprep.subr.bf16.mxu1 %v1778_v63  ;;  %v1203_v63 = vld [vmem:[#allocation4 + $0x1e8] sm:$0xff] }
 0x169   : > { %v1870_v4 = vpack.c.bf16 %v1205_v1, %v1203_v63 }
 0x16a   : > { %1013 = vmatmul.mubr.f32.vlgmr.msra.gmra.mrb[12].mxu1 %v544_v15  ;;  %v1790_v15 = vpack.c.bf16 %v715_v24, %v711_v21  ;;  %v1211_v24 = vld [vmem:[#allocation4 + $0x228] sm:$0xff] }
 0x16b   : > { %1018 = vmatprep.mubr.f32.mxu1 %v548_v34  ;;  %1781 = vmatpush1.bf16.msra.mxu1 %v1780_v10  ;;  %v714_v34 = vld [vmem:[#allocation2 + $0x4f0] sm:$0xff]  ;;  %v1872_v10 = vpack.c.bf16 %v1204_v2, %v1202_v5 }
 0x16c   : > { %1783 = vmatprep.subr.bf16.mxu1 %v1782_v8  ;;  %v1792_v16 = vpack.c.bf16 %v714_v34, %v710_v23  ;;  %v1808_v8 = vpack.c.bf16 %v746_v61, %v742_v48  ;;  %1871 = vmatprep.subr.bf16.mxu0 %v1870_v4 }
 0x16d   : > { %1873 = vmatpush1.bf16.msra.mxu0 %v1872_v10 }
 0x16e   : > { %1019 = vmatmul.mubr.f32.gmra.mrb[14].mxu1 %v547_v30  ;;  %v1794_v30 = vpack.c.bf16 %v723_v26, %v719_v25  ;;  %1875 = vmatprep.subr.bf16.mxu0 %v1874_v11 }
 0x16f   : > { %1024 = vmatprep.mubr.f32.mxu1 %v551_v62  ;;  %1785 = vmatpush1.bf16.msra.mxu1 %v1784_v14  ;;  %v722_v62 = vld [vmem:[#allocation2 + $0x530] sm:$0xff] }
 0x170   : > { %1787 = vmatprep.subr.bf16.mxu1 %v1786_v18  ;;  %v1796_v32 = vpack.c.bf16 %v722_v62, %v718_v44 }
 0x172   : > { %1025 = vmatmul.mubr.f32.gmra.mrb[16].mxu1 %v550_v51  ;;  %v726_v51 = vld [vmem:[#allocation2 + $0x550] sm:$0xff] }
 0x173   : > { %1030 = vmatprep.mubr.f32.mxu1 %v554_v22  ;;  %1789 = vmatpush1.bf16.msra.mxu1 %v1788_v59  ;;  %v735_v22 = vld [vmem:[#allocation2 + $0x598] sm:$0xff]  ;;  %v1800_v35 = vpack.c.bf16 %v730_v12, %v726_v51 }
 0x174   : > { %1791 = vmatprep.subr.bf16.mxu1 %v1790_v15  ;;  %v1802_v39 = vpack.c.bf16 %v739_v33, %v735_v22  ;;  %v1213_v59 = vld [vmem:[#allocation4 + $0x238] sm:$0xff] }
 0x175   : > { %v1878_v62 = vpack.c.bf16 %v1213_v59, %v1211_v24  ;;  %v1217_v51 = vld [vmem:[#allocation4 + $0x258] sm:$0xff]  ;;  %v1228_v24 = vld [vmem:[#allocation4 + $0x2b0] sm:$0xff]  ;;  %v1231_v59 = vld [vmem:[#allocation4 + $0x2c8] sm:$0xff] }
 0x176   : > { %1031 = vmatmul.mubr.f32.gmra.mrb[18].mxu1 %v553_v19  ;;  %v747_v19 = vld [vmem:[#allocation2 + $0x5f8] sm:$0xff] }
 0x177   : > { %1793 = vmatpush1.bf16.msra.mxu1 %v1792_v16  ;;  %1101 = vmatprep.mubr.f32.mxu1 %v2099_v0  ;;  %v1806_v60 = vpack.c.bf16 %v747_v19, %v743_v40  ;;  %v1880_v40 = vpack.c.bf16 %v1212_v28, %v1210_v27  ;;  %v1214_v19 = vld [vmem:[#allocation4 + $0x240] sm:$0xff]  ;;  %v1236_v28 = vld [vmem:[#allocation4 + $0x2f0] sm:$0xff] }
 0x178   : > { %1795 = vmatprep.subr.bf16.mxu1 %v1794_v30  ;;  %v1884_v5 = vpack.c.bf16 %v1216_v42, %v1214_v19  ;;  %v1234_v27 = vld [vmem:[#allocation4 + $0x2e0] sm:$0xff]  ;;  %v1249_v19 = vld [vmem:[#allocation4 + $0x358] sm:$0xff] }
 0x17b   : > { %1797 = vmatpush1.bf16.msra.mxu1 %v1796_v32 }
 0x17c   : > { %1799 = vmatprep.subr.bf16.mxu1 %v1798_v37  ;;  %v1215_v37 = vld [vmem:[#allocation4 + $0x248] sm:$0xff] }
 0x17d   : > { %v1882_v3 = vpack.c.bf16 %v1217_v51, %v1215_v37  ;;  %v1241_v37 = vld [vmem:[#allocation4 + $0x318] sm:$0xff]  ;;  %v1904_v51 = vpack.c.bf16 %v1236_v28, %v1234_v27 }
 0x17f   : > { %1801 = vmatpush1.bf16.msra.mxu1 %v1800_v35 }
 0x180   : > { %1803 = vmatprep.subr.bf16.mxu1 %v1802_v39 }
 0x183   : > { %1805 = vmatpush1.bf16.msra.mxu1 %v1804_v47 }
 0x184   : > { %1807 = vmatprep.subr.bf16.mxu1 %v1806_v60 }
 0x187   : > { %1809 = vmatpush1.bf16.msra.mxu1 %v1808_v8  ;;  %v1886_v8 = vpack.c.bf16 %v1221_v46, %v1219_v45  ;;  %v1246_v45 = vld [vmem:[#allocation4 + $0x340] sm:$0xff]  ;;  %v1248_v46 = vld [vmem:[#allocation4 + $0x350] sm:$0xff] }
 0x18a   : > { %1102 = vmatmul.mubr.f32.vlgmr.msra.gmra.mrb[12].mxu1 %v546_v17  ;;  %v753_v17 = vrot.slane %v2429_v7, %v2304_v50 }
 0x18b   : > { %1107 = vmatprep.mubr.f32.mxu1 %v2099_v0 }
 0x18e   : > { %1108 = vmatmul.mubr.f32.gmra.mrb[14].mxu1 %v549_v29 }
 0x18f   : > { %1113 = vmatprep.mubr.f32.mxu1 %v2099_v0 }
 0x192   : > { %1114 = vmatmul.mubr.f32.gmra.mrb[16].mxu1 %v552_v58 }
 0x193   : > { %1119 = vmatprep.mubr.f32.mxu1 %v2099_v0 }
 0x196   : > { %1120 = vmatmul.mubr.f32.gmra.mrb[18].mxu1 %v555_v20  ;;  %v1208_v20 = vld [vmem:[#allocation4 + $0x210] sm:$0xff] }
 0x197   : > { %v1876_v16 = vpack.c.bf16 %v1208_v20, %v1206_v57  ;;  %v1224_v57 = vld [vmem:[#allocation4 + $0x290] sm:$0xff]  ;;  %v1227_v20 = vld [vmem:[#allocation4 + $0x2a8] sm:$0xff] }
 0x1fd   : > { %v836_v29 = vpop.f32.mrb[4].mxu1 }
 0x1fe   : > { %v925_v13 = vpop.f32.mrb[8].mxu0  ;;  %v837_v31 = vadd.f32 %v836_v29, %v753_v17  ;;  %v838_v58 = vpop.f32.mrb[5].mxu1  ;;  %v1223_v29 = vld [vmem:[#allocation4 + $0x288] sm:$0xff] }
 0x1ff   : > { %v927_v14 = vpop.f32.mrb[9].mxu0  ;;  %v839_v0 = vadd.f32 %v838_v58, %v757_v6 }
 0x200   : > { %v926_v18 = vadd.f32 %v925_v13, %v837_v31  ;;  %v1225_v13 = vld [vmem:[#allocation4 + $0x298] sm:$0xff] }
 0x201   : > { %v928_v54 = vadd.f32 %v927_v14, %v839_v0  ;;  %v842_v55 = vpop.f32.mrb[6].mxu1  ;;  %v1888_v14 = vpack.c.bf16 %v1220_v9, %v1218_v56  ;;  %v1890_v0 = vpack.c.bf16 %v1225_v13, %v1223_v29  ;;  %v1256_v56 = vld [vmem:[#allocation4 + $0x390] sm:$0xff]  ;;  %v1259_v9 = vld [vmem:[#allocation4 + $0x3a8] sm:$0xff] }
 0x202   : > { %v931_v21 = vpop.f32.mrb[10].mxu0  ;;  %v843_v15 = vadd.f32 %v842_v55, %v753_v17  ;;  %v844_v23 = vpop.f32.mrb[7].mxu1  ;;  %v1126_v30 = vmax.f32 %v926_v18, 0.0  ;;  %v1222_v18 = vld [vmem:[#allocation4 + $0x280] sm:$0xff] }
 0x203   : > { %v933_v34 = vpop.f32.mrb[11].mxu0  ;;  %v1127_v25 = vmax.f32 %v928_v54, 0.0  ;;  %v845_v26 = vadd.f32 %v844_v23, %v757_v6  ;;  %v1892_v54 = vpack.c.bf16 %v1224_v57, %v1222_v18  ;;  %v1262_v57 = vld [vmem:[#allocation4 + $0x3c0] sm:$0xff] }
 0x204   : > { %v932_v44 = vadd.f32 %v931_v21, %v843_v15  ;;  %v1226_v21 = vld [vmem:[#allocation4 + $0x2a0] sm:$0xff]  ;;  %v1233_v15 = vld [vmem:[#allocation4 + $0x2d8] sm:$0xff] }
 0x205   : > { %1346 = vmatprep.mubr.f32.mxu0 %v1127_v25  ;;  %v934_v32 = vadd.f32 %v933_v34, %v845_v26  ;;  %v848_v12 = vpop.f32.mrb[8].mxu1  ;;  %v1896_v23 = vpack.c.bf16 %v1228_v24, %v1226_v21  ;;  %v1898_v34 = vpack.c.bf16 %v1233_v15, %v1231_v59  ;;  %v1230_v25 = vld [vmem:[#allocation4 + $0x2c0] sm:$0xff]  ;;  %v1232_v26 = vld [vmem:[#allocation4 + $0x2d0] sm:$0xff] }
 0x206   : > { %v937_v22 = vpop.f32.mrb[12].mxu0  ;;  %1347 = vmatmul.mubr.f32.vlgmr.msra.gmra.mrb[16].mxu0 %v1126_v30  ;;  %v1130_v33 = vmax.f32 %v932_v44, 0.0  ;;  %v849_v35 = vadd.f32 %v848_v12, %v753_v17  ;;  %v850_v36 = vpop.f32.mrb[9].mxu1  ;;  %v1237_v30 = vld [vmem:[#allocation4 + $0x2f8] sm:$0xff]  ;;  %v1900_v44 = vpack.c.bf16 %v1232_v26, %v1230_v25  ;;  %v1266_v24 = vld [vmem:[#allocation4 + $0x3e0] sm:$0xff]  ;;  %v1268_v59 = vld [vmem:[#allocation4 + $0x3f0] sm:$0xff] }
 0x207   : > { %v939_v38 = vpop.f32.mrb[13].mxu0  ;;  %v1131_v39 = vmax.f32 %v934_v32, 0.0  ;;  %1877 = vmatpush1.bf16.msra.mxu0 %v1876_v16  ;;  %v851_v41 = vadd.f32 %v850_v36, %v757_v6  ;;  %v1235_v16 = vld [vmem:[#allocation4 + $0x2e8] sm:$0xff]  ;;  %v1245_v36 = vld [vmem:[#allocation4 + $0x338] sm:$0xff]  ;;  %v1936_v15 = vpack.c.bf16 %v1268_v59, %v1266_v24 }
 0x208   : > { %1879 = vmatprep.subr.bf16.mxu0 %v1878_v62  ;;  %v938_v43 = vadd.f32 %v937_v22, %v849_v35  ;;  %v1902_v62 = vpack.c.bf16 %v1237_v30, %v1235_v16  ;;  %v1239_v32 = vld [vmem:[#allocation4 + $0x308] sm:$0xff]  ;;  %v1238_v22 = vld [vmem:[#allocation4 + $0x300] sm:$0xff] }
 0x209   : > { %1352 = vmatprep.mubr.f32.mxu0 %v1131_v39  ;;  %v940_v47 = vadd.f32 %v939_v38, %v851_v41  ;;  %v854_v48 = vpop.f32.mrb[10].mxu1  ;;  %v1906_v12 = vpack.c.bf16 %v1241_v37, %v1239_v32  ;;  %v1243_v35 = vld [vmem:[#allocation4 + $0x328] sm:$0xff]  ;;  %v1244_v41 = vld [vmem:[#allocation4 + $0x330] sm:$0xff] }
 0x20a   : > { %v943_v60 = vpop.f32.mrb[14].mxu0  ;;  %1353 = vmatmul.mubr.f32.gmra.mrb[18].mxu0 %v1130_v33  ;;  %v1134_v61 = vmax.f32 %v938_v43, 0.0  ;;  %v855_v63 = vadd.f32 %v854_v48, %v753_v17  ;;  %v856_v1 = vpop.f32.mrb[11].mxu1  ;;  %v1240_v33 = vld [vmem:[#allocation4 + $0x310] sm:$0xff]  ;;  %v1910_v39 = vpack.c.bf16 %v1245_v36, %v1243_v35  ;;  %v1253_v48 = vld [vmem:[#allocation4 + $0x378] sm:$0xff] }
 0x20b   : > { %v945_v4 = vpop.f32.mrb[15].mxu0  ;;  %1881 = vmatpush1.bf16.msra.mxu0 %v1880_v40  ;;  %v1135_v2 = vmax.f32 %v940_v47, 0.0  ;;  %v857_v10 = vadd.f32 %v856_v1, %v757_v6  ;;  %v1229_v6 = vld [vmem:[#allocation4 + $0x2b8] sm:$0xff]  ;;  %v1908_v38 = vpack.c.bf16 %v1240_v33, %v1238_v22  ;;  %v1242_v40 = vld [vmem:[#allocation4 + $0x320] sm:$0xff]  ;;  %v1251_v47 = vld [vmem:[#allocation4 + $0x368] sm:$0xff] }
 0x20c   : > { %1883 = vmatprep.subr.bf16.mxu0 %v1882_v3  ;;  %v944_v11 = vadd.f32 %v943_v60, %v855_v63  ;;  %v1894_v55 = vpack.c.bf16 %v1229_v6, %v1227_v20  ;;  %v1247_v3 = vld [vmem:[#allocation4 + $0x348] sm:$0xff]  ;;  %v1912_v42 = vpack.c.bf16 %v1244_v41, %v1242_v40  ;;  %v1916_v60 = vpack.c.bf16 %v1248_v46, %v1246_v45  ;;  %v1250_v63 = vld [vmem:[#allocation4 + $0x360] sm:$0xff]  ;;  %v1252_v1 = vld [vmem:[#allocation4 + $0x370] sm:$0xff] }
 0x20d   : > { %v946_v31 = vadd.f32 %v945_v4, %v857_v10  ;;  %1358 = vmatprep.mubr.f32.mxu0 %v1135_v2  ;;  %v1914_v43 = vpack.c.bf16 %v1249_v19, %v1247_v3  ;;  %v1255_v4 = vld [vmem:[#allocation4 + $0x388] sm:$0xff]  ;;  %v1920_v2 = vpack.c.bf16 %v1252_v1, %v1250_v63  ;;  %v1264_v20 = vld [vmem:[#allocation4 + $0x3d0] sm:$0xff] }
 0x20e   : > { %v1138_v58 = vmax.f32 %v944_v11, 0.0  ;;  %1359 = vmatmul.mubr.f32.gmra.mrb[20].mxu0 %v1134_v61  ;;  %v1918_v61 = vpack.c.bf16 %v1253_v48, %v1251_v47  ;;  %v1261_v11 = vld [vmem:[#allocation4 + $0x3b8] sm:$0xff]  ;;  %v1267_v6 = vld [vmem:[#allocation4 + $0x3e8] sm:$0xff] }
 0x20f   : > { %1885 = vmatpush1.bf16.msra.mxu0 %v1884_v5  ;;  %v1139_v17 = vmax.f32 %v946_v31, 0.0  ;;  %v1257_v5 = vld [vmem:[#allocation4 + $0x398] sm:$0xff]  ;;  %v1926_v13 = vpack.c.bf16 %v1261_v11, %v1259_v9  ;;  %v1258_v31 = vld [vmem:[#allocation4 + $0x3a0] sm:$0xff] }
 0x210   : > { %1887 = vmatprep.subr.bf16.mxu0 %v1886_v8  ;;  %v1922_v10 = vpack.c.bf16 %v1257_v5, %v1255_v4  ;;  %v1254_v8 = vld [vmem:[#allocation4 + $0x380] sm:$0xff] }
 0x211   : > { %1364 = vmatprep.mubr.f32.mxu0 %v1139_v17  ;;  %v1924_v29 = vpack.c.bf16 %v1256_v56, %v1254_v8  ;;  %v1265_v17 = vld [vmem:[#allocation4 + $0x3d8] sm:$0xff] }
 0x212   : > { %1365 = vmatmul.mubr.f32.gmra.mrb[22].mxu0 %v1138_v58  ;;  %v1260_v58 = vld [vmem:[#allocation4 + $0x3b0] sm:$0xff] }
 0x213   : > { %1889 = vmatpush1.bf16.msra.mxu0 %v1888_v14  ;;  %v1263_v14 = vld [vmem:[#allocation4 + $0x3c8] sm:$0xff] }
 0x214   : > { %1891 = vmatprep.subr.bf16.mxu0 %v1890_v0  ;;  %v1928_v0 = vpack.c.bf16 %v1260_v58, %v1258_v31  ;;  %v1930_v18 = vpack.c.bf16 %v1265_v17, %v1263_v14 }
 0x217   : > { %1893 = vmatpush1.bf16.msra.mxu0 %v1892_v54  ;;  %v1269_v54 = vld [vmem:[#allocation4 + $0x3f8] sm:$0xff] }
 0x218   : > { %1895 = vmatprep.subr.bf16.mxu0 %v1894_v55  ;;  %v1932_v55 = vpack.c.bf16 %v1264_v20, %v1262_v57  ;;  %v1934_v21 = vpack.c.bf16 %v1269_v54, %v1267_v6 }
 0x21b   : > { %1897 = vmatpush1.bf16.msra.mxu0 %v1896_v23  ;;  %v764_v23 = vsub.s32 3, %v2301_v49 }
 0x21c   : > { %1899 = vmatprep.subr.bf16.mxu0 %v1898_v34  ;;  %v761_v34 = vrot.slane %v2429_v7, %v342_v53 }
 0x21d   : > { %v765_v25 = vrot.slane %v2429_v7, %v764_v23 }
 0x21f   : > { %1901 = vmatpush1.bf16.msra.mxu0 %v1900_v44 }
 0x220   : > { %1903 = vmatprep.subr.bf16.mxu0 %v1902_v62 }
 0x223   : > { %1905 = vmatpush1.bf16.msra.mxu0 %v1904_v51 }
 0x224   : > { %1907 = vmatprep.subr.bf16.mxu0 %v1906_v12 }
 0x227   : > { %1909 = vmatpush1.bf16.msra.mxu0 %v1908_v38 }
 0x228   : > { %1911 = vmatprep.subr.bf16.mxu0 %v1910_v39 }
 0x22b   : > { %1913 = vmatpush1.bf16.msra.mxu0 %v1912_v42  ;;  %v1270_v42 = vld [vmem:[%s2458_s6] sm:$0x3] }
 0x22c   : > { %1915 = vmatprep.subr.bf16.mxu0 %v1914_v43  ;;  %v1275_v43 = vrot.slane %v1270_v42, %v2304_v50  ;;  %v1279_v45 = vrot.slane %v1270_v42, %v2310_v52 }
 0x22f   : > { %1917 = vmatpush1.bf16.msra.mxu0 %v1916_v60 }
 0x230   : > { %1919 = vmatprep.subr.bf16.mxu0 %v1918_v61 }
 0x233   : > { %1921 = vmatpush1.bf16.msra.mxu0 %v1920_v2 }
 0x234   : > { %1923 = vmatprep.subr.bf16.mxu0 %v1922_v10 }
 0x237   : > { %1925 = vmatpush1.bf16.msra.mxu0 %v1924_v29 }
 0x238   : > { %1927 = vmatprep.subr.bf16.mxu0 %v1926_v13 }
 0x23b   : > { %1929 = vmatpush1.bf16.msra.mxu0 %v1928_v0 }
 0x23c   : > { %1931 = vmatprep.subr.bf16.mxu0 %v1930_v18 }
 0x23f   : > { %1933 = vmatpush1.bf16.msra.mxu0 %v1932_v55 }
 0x240   : > { %1935 = vmatprep.subr.bf16.mxu0 %v1934_v21 }
 0x243   : > { %1937 = vmatpush1.bf16.msra.mxu0 %v1936_v15 }
 0x25d   : > { %v1103_v26 = vpop.f32.mrb[12].mxu1 }
 0x25e   : > { %v1954_v16 = vadd.f32 %v1103_v26, %v761_v34  ;;  %v1105_v30 = vpop.f32.mrb[13].mxu1 }
 0x25f   : > { %v1955_v44 = vadd.f32 %v1105_v30, %v765_v25 }
 0x260   : > { %v1128_v28 = vmax.f32 %v1954_v16, 0.0 }
 0x261   : > { %v1129_v62 = vmax.f32 %v1955_v44, 0.0  ;;  %v1109_v27 = vpop.f32.mrb[14].mxu1 }
 0x262   : > { %v1956_v32 = vadd.f32 %v1109_v27, %v761_v34  ;;  %v1111_v37 = vpop.f32.mrb[15].mxu1 }
 0x263   : > { %v1957_v51 = vadd.f32 %v1111_v37, %v765_v25  ;;  %1435 = vmatprep.mubr.f32.mxu0 %v1129_v62 }
 0x264   : > { %1436 = vmatmul.mubr.f32.vlgmr.msra.gmra.mrb[16].mxu0 %v1128_v28  ;;  %v1132_v33 = vmax.f32 %v1956_v32, 0.0 }
 0x265   : > { %v1133_v12 = vmax.f32 %v1957_v51, 0.0  ;;  %v1115_v22 = vpop.f32.mrb[16].mxu1 }
 0x266   : > { %v1958_v49 = vadd.f32 %v1115_v22, %v761_v34  ;;  %v1117_v35 = vpop.f32.mrb[17].mxu1 }
 0x267   : > { %v1959_v53 = vadd.f32 %v1117_v35, %v765_v25  ;;  %1441 = vmatprep.mubr.f32.mxu0 %v1133_v12 }
 0x268   : > { %1442 = vmatmul.mubr.f32.gmra.mrb[18].mxu0 %v1132_v33  ;;  %v1136_v38 = vmax.f32 %v1958_v49, 0.0 }
 0x269   : > { %v1137_v7 = vmax.f32 %v1959_v53, 0.0  ;;  %v1121_v36 = vpop.f32.mrb[18].mxu1 }
 0x26a   : > { %v1960_v39 = vadd.f32 %v1121_v36, %v761_v34  ;;  %v1123_v40 = vpop.f32.mrb[19].mxu1 }
 0x26b   : > { %v1961_v41 = vadd.f32 %v1123_v40, %v765_v25  ;;  %1447 = vmatprep.mubr.f32.mxu0 %v1137_v7 }
 0x26c   : > { %1448 = vmatmul.mubr.f32.gmra.mrb[20].mxu0 %v1136_v38  ;;  %v1140_v19 = vmax.f32 %v1960_v39, 0.0 }
 0x26d   : > { %v1141_v3 = vmax.f32 %v1961_v41, 0.0 }
 0x26f   : > { %1453 = vmatprep.mubr.f32.mxu0 %v1141_v3 }
 0x270   : > { %1454 = vmatmul.mubr.f32.gmra.mrb[22].mxu0 %v1140_v19 }
 0x337   : > { %v1437_v46 = vpop.f32.mrb[16].mxu0 }
 0x338   : > { %v1962_v47 = vadd.f32 %v1437_v46, %v1275_v43  ;;  %v1439_v48 = vpop.f32.mrb[17].mxu0 }
 0x339   : > { %v1963_v60 = vadd.f32 %v1439_v48, %v1279_v45 }
 0x33a   : > { %1460 = vst [vmem:[%s312_s26] sm:$0xff] %v1962_v47 }
 0x33b   : > { %1461 = vst [vmem:[%s312_s26 + $0x8] sm:$0xff] %v1963_v60  ;;  %v1443_v61 = vpop.f32.mrb[18].mxu0 }
 0x33c   : > { %v1964_v63 = vadd.f32 %v1443_v61, %v1275_v43  ;;  %v1445_v1 = vpop.f32.mrb[19].mxu0 }
 0x33d   : > { %v1965_v4 = vadd.f32 %v1445_v1, %v1279_v45 }
 0x33e   : > { %1462 = vst [vmem:[%s312_s26 + $0x10] sm:$0xff] %v1964_v63 }
 0x33f   : > { %1463 = vst [vmem:[%s312_s26 + $0x18] sm:$0xff] %v1965_v4  ;;  %v1449_v5 = vpop.f32.mrb[20].mxu0 }
 0x340   : > { %v1966_v50 = vadd.f32 %v1449_v5, %v1275_v43  ;;  %v1451_v2 = vpop.f32.mrb[21].mxu0 }
 0x341   : > { %v1967_v52 = vadd.f32 %v1451_v2, %v1279_v45 }
 0x342   : > { %1464 = vst [vmem:[%s312_s26 + $0x20] sm:$0xff] %v1966_v50 }
 0x343   : > { %1465 = vst [vmem:[%s312_s26 + $0x28] sm:$0xff] %v1967_v52  ;;  %v1455_v10 = vpop.f32.mrb[22].mxu0 }
 0x344   : > { %v1968_v8 = vadd.f32 %v1455_v10, %v1275_v43  ;;  %v1457_v56 = vpop.f32.mrb[23].mxu0 }
 0x345   : > { %v1969_v9 = vadd.f32 %v1457_v56, %v1279_v45 }
 0x346   : > { %1466 = vst [vmem:[%s312_s26 + $0x30] sm:$0xff] %v1968_v8 }
 0x347   : > { %1467 = vst [vmem:[%s312_s26 + $0x38] sm:$0xff] %v1969_v9 }
 0x348 PF: > { %s19_s24 = sadd.s32 1, %s2091_s24  }
 0x349   : > { %p16_p2 = scmp.ge.s32.totalorder %s19_s24, 4  }
 0x34b   :  { %18 = sbr.rel (!%p16_p2) target bundleno = 2 (0x2), region = 87 }
 0x352   :  { %1492 = vsyncpa [#allocation3], 1 }
 0x353   :  { %1494 = vsyncpa [#allocation3 + $0x1], 1 }
 0x354   :  { %1495 = vsyncpa [#allocation5], 1 }

// kernel: input_process.1
= control target key start
LH: loop header
LB: loop body
LE: loop exit
PB: predicated region body
PF: predicated region fallthrough
CT: control target
= control target key end

     0   :  { %12 = vsyncpa [#allocation3], 0  ;;  %s2452_s0 = inlined_call_operand.vmem [shape: f32[64,30], index: 0, kind: input, shape index: {}]   ;;  %s2453_s1 = inlined_call_operand.vmem [shape: f32[30,384], index: 1, kind: input, shape index: {}]   ;;  %s2454_s2 = inlined_call_operand.vmem [shape: f32[1,384], index: 2, kind: input, shape index: {}]   ;;  %s2455_s3 = inlined_call_operand.hbm [shape: f32[384,512], index: 3, kind: input, shape index: {}]   ;;  %s2456_s4 = inlined_call_operand.vmem [shape: f32[1,512], index: 4, kind: input, shape index: {}]   ;;  %s2457_s5 = inlined_call_operand.hbm [shape: f32[512,256], index: 5, kind: input, shape index: {}]   ;;  %s2458_s6 = inlined_call_operand.vmem [shape: f32[1,256], index: 6, kind: input, shape index: {}]   ;;  %s2459_s7 = inlined_call_operand.vmem [shape: f32[64,256], index: 7, kind: output, shape index: {}]  }
   0x1   :  { %13 = vsyncpa [#allocation5], 0  ;;  %s2141_s24 = smov 0  }
   0x2 LB: > { %s2093_s25 = smov [#allocation2]   ;;  %s1548_s27 = sadd.s32 4294967295, %s2091_s24   ;;  %s2091_s24 = sphi %s2141_s24, %s19_s24  }
   0x3   : > { %s220_s26 = sshll.u32 %s2093_s25, 4  ;;  %p1550_p0 = scmp.ge.s32.totalorder %s2091_s24, 1  ;;  %s221_s26 = int_to_ptr.vmem [resolvable:$true] %s220_s26 }
   0x4   : > { %p202_p1 = scmp.lt.s32.totalorder %s2091_s24, 3  ;;  %p2155_p3 = scmp.eq.s32.totalorder %s1548_s27, 0 }
   0x5   : > { %s2094_s30 = smov [#allocation4]   ;;  %s2021_s12 = scalar_lea.hbm %s2455_s3, 24576 }
   0x6   : > { %p2149_p2 = pnand %p1550_p0, %p202_p1  ;;  %s236_s8 = sshll.u32 %s2094_s30, 4  ;;  %s2167_s8 = int_to_ptr.vmem [resolvable:$true] %s236_s8 }
   0x7   : > { %s2464_s29 = scalar_select %p2155_p3, 1, 0 }
   0x8   : > { %s2463_s28 = scalar_select %p2149_p2, 1, 0 }
   0x9   : > { %p1994_p4 = pneg %p2149_p2  ;;  %p2022_p6 = scmp.ne.s32.totalorder %s2455_s3, %s2021_s12 }
   0xa   : > { %p2028_p10 = scmp.lt.u32.totalorder %s2021_s12, %s2455_s3 }
   0xb   : > { %p2163_p5 = pnand %p2155_p3, %p1994_p4 }
   0xd   : > { %p2023_p7 = pneg %p2163_p5 }
   0xf   : > { %p2024_p8 = pnand %p2023_p7, %p2022_p6 }
  0x11   : > { %p2025_p9 = pneg %p2024_p8 }
  0x13   : > { %p2030_p11 = pnand %p2028_p10, %p2025_p9 }
  0x15   : > { %2033 = shalt.err (!%p2030_p11)
}
  0x16   : > { %s2034_s17 = scalar_lea.vmem %s221_s26, 24576  ;;  %p2042_p1 = scmp.lt.s32.totalorder %s221_s26, %s221_s26 }
  0x17   : > { %p2035_p12 = scmp.ne.s32.totalorder %s221_s26, %s2034_s17  ;;  %p2043_p4 = scmp.lt.s32.totalorder %s2034_s17, %s2034_s17 }
  0x19   : > { %p2037_p13 = pnand %p2035_p12, %p2023_p7  ;;  %p2044_p3 = por %p2043_p4, %p2042_p1 }
  0x1b   : > { %p2038_p0 = pneg %p2037_p13 }
  0x1d   : > { %p2045_p2 = pnand %p2044_p3, %p2038_p0 }
  0x1f   : > { %2048 = shalt.err (!%p2045_p2)
}
  0x20   : > { %s2095_s18 = smov 512   ;;  %s2096_s19 = smov 32  }
  0x21   : > { %1997 = dma.hbm_to_vmem [thread:$0]  (!%p2163_p5), %s2455_s3, 24576, %s221_s26, [#allocation3], %s2095_s18, %s2095_s18, %s2096_s19  }
  0x22   : > { %s2049_s25 = scalar_lea.hbm %s2457_s5, 16384 }
  0x23   : > { %p2050_p6 = scmp.ne.s32.totalorder %s2457_s5, %s2049_s25  ;;  %p2056_p8 = scmp.lt.u32.totalorder %s2049_s25, %s2457_s5 }
  0x25   : > { %p2052_p2 = pnand %p2050_p6, %p2023_p7 }
  0x27   : > { %p2053_p3 = pneg %p2052_p2 }
  0x29   : > { %p2058_p9 = pnand %p2056_p8, %p2053_p3 }
  0x2b   : > { %2061 = shalt.err (!%p2058_p9)
}
  0x2c   : > { %s2062_s26 = scalar_lea.vmem %s2167_s8, 16384  ;;  %p2070_p13 = scmp.lt.s32.totalorder %s2167_s8, %s2167_s8 }
  0x2d   : > { %p2063_p10 = scmp.ne.s32.totalorder %s2167_s8, %s2062_s26  ;;  %p2071_p0 = scmp.lt.s32.totalorder %s2062_s26, %s2062_s26 }
  0x2f   : > { %p2065_p11 = pnand %p2063_p10, %p2023_p7  ;;  %p2072_p1 = por %p2071_p0, %p2070_p13 }
  0x31   : > { %p2066_p12 = pneg %p2065_p11 }
  0x33   : > { %p2073_p4 = pnand %p2072_p1, %p2066_p12 }
  0x35   : > { %2076 = shalt.err (!%p2073_p4)
}
  0x36   : > { %s2097_s13 = smov 256   ;;  %s2098_s14 = smov 16  }
  0x37   : > { %2000 = dma.hbm_to_vmem [thread:$0]  (!%p2163_p5), %s2457_s5, 16384, %s2167_s8, [#allocation5], %s2097_s13, %s2097_s13, %s2098_s14  }
  0x38   : > { %p2466_p6 = scmp.ne.s32.totalorder %s2463_s28, 0 }
  0x39   : > { %p2467_p7 = scmp.ne.s32.totalorder (!%p2466_p6), %s2464_s29, 0 }
  0x3a   : > { %264 = sbr.rel (%p2466_p6) target bundleno = 840 (0x348), region = 48 }
  0x41   : > { %2082 = dma.done.wait (%p2467_p7), [#allocation3], 24576  }
  0x42   : > { %2084 = vsyncadd (%p2467_p7), [#allocation3], 4294942720 }
  0x43   : > { %2086 = dma.done.wait (%p2467_p7), [#allocation5], 16384  }
  0x44   : > { %2088 = vsyncadd (%p2467_p7), [#allocation5], 4294950912  ;;  %s1557_s9 = sshll.u32 %s1548_s27, 2  ;;  %v2099_v0 = vmov 0.0   ;;  %vm360_vm0 = vcmask 1045504   ;;  %vm2100_vm1 = vmmov 1  }
  0x45   : > { %434 = vmatprep.mubr.f32.mxu0 %v2099_v0  ;;  %p302_p5 = scmp.lt.s32.totalorder %s1557_s9, 7  ;;  %vm2231_vm2 = vmpackc.low %vm360_vm0, %vm2100_vm1  ;;  %v319_v2 = vld [vmem:[%s2453_s1 + $0x8] sm:$0xff]  ;;  %v322_v3 = vld [vmem:[%s2453_s1 + $0x20] sm:$0xff]  ;;  %vm347_vm3 = vcmask 244736  }
  0x46   : > { %v318_v4 = vld [vmem:[%s2453_s1] sm:$0xff]  ;;  %v1598_v5 = vpack.c.bf16 %v322_v3, %v319_v2  ;;  %v321_v6 = vld [vmem:[%s2453_s1 + $0x18] sm:$0xff]  ;;  %v320_v7 = vld [vmem:[%s2453_s1 + $0x10] sm:$0xff] }
  0x47   : > { %s2471_s9 = smov (!%p302_p5, %s1557_s9), 7  ;;  %v323_v8 = vld [vmem:[%s2453_s1 + $0x28] sm:$0xff]  ;;  %v1600_v9 = vpack.c.bf16 %v321_v6, %v318_v4  ;;  %v325_v11 = vld [vmem:[%s2453_s1 + $0x38] sm:$0xff]  ;;  %v328_v12 = vld [vmem:[%s2453_s1 + $0x50] sm:$0x3f] }
  0x48   : > { %s1558_s28 = sshll.u32 %s2471_s9, 3  ;;  %v1608_v10 = vpack.c.bf16 %v323_v8, %v320_v7  ;;  %v324_v13 = vld [vmem:[%s2453_s1 + $0x30] sm:$0xff]  ;;  %1599 = vmatprep.subr.bf16.mxu0 %v1598_v5  ;;  %v1602_v14 = vpack.c.bf16 %v328_v12, %v325_v11  ;;  %v327_v15 = vld [vmem:[%s2453_s1 + $0x48] sm:$0x3f]  ;;  %v326_v16 = vld [vmem:[%s2453_s1 + $0x40] sm:$0xff]  ;;  %s1575_s10 = sshll.u32 %s2471_s9, 4 }
  0x49   : > { %s2266_s8 = scalar_lea.vmem %s2452_s0, %s1558_s28  ;;  %v329_v17 = vld [vmem:[%s2453_s1 + $0x58] sm:$0x3f]  ;;  %1601 = vmatpush1.bf16.msra.mxu0 %v1600_v9  ;;  %v1605_v18 = vpack.c.bf16 %v327_v15, %v324_v13  ;;  %v557_v21 = vld [vmem:[#allocation2 + $0x8] sm:$0xff]  ;;  %v556_v24 = vld [vmem:[#allocation2] sm:$0xff]  ;;  %s312_s26 = scalar_lea.vmem %s2459_s7, %s1575_s10 }
  0x4a   : > { %1609 = vmatprep.subr.bf16.mxu1 %v1608_v10  ;;  %v1612_v19 = vpack.c.bf16 %v329_v17, %v326_v16  ;;  %1604 = vmatprep.subr.msk.bf16.mxu0 %vm2231_vm2, %v1602_v14  ;;  %v314_v20 = vld [vmem:[%s2266_s8] sm:$0xff]  ;;  %v561_v22 = vld [vmem:[#allocation2 + $0x28] sm:$0xff]  ;;  %v316_v35 = vld [vmem:[%s2266_s8 + $0x10] sm:$0xff] }
  0x4b   : > { %1611 = vmatpush3.bf16.msra.mxu1 %v1608_v10  ;;  %1592 = vmatprep.mubr.msk.f32.mxu1 %vm347_vm3, %v314_v20  ;;  %v1618_v23 = vpack.c.bf16 %v561_v22, %v557_v21  ;;  %v560_v25 = vld [vmem:[#allocation2 + $0x20] sm:$0xff]  ;;  %v565_v26 = vld [vmem:[#allocation2 + $0x48] sm:$0xff]  ;;  %v317_v40 = vld [vmem:[%s2266_s8 + $0x18] sm:$0xff] }
  0x4c   : > { %1614 = vmatprep.subr.msk.bf16.mxu1 %vm2231_vm2, %v1612_v19  ;;  %v569_v27 = vld [vmem:[#allocation2 + $0x68] sm:$0xff]  ;;  %v1620_v29 = vpack.c.bf16 %v560_v25, %v556_v24  ;;  %v564_v31 = vld [vmem:[#allocation2 + $0x40] sm:$0xff] }
  0x4d   : > { %1607 = vmatpush1.bf16.msk.msra.mxu0 %vm2231_vm2, %v1605_v18  ;;  %v315_v28 = vld [vmem:[%s2266_s8 + $0x8] sm:$0xff]  ;;  %v1622_v30 = vpack.c.bf16 %v569_v27, %v565_v26  ;;  %v568_v32 = vld [vmem:[#allocation2 + $0x60] sm:$0xff] }
  0x4e   : > { %v573_v33 = vld [vmem:[#allocation2 + $0x88] sm:$0xff]  ;;  %v1624_v36 = vpack.c.bf16 %v568_v32, %v564_v31  ;;  %v572_v38 = vld [vmem:[#allocation2 + $0x80] sm:$0xff] }
  0x4f   : > { %1617 = vmatpush3.bf16.msk.msra.mxu1 %vm2231_vm2, %v1612_v19  ;;  %v577_v34 = vld [vmem:[#allocation2 + $0xa8] sm:$0xff]  ;;  %v576_v39 = vld [vmem:[#allocation2 + $0xa0] sm:$0xff] }
  0x50   : > { %1619 = vmatprep.subr.bf16.mxu1 %v1618_v23  ;;  %1564 = vmatmul.mubr.msk.f32.vlgmr.msra.gmra.mrb[0].mxu0 %vm347_vm3, %v314_v20  ;;  %v1626_v37 = vpack.c.bf16 %v577_v34, %v573_v33  ;;  %v581_v41 = vld [vmem:[#allocation2 + $0xc8] sm:$0xff]  ;;  %v1628_v43 = vpack.c.bf16 %v576_v39, %v572_v38  ;;  %v580_v47 = vld [vmem:[#allocation2 + $0xc0] sm:$0xff] }
  0x51   : > { %440 = vmatprep.mubr.f32.mxu0 %v2099_v0  ;;  %v585_v42 = vld [vmem:[#allocation2 + $0xe8] sm:$0xff]  ;;  %v584_v48 = vld [vmem:[#allocation2 + $0xe0] sm:$0xff] }
  0x52   : > { %1593 = vmatmul.mubr.msk.f32.vlgmr.msra.gmra.mrb[0].mxu1 %vm347_vm3, %v315_v28  ;;  %v685_v44 = vld [vmem:[#allocation2 + $0x408] sm:$0xff]  ;;  %v1630_v46 = vpack.c.bf16 %v585_v42, %v581_v41  ;;  %v684_v50 = vld [vmem:[#allocation2 + $0x400] sm:$0xff]  ;;  %v1632_v57 = vpack.c.bf16 %v584_v48, %v580_v47 }
  0x53   : > { %1595 = vmatprep.mubr.msk.f32.mxu1 %vm347_vm3, %v316_v35  ;;  %1621 = vmatpush1.bf16.msra.mxu1 %v1620_v29  ;;  %v689_v45 = vld [vmem:[#allocation2 + $0x428] sm:$0xff]  ;;  %v688_v53 = vld [vmem:[#allocation2 + $0x420] sm:$0xff] }
  0x54   : > { %1623 = vmatprep.subr.bf16.mxu1 %v1622_v30  ;;  %1565 = vmatmul.mubr.msk.f32.gmra.mrb[2].mxu0 %vm347_vm3, %v315_v28  ;;  %v1682_v49 = vpack.c.bf16 %v689_v45, %v685_v44  ;;  %v589_v51 = vld [vmem:[#allocation2 + $0x108] sm:$0xff]  ;;  %v1684_v54 = vpack.c.bf16 %v688_v53, %v684_v50  ;;  %v692_v59 = vld [vmem:[#allocation2 + $0x440] sm:$0xff] }
  0x55   : > { %446 = vmatprep.mubr.f32.mxu0 %v2099_v0  ;;  %v593_v52 = vld [vmem:[#allocation2 + $0x128] sm:$0xff]  ;;  %v696_v60 = vld [vmem:[#allocation2 + $0x460] sm:$0xff] }
  0x56   : > { %1596 = vmatmul.mubr.msk.f32.gmra.mrb[2].mxu1 %vm347_vm3, %v317_v40  ;;  %1683 = vmatprep.subr.bf16.mxu0 %v1682_v49  ;;  %v693_v55 = vld [vmem:[#allocation2 + $0x448] sm:$0xff]  ;;  %v1634_v61 = vpack.c.bf16 %v593_v52, %v589_v51  ;;  %v588_v62 = vld [vmem:[#allocation2 + $0x100] sm:$0xff]  ;;  %v1688_v1 = vpack.c.bf16 %v696_v60, %v692_v59 }
  0x57   : > { %1625 = vmatpush1.bf16.msra.mxu1 %v1624_v36  ;;  %v697_v56 = vld [vmem:[#allocation2 + $0x468] sm:$0xff]  ;;  %v592_v63 = vld [vmem:[#allocation2 + $0x120] sm:$0xff]  ;;  %1685 = vmatpush1.bf16.msra.mxu0 %v1684_v54 }
  0x58   : > { %1627 = vmatprep.subr.bf16.mxu1 %v1626_v37  ;;  %1566 = vmatmul.mubr.msk.f32.gmra.mrb[4].mxu0 %vm347_vm3, %v316_v35  ;;  %v1686_v58 = vpack.c.bf16 %v697_v56, %v693_v55  ;;  %v701_v2 = vld [vmem:[#allocation2 + $0x488] sm:$0xff]  ;;  %v700_v7 = vld [vmem:[#allocation2 + $0x480] sm:$0xff]  ;;  %v1636_v9 = vpack.c.bf16 %v592_v63, %v588_v62 }
  0x59   : > { %452 = vmatprep.mubr.f32.mxu0 %v2099_v0  ;;  %v597_v3 = vld [vmem:[#allocation2 + $0x148] sm:$0xff]  ;;  %v704_v8 = vld [vmem:[#allocation2 + $0x4a0] sm:$0xff] }
  0x5a   : > { %v601_v4 = vld [vmem:[#allocation2 + $0x168] sm:$0xff]  ;;  %1687 = vmatprep.subr.bf16.mxu0 %v1686_v58  ;;  %v596_v13 = vld [vmem:[#allocation2 + $0x140] sm:$0xff]  ;;  %v1692_v16 = vpack.c.bf16 %v704_v8, %v700_v7 }
  0x5b   : > { %1629 = vmatpush1.bf16.msra.mxu1 %v1628_v43  ;;  %v705_v5 = vld [vmem:[#allocation2 + $0x4a8] sm:$0xff]  ;;  %v1638_v12 = vpack.c.bf16 %v601_v4, %v597_v3  ;;  %v600_v14 = vld [vmem:[#allocation2 + $0x160] sm:$0xff]  ;;  %1689 = vmatpush1.bf16.msra.mxu0 %v1688_v1 }
  0x5c   : > { %1631 = vmatprep.subr.bf16.mxu1 %v1630_v46  ;;  %1567 = vmatmul.mubr.msk.f32.gmra.mrb[6].mxu0 %vm347_vm3, %v317_v40  ;;  %v1690_v6 = vpack.c.bf16 %v705_v5, %v701_v2  ;;  %v709_v10 = vld [vmem:[#allocation2 + $0x4c8] sm:$0xff]  ;;  %v708_v19 = vld [vmem:[#allocation2 + $0x4c0] sm:$0xff]  ;;  %v1640_v23 = vpack.c.bf16 %v600_v14, %v596_v13 }
  0x5d   : > { %923 = vmatprep.mubr.f32.mxu0 %v2099_v0  ;;  %v713_v11 = vld [vmem:[#allocation2 + $0x4e8] sm:$0xff]  ;;  %v712_v20 = vld [vmem:[#allocation2 + $0x4e0] sm:$0xff] }
  0x5e   : > { %v605_v15 = vld [vmem:[#allocation2 + $0x188] sm:$0xff]  ;;  %1691 = vmatprep.subr.bf16.mxu0 %v1690_v6  ;;  %v1694_v18 = vpack.c.bf16 %v713_v11, %v709_v10  ;;  %v604_v25 = vld [vmem:[#allocation2 + $0x180] sm:$0xff]  ;;  %v1696_v28 = vpack.c.bf16 %v712_v20, %v708_v19 }
  0x5f   : > { %1633 = vmatpush1.bf16.msra.mxu1 %v1632_v57  ;;  %v609_v17 = vld [vmem:[#allocation2 + $0x1a8] sm:$0xff]  ;;  %v608_v26 = vld [vmem:[#allocation2 + $0x1a0] sm:$0xff]  ;;  %1693 = vmatpush1.bf16.msra.mxu0 %v1692_v16 }
  0x60   : > { %1635 = vmatprep.subr.bf16.mxu1 %v1634_v61  ;;  %v717_v21 = vld [vmem:[#allocation2 + $0x508] sm:$0xff]  ;;  %v1642_v24 = vpack.c.bf16 %v609_v17, %v605_v15  ;;  %1695 = vmatprep.subr.bf16.mxu0 %v1694_v18  ;;  %v716_v31 = vld [vmem:[#allocation2 + $0x500] sm:$0xff]  ;;  %v1644_v35 = vpack.c.bf16 %v608_v26, %v604_v25 }
  0x61   : > { %v721_v22 = vld [vmem:[#allocation2 + $0x528] sm:$0xff]  ;;  %v720_v32 = vld [vmem:[#allocation2 + $0x520] sm:$0xff] }
  0x62   : > { %v613_v27 = vld [vmem:[#allocation2 + $0x1c8] sm:$0xff]  ;;  %v1698_v30 = vpack.c.bf16 %v721_v22, %v717_v21  ;;  %v612_v37 = vld [vmem:[#allocation2 + $0x1c0] sm:$0xff]  ;;  %v1700_v40 = vpack.c.bf16 %v720_v32, %v716_v31 }
  0x63   : > { %1637 = vmatpush1.bf16.msra.mxu1 %v1636_v9  ;;  %v617_v29 = vld [vmem:[#allocation2 + $0x1e8] sm:$0xff]  ;;  %v616_v38 = vld [vmem:[#allocation2 + $0x1e0] sm:$0xff]  ;;  %1697 = vmatpush1.bf16.msra.mxu0 %v1696_v28 }
  0x64   : > { %1639 = vmatprep.subr.bf16.mxu1 %v1638_v12  ;;  %v725_v33 = vld [vmem:[#allocation2 + $0x548] sm:$0xff]  ;;  %v1646_v36 = vpack.c.bf16 %v617_v29, %v613_v27  ;;  %1699 = vmatprep.subr.bf16.mxu0 %v1698_v30  ;;  %v724_v43 = vld [vmem:[#allocation2 + $0x540] sm:$0xff]  ;;  %v1648_v45 = vpack.c.bf16 %v616_v38, %v612_v37 }
  0x65   : > { %v729_v34 = vld [vmem:[#allocation2 + $0x568] sm:$0xff]  ;;  %v728_v44 = vld [vmem:[#allocation2 + $0x560] sm:$0xff] }
  0x66   : > { %v621_v39 = vld [vmem:[#allocation2 + $0x208] sm:$0xff]  ;;  %v1702_v42 = vpack.c.bf16 %v729_v34, %v725_v33  ;;  %v620_v47 = vld [vmem:[#allocation2 + $0x200] sm:$0xff]  ;;  %v1704_v49 = vpack.c.bf16 %v728_v44, %v724_v43  ;;  %v563_v43 = vld [vmem:[#allocation2 + $0x38] sm:$0xff] }
  0x67   : > { %1641 = vmatpush1.bf16.msra.mxu1 %v1640_v23  ;;  %v625_v41 = vld [vmem:[#allocation2 + $0x228] sm:$0xff]  ;;  %v624_v48 = vld [vmem:[#allocation2 + $0x220] sm:$0xff]  ;;  %1701 = vmatpush1.bf16.msra.mxu0 %v1700_v40 }
  0x68   : > { %1643 = vmatprep.subr.bf16.mxu1 %v1642_v24  ;;  %v1650_v46 = vpack.c.bf16 %v625_v41, %v621_v39  ;;  %v629_v50 = vld [vmem:[#allocation2 + $0x248] sm:$0xff]  ;;  %1703 = vmatprep.subr.bf16.mxu0 %v1702_v42  ;;  %v1652_v52 = vpack.c.bf16 %v624_v48, %v620_v47  ;;  %v628_v54 = vld [vmem:[#allocation2 + $0x240] sm:$0xff]  ;;  %v559_v41 = vld [vmem:[#allocation2 + $0x18] sm:$0xff] }
  0x69   : > { %v633_v51 = vld [vmem:[#allocation2 + $0x268] sm:$0xff]  ;;  %v632_v55 = vld [vmem:[#allocation2 + $0x260] sm:$0xff]  ;;  %v1714_v44 = vpack.c.bf16 %v563_v43, %v559_v41  ;;  %v1145_v47 = vld [vmem:[#allocation4 + $0x18] sm:$0xff] }
  0x6a   : > { %v1654_v53 = vpack.c.bf16 %v633_v51, %v629_v50  ;;  %v637_v56 = vld [vmem:[#allocation2 + $0x288] sm:$0xff]  ;;  %v1656_v58 = vpack.c.bf16 %v632_v55, %v628_v54  ;;  %v636_v60 = vld [vmem:[#allocation2 + $0x280] sm:$0xff]  ;;  %v578_v41 = vld [vmem:[#allocation2 + $0xb0] sm:$0xff] }
  0x6b   : > { %1645 = vmatpush1.bf16.msra.mxu1 %v1644_v35  ;;  %1705 = vmatpush1.bf16.msra.mxu0 %v1704_v49  ;;  %v641_v57 = vld [vmem:[#allocation2 + $0x2a8] sm:$0xff]  ;;  %v640_v61 = vld [vmem:[#allocation2 + $0x2a0] sm:$0xff] }
  0x6c   : > { %1647 = vmatprep.subr.bf16.mxu1 %v1646_v36  ;;  %v1658_v59 = vpack.c.bf16 %v641_v57, %v637_v56  ;;  %v645_v62 = vld [vmem:[#allocation2 + $0x2c8] sm:$0xff]  ;;  %v1660_v1 = vpack.c.bf16 %v640_v61, %v636_v60  ;;  %v644_v3 = vld [vmem:[#allocation2 + $0x2c0] sm:$0xff] }
  0x6d   : > { %v649_v63 = vld [vmem:[#allocation2 + $0x2e8] sm:$0xff]  ;;  %v648_v4 = vld [vmem:[#allocation2 + $0x2e0] sm:$0xff] }
  0x6e   : > { %v1662_v2 = vpack.c.bf16 %v649_v63, %v645_v62  ;;  %v653_v5 = vld [vmem:[#allocation2 + $0x308] sm:$0xff]  ;;  %v1664_v7 = vpack.c.bf16 %v648_v4, %v644_v3  ;;  %v652_v9 = vld [vmem:[#allocation2 + $0x300] sm:$0xff]  ;;  %v562_v62 = vld [vmem:[#allocation2 + $0x30] sm:$0xff] }
  0x6f   : > { %1649 = vmatpush1.bf16.msra.mxu1 %v1648_v45  ;;  %v657_v6 = vld [vmem:[#allocation2 + $0x328] sm:$0xff]  ;;  %v656_v10 = vld [vmem:[#allocation2 + $0x320] sm:$0xff]  ;;  %v332_v45 = vlaneseq  ;;  %v567_v63 = vld [vmem:[#allocation2 + $0x58] sm:$0xff] }
  0x70   : > { %1651 = vmatprep.subr.bf16.mxu1 %v1650_v46  ;;  %v1666_v8 = vpack.c.bf16 %v657_v6, %v653_v5  ;;  %v661_v11 = vld [vmem:[#allocation2 + $0x348] sm:$0xff]  ;;  %v1668_v13 = vpack.c.bf16 %v656_v10, %v652_v9  ;;  %v660_v15 = vld [vmem:[#allocation2 + $0x340] sm:$0xff]  ;;  %v1144_v5 = vld [vmem:[#allocation4 + $0x10] sm:$0xff] }
  0x71   : > { %v665_v12 = vld [vmem:[#allocation2 + $0x368] sm:$0xff]  ;;  %v664_v16 = vld [vmem:[#allocation2 + $0x360] sm:$0xff]  ;;  %v2301_v49 = vshrl.u32 %v332_v45, 7  ;;  %v1149_v9 = vld [vmem:[#allocation4 + $0x38] sm:$0xff] }
  0x72   : > { %v1670_v14 = vpack.c.bf16 %v665_v12, %v661_v11  ;;  %v669_v17 = vld [vmem:[#allocation2 + $0x388] sm:$0xff]  ;;  %v1672_v19 = vpack.c.bf16 %v664_v16, %v660_v15  ;;  %v668_v21 = vld [vmem:[#allocation2 + $0x380] sm:$0xff]  ;;  %v587_v45 = vld [vmem:[#allocation2 + $0xf8] sm:$0xff] }
  0x73   : > { %1653 = vmatpush1.bf16.msra.mxu1 %v1652_v52  ;;  %v673_v18 = vld [vmem:[#allocation2 + $0x3a8] sm:$0xff]  ;;  %v672_v22 = vld [vmem:[#allocation2 + $0x3a0] sm:$0xff]  ;;  %v2304_v50 = vsub.s32 0, %v2301_v49  ;;  %v2310_v52 = vsub.s32 1, %v2301_v49 }
  0x74   : > { %1655 = vmatprep.subr.bf16.mxu1 %v1654_v53  ;;  %v1674_v20 = vpack.c.bf16 %v673_v18, %v669_v17  ;;  %v1676_v23 = vpack.c.bf16 %v672_v22, %v668_v21  ;;  %v733_v24 = vld [vmem:[#allocation2 + $0x588] sm:$0xff]  ;;  %v732_v29 = vld [vmem:[#allocation2 + $0x580] sm:$0xff]  ;;  %v342_v53 = vsub.s32 2, %v2301_v49 }
  0x75   : > { %v737_v25 = vld [vmem:[#allocation2 + $0x5a8] sm:$0xff]  ;;  %v736_v31 = vld [vmem:[#allocation2 + $0x5a0] sm:$0xff] }
  0x76   : > { %v1706_v26 = vpack.c.bf16 %v737_v25, %v733_v24  ;;  %v677_v27 = vld [vmem:[#allocation2 + $0x3c8] sm:$0xff]  ;;  %v676_v32 = vld [vmem:[#allocation2 + $0x3c0] sm:$0xff]  ;;  %v1708_v34 = vpack.c.bf16 %v736_v31, %v732_v29  ;;  %v579_v24 = vld [vmem:[#allocation2 + $0xb8] sm:$0xff] }
  0x77   : > { %1657 = vmatpush1.bf16.msra.mxu1 %v1656_v58  ;;  %v681_v28 = vld [vmem:[#allocation2 + $0x3e8] sm:$0xff]  ;;  %v680_v33 = vld [vmem:[#allocation2 + $0x3e0] sm:$0xff]  ;;  %v558_v58 = vld [vmem:[#allocation2 + $0x10] sm:$0xff] }
  0x78   : > { %1659 = vmatprep.subr.bf16.mxu1 %v1658_v59  ;;  %v1678_v30 = vpack.c.bf16 %v681_v28, %v677_v27  ;;  %1707 = vmatprep.subr.bf16.mxu0 %v1706_v26  ;;  %v1680_v35 = vpack.c.bf16 %v680_v33, %v676_v32  ;;  %v741_v36 = vld [vmem:[#allocation2 + $0x5c8] sm:$0xff]  ;;  %v740_v39 = vld [vmem:[#allocation2 + $0x5c0] sm:$0xff]  ;;  %v1716_v12 = vpack.c.bf16 %v562_v62, %v558_v58  ;;  %v1148_v28 = vld [vmem:[#allocation4 + $0x30] sm:$0xff] }
  0x79   : > { %v745_v37 = vld [vmem:[#allocation2 + $0x5e8] sm:$0xff]  ;;  %1709 = vmatpush1.bf16.msra.mxu0 %v1708_v34  ;;  %v744_v40 = vld [vmem:[#allocation2 + $0x5e0] sm:$0xff]  ;;  %v1153_v33 = vld [vmem:[#allocation4 + $0x58] sm:$0xff] }
  0x7a   : > { %v1710_v38 = vpack.c.bf16 %v745_v37, %v741_v36  ;;  %v1712_v42 = vpack.c.bf16 %v744_v40, %v740_v39  ;;  %v1143_v46 = vld [vmem:[#allocation4 + $0x8] sm:$0xff]  ;;  %v330_v51 = vld [vmem:[%s2454_s2] sm:$0x7]  ;;  %v574_v40 = vld [vmem:[#allocation2 + $0x90] sm:$0xff] }
  0x7b   : > { %1661 = vmatpush1.bf16.msra.mxu1 %v1660_v1  ;;  %v1810_v48 = vpack.c.bf16 %v1145_v47, %v1143_v46  ;;  %v2314_v54 = vrot.slane %v330_v51, %v2304_v50  ;;  %v2317_v55 = vrot.slane %v330_v51, %v2310_v52  ;;  %v2321_v56 = vrot.slane %v330_v51, %v342_v53  ;;  %v571_v1 = vld [vmem:[#allocation2 + $0x78] sm:$0xff]  ;;  %v1142_v4 = vld [vmem:[#allocation4] sm:$0xff]  ;;  %v1151_v32 = vld [vmem:[#allocation4 + $0x48] sm:$0xff] }
  0x7c   : > { %1663 = vmatprep.subr.bf16.mxu1 %v1662_v2  ;;  %1711 = vmatprep.subr.bf16.mxu0 %v1710_v38  ;;  %v1812_v22 = vpack.c.bf16 %v1144_v5, %v1142_v4  ;;  %v1146_v27 = vld [vmem:[#allocation4 + $0x20] sm:$0xff]  ;;  %v1818_v46 = vpack.c.bf16 %v1153_v33, %v1151_v32  ;;  %v603_v33 = vld [vmem:[#allocation2 + $0x178] sm:$0xff] }
  0x7d   : > { %1713 = vmatpush1.bf16.msra.mxu0 %v1712_v42  ;;  %v583_v42 = vld [vmem:[#allocation2 + $0xd8] sm:$0xff]  ;;  %v1816_v43 = vpack.c.bf16 %v1148_v28, %v1146_v27  ;;  %v1150_v47 = vld [vmem:[#allocation4 + $0x40] sm:$0xff]  ;;  %v594_v27 = vld [vmem:[#allocation2 + $0x130] sm:$0xff] }
  0x7e   : > { %1811 = vmatprep.subr.bf16.mxu0 %v1810_v48  ;;  %v1152_v48 = vld [vmem:[#allocation4 + $0x50] sm:$0xff]  ;;  %v1726_v5 = vpack.c.bf16 %v587_v45, %v583_v42  ;;  %v599_v28 = vld [vmem:[#allocation2 + $0x158] sm:$0xff] }
  0x7f   : > { %1665 = vmatpush1.bf16.msra.mxu1 %v1664_v7  ;;  %v1734_v42 = vpack.c.bf16 %v603_v33, %v599_v28  ;;  %v602_v45 = vld [vmem:[#allocation2 + $0x170] sm:$0xff] }
  0x80   : > { %1667 = vmatprep.subr.bf16.mxu1 %v1666_v8  ;;  %v1147_v8 = vld [vmem:[#allocation4 + $0x28] sm:$0xff] }
  0x81   : > { %v1814_v26 = vpack.c.bf16 %v1149_v9, %v1147_v8  ;;  %v582_v8 = vld [vmem:[#allocation2 + $0xd0] sm:$0xff]  ;;  %v591_v9 = vld [vmem:[#allocation2 + $0x118] sm:$0xff] }
  0x83   : > { %1669 = vmatpush1.bf16.msra.mxu1 %v1668_v13  ;;  %v1718_v13 = vpack.c.bf16 %v571_v1, %v567_v63  ;;  %v1724_v1 = vpack.c.bf16 %v578_v41, %v574_v40  ;;  %v1165_v40 = vld [vmem:[#allocation4 + $0xb8] sm:$0xff] }
  0x84   : > { %1671 = vmatprep.subr.bf16.mxu1 %v1670_v14  ;;  %v566_v14 = vld [vmem:[#allocation2 + $0x50] sm:$0xff] }
  0x87   : > { %1673 = vmatpush1.bf16.msra.mxu1 %v1672_v19  ;;  %v570_v19 = vld [vmem:[#allocation2 + $0x70] sm:$0xff] }
  0x88   : > { %1675 = vmatprep.subr.bf16.mxu1 %v1674_v20  ;;  %v575_v20 = vld [vmem:[#allocation2 + $0x98] sm:$0xff]  ;;  %v1720_v36 = vpack.c.bf16 %v570_v19, %v566_v14 }
  0x89   : > { %v1722_v39 = vpack.c.bf16 %v579_v24, %v575_v20 }
  0x8b   : > { %1677 = vmatpush1.bf16.msra.mxu1 %v1676_v23 }
  0x8c   : > { %1679 = vmatprep.subr.bf16.mxu1 %v1678_v30 }
  0x8f   : > { %1681 = vmatpush1.bf16.msra.mxu1 %v1680_v35 }
  0x90   : > { %1715 = vmatprep.subr.bf16.mxu1 %v1714_v44 }
 0x123   : > { %v436_v57 = vpop.f32.mrb[0].mxu0 }
 0x124   : > { %v2324_v59 = vadd.f32 %v436_v57, %v2314_v54  ;;  %v438_v60 = vpop.f32.mrb[1].mxu0 }
 0x125   : > { %v1594_v61 = vpop.f32.mrb[0].mxu1  ;;  %v2327_v2 = vadd.f32 %v438_v60, %v2317_v55  ;;  %v1155_v60 = vld [vmem:[#allocation4 + $0x68] sm:$0xff] }
 0x126   : > { %v525_v3 = vpop.f32.mrb[1].mxu1  ;;  %v2330_v6 = vadd.f32 %v1594_v61, %v2321_v56  ;;  %v544_v15 = vmax.f32 %v2324_v59, 0.0  ;;  %v1157_v61 = vld [vmem:[#allocation4 + $0x78] sm:$0xff] }
 0x127   : > { %v2333_v7 = vadd.f32 %v525_v3, %v2321_v56  ;;  %v545_v10 = vmax.f32 %v2327_v2, 0.0  ;;  %v442_v11 = vpop.f32.mrb[2].mxu0  ;;  %v1822_v14 = vpack.c.bf16 %v1157_v61, %v1155_v60  ;;  %v1162_v61 = vld [vmem:[#allocation4 + $0xa0] sm:$0xff] }
 0x128   : > { %v2338_v16 = vadd.f32 %v442_v11, %v2314_v54  ;;  %v444_v18 = vpop.f32.mrb[3].mxu0  ;;  %v549_v29 = vmax.f32 %v2330_v6, 0.0  ;;  %v1820_v11 = vpack.c.bf16 %v1152_v48, %v1150_v47  ;;  %v611_v48 = vld [vmem:[#allocation2 + $0x1b8] sm:$0xff] }
 0x129   : > { %v546_v17 = vmax.f32 %v2333_v7, 0.0  ;;  %v1597_v21 = vpop.f32.mrb[2].mxu1  ;;  %v2342_v23 = vadd.f32 %v444_v18, %v2317_v55  ;;  %834 = vmatprep.mubr.f32.mxu1 %v545_v10  ;;  %v1154_v18 = vld [vmem:[#allocation4 + $0x60] sm:$0xff] }
 0x12a   : > { %v535_v25 = vpop.f32.mrb[3].mxu1  ;;  %v547_v30 = vmax.f32 %v2338_v16, 0.0  ;;  %835 = vmatmul.mubr.f32.vlgmr.msra.gmra.mrb[4].mxu1 %v544_v15  ;;  %v2371_v57 = vadd.f32 %v1597_v21, %v2321_v56  ;;  %v1161_v21 = vld [vmem:[#allocation4 + $0x98] sm:$0xff]  ;;  %v2429_v7 = vld [vmem:[%s2456_s4] sm:$0xf] }
 0x12b   : > { %924 = vmatmul.mubr.f32.vlgmr.msra.gmra.mrb[8].mxu0 %v546_v17  ;;  %v2353_v31 = vadd.f32 %v535_v25, %v2321_v56  ;;  %v548_v34 = vmax.f32 %v2342_v23, 0.0  ;;  %1717 = vmatpush1.bf16.msra.mxu1 %v1716_v12  ;;  %v448_v35 = vpop.f32.mrb[4].mxu0  ;;  %v586_v56 = vld [vmem:[#allocation2 + $0xf0] sm:$0xff]  ;;  %v757_v6 = vrot.slane %v2429_v7, %v2310_v52 }
 0x12c   : > { %929 = vmatprep.mubr.f32.mxu0 %v2099_v0  ;;  %v2358_v37 = vadd.f32 %v448_v35, %v2314_v54  ;;  %v450_v38 = vpop.f32.mrb[5].mxu0  ;;  %1719 = vmatprep.subr.bf16.mxu1 %v1718_v13  ;;  %v595_v13 = vld [vmem:[#allocation2 + $0x138] sm:$0xff]  ;;  %v555_v20 = vmax.f32 %v2371_v57, 0.0  ;;  %v1728_v24 = vpack.c.bf16 %v586_v56, %v582_v8  ;;  %v610_v8 = vld [vmem:[#allocation2 + $0x1b0] sm:$0xff]  ;;  %v1206_v57 = vld [vmem:[#allocation4 + $0x200] sm:$0xff] }
 0x12d   : > { %1813 = vmatpush1.bf16.msra.mxu0 %v1812_v22  ;;  %v2361_v44 = vadd.f32 %v450_v38, %v2317_v55  ;;  %840 = vmatprep.mubr.f32.mxu1 %v548_v34  ;;  %v552_v58 = vmax.f32 %v2353_v31, 0.0  ;;  %v1730_v25 = vpack.c.bf16 %v595_v13, %v591_v9  ;;  %v1160_v38 = vld [vmem:[#allocation4 + $0x90] sm:$0xff]  ;;  %v615_v56 = vld [vmem:[#allocation2 + $0x1d8] sm:$0xff] }
 0x12e   : > { %1815 = vmatprep.subr.bf16.mxu0 %v1814_v26  ;;  %v550_v51 = vmax.f32 %v2358_v37, 0.0  ;;  %841 = vmatmul.mubr.f32.gmra.mrb[6].mxu1 %v547_v30  ;;  %v590_v26 = vld [vmem:[#allocation2 + $0x110] sm:$0xff] }
 0x12f   : > { %930 = vmatmul.mubr.f32.gmra.mrb[10].mxu0 %v549_v29  ;;  %v551_v62 = vmax.f32 %v2361_v44, 0.0  ;;  %1721 = vmatpush1.bf16.msra.mxu1 %v1720_v36  ;;  %v454_v63 = vpop.f32.mrb[6].mxu0  ;;  %v1158_v36 = vld [vmem:[#allocation4 + $0x80] sm:$0xff]  ;;  %v1732_v41 = vpack.c.bf16 %v594_v27, %v590_v26  ;;  %v618_v26 = vld [vmem:[#allocation2 + $0x1f0] sm:$0xff]  ;;  %v623_v27 = vld [vmem:[#allocation2 + $0x218] sm:$0xff] }
 0x130   : > { %935 = vmatprep.mubr.f32.mxu0 %v2099_v0  ;;  %v2377_v3 = vadd.f32 %v454_v63, %v2314_v54  ;;  %v456_v4 = vpop.f32.mrb[7].mxu0  ;;  %1723 = vmatprep.subr.bf16.mxu1 %v1722_v39  ;;  %v1156_v54 = vld [vmem:[#allocation4 + $0x70] sm:$0xff]  ;;  %v1163_v39 = vld [vmem:[#allocation4 + $0xa8] sm:$0xff]  ;;  %v1828_v47 = vpack.c.bf16 %v1160_v38, %v1158_v36 }
 0x131   : > { %1817 = vmatpush1.bf16.msra.mxu0 %v1816_v43  ;;  %v2380_v12 = vadd.f32 %v456_v4, %v2317_v55  ;;  %846 = vmatprep.mubr.f32.mxu1 %v551_v62  ;;  %v1159_v55 = vld [vmem:[#allocation4 + $0x88] sm:$0xff]  ;;  %v1824_v32 = vpack.c.bf16 %v1156_v54, %v1154_v18  ;;  %v598_v43 = vld [vmem:[#allocation2 + $0x150] sm:$0xff]  ;;  %v1830_v60 = vpack.c.bf16 %v1165_v40, %v1163_v39  ;;  %v1169_v4 = vld [vmem:[#allocation4 + $0xd8] sm:$0xff] }
 0x132   : > { %1819 = vmatprep.subr.bf16.mxu0 %v1818_v46  ;;  %v553_v19 = vmax.f32 %v2377_v3, 0.0  ;;  %847 = vmatmul.mubr.f32.gmra.mrb[8].mxu1 %v550_v51  ;;  %v1826_v35 = vpack.c.bf16 %v1161_v21, %v1159_v55  ;;  %v607_v46 = vld [vmem:[#allocation2 + $0x198] sm:$0xff]  ;;  %v1164_v63 = vld [vmem:[#allocation4 + $0xb0] sm:$0xff]  ;;  %v1171_v54 = vld [vmem:[#allocation4 + $0xe8] sm:$0xff] }
 0x133   : > { %936 = vmatmul.mubr.f32.gmra.mrb[12].mxu0 %v552_v58  ;;  %v554_v22 = vmax.f32 %v2380_v12, 0.0  ;;  %1725 = vmatpush1.bf16.msra.mxu1 %v1724_v1  ;;  %v1167_v1 = vld [vmem:[#allocation4 + $0xc8] sm:$0xff]  ;;  %v1738_v2 = vpack.c.bf16 %v611_v48, %v607_v46  ;;  %v1832_v9 = vpack.c.bf16 %v1164_v63, %v1162_v61  ;;  %v1168_v18 = vld [vmem:[#allocation4 + $0xd0] sm:$0xff]  ;;  %v1173_v55 = vld [vmem:[#allocation4 + $0xf8] sm:$0xff] }
 0x134   : > { %941 = vmatprep.mubr.f32.mxu0 %v2099_v0  ;;  %1727 = vmatprep.subr.bf16.mxu1 %v1726_v5  ;;  %v1736_v5 = vpack.c.bf16 %v602_v45, %v598_v43  ;;  %v1834_v13 = vpack.c.bf16 %v1169_v4, %v1167_v1  ;;  %v1838_v33 = vpack.c.bf16 %v1173_v55, %v1171_v54  ;;  %v1172_v36 = vld [vmem:[#allocation4 + $0xf0] sm:$0xff]  ;;  %v1175_v38 = vld [vmem:[#allocation4 + $0x108] sm:$0xff]  ;;  %v1177_v39 = vld [vmem:[#allocation4 + $0x118] sm:$0xff] }
 0x135   : > { %1821 = vmatpush1.bf16.msra.mxu0 %v1820_v11  ;;  %852 = vmatprep.mubr.f32.mxu1 %v554_v22  ;;  %v619_v11 = vld [vmem:[#allocation2 + $0x1f8] sm:$0xff]  ;;  %v626_v43 = vld [vmem:[#allocation2 + $0x230] sm:$0xff]  ;;  %v1842_v48 = vpack.c.bf16 %v1177_v39, %v1175_v38  ;;  %v1179_v63 = vld [vmem:[#allocation4 + $0x128] sm:$0xff] }
 0x136   : > { %1823 = vmatprep.subr.bf16.mxu0 %v1822_v14  ;;  %853 = vmatmul.mubr.f32.gmra.mrb[10].mxu1 %v553_v19  ;;  %v1166_v14 = vld [vmem:[#allocation4 + $0xc0] sm:$0xff]  ;;  %v631_v45 = vld [vmem:[#allocation2 + $0x258] sm:$0xff]  ;;  %v1176_v61 = vld [vmem:[#allocation4 + $0x110] sm:$0xff] }
 0x137   : > { %942 = vmatmul.mubr.f32.gmra.mrb[14].mxu0 %v555_v20  ;;  %1729 = vmatpush1.bf16.msra.mxu1 %v1728_v24  ;;  %v1742_v24 = vpack.c.bf16 %v619_v11, %v615_v56  ;;  %v1836_v28 = vpack.c.bf16 %v1168_v18, %v1166_v14  ;;  %v1181_v1 = vld [vmem:[#allocation4 + $0x138] sm:$0xff]  ;;  %v1180_v14 = vld [vmem:[#allocation4 + $0x130] sm:$0xff]  ;;  %v1183_v18 = vld [vmem:[#allocation4 + $0x148] sm:$0xff] }
 0x138   : > { %1012 = vmatprep.mubr.f32.mxu1 %v545_v10  ;;  %1731 = vmatprep.subr.bf16.mxu1 %v1730_v25  ;;  %v606_v10 = vld [vmem:[#allocation2 + $0x190] sm:$0xff]  ;;  %v1846_v11 = vpack.c.bf16 %v1181_v1, %v1179_v63  ;;  %v1185_v54 = vld [vmem:[#allocation4 + $0x158] sm:$0xff] }
 0x139   : > { %1825 = vmatpush1.bf16.msra.mxu0 %v1824_v32  ;;  %v1740_v21 = vpack.c.bf16 %v610_v8, %v606_v10  ;;  %v614_v25 = vld [vmem:[#allocation2 + $0x1d0] sm:$0xff]  ;;  %v627_v32 = vld [vmem:[#allocation2 + $0x238] sm:$0xff] }
 0x13a   : > { %1827 = vmatprep.subr.bf16.mxu0 %v1826_v35  ;;  %v1170_v35 = vld [vmem:[#allocation4 + $0xe0] sm:$0xff]  ;;  %v1744_v40 = vpack.c.bf16 %v618_v26, %v614_v25  ;;  %v634_v10 = vld [vmem:[#allocation2 + $0x270] sm:$0xff]  ;;  %v639_v8 = vld [vmem:[#allocation2 + $0x298] sm:$0xff] }
 0x13b   : > { %1733 = vmatpush1.bf16.msra.mxu1 %v1732_v41  ;;  %v1746_v41 = vpack.c.bf16 %v627_v32, %v623_v27  ;;  %v1840_v46 = vpack.c.bf16 %v1172_v36, %v1170_v35  ;;  %v642_v25 = vld [vmem:[#allocation2 + $0x2b0] sm:$0xff]  ;;  %v647_v26 = vld [vmem:[#allocation2 + $0x2d8] sm:$0xff]  ;;  %v1850_v32 = vpack.c.bf16 %v1185_v54, %v1183_v18  ;;  %v1187_v36 = vld [vmem:[#allocation4 + $0x168] sm:$0xff] }
 0x13c   : > { %1735 = vmatprep.subr.bf16.mxu1 %v1734_v42  ;;  %v622_v42 = vld [vmem:[#allocation2 + $0x210] sm:$0xff]  ;;  %v1189_v38 = vld [vmem:[#allocation4 + $0x178] sm:$0xff] }
 0x13d   : > { %1829 = vmatpush1.bf16.msra.mxu0 %v1828_v47  ;;  %v635_v47 = vld [vmem:[#allocation2 + $0x278] sm:$0xff]  ;;  %v1748_v4 = vpack.c.bf16 %v626_v43, %v622_v42  ;;  %v1184_v35 = vld [vmem:[#allocation4 + $0x150] sm:$0xff] }
 0x13e   : > { %1831 = vmatprep.subr.bf16.mxu0 %v1830_v60  ;;  %v1174_v60 = vld [vmem:[#allocation4 + $0x100] sm:$0xff]  ;;  %v650_v42 = vld [vmem:[#allocation2 + $0x2f0] sm:$0xff]  ;;  %v655_v43 = vld [vmem:[#allocation2 + $0x318] sm:$0xff] }
 0x13f   : > { %1737 = vmatpush1.bf16.msra.mxu1 %v1736_v5  ;;  %v1750_v5 = vpack.c.bf16 %v635_v47, %v631_v45  ;;  %v1844_v56 = vpack.c.bf16 %v1176_v61, %v1174_v60  ;;  %v1854_v47 = vpack.c.bf16 %v1189_v38, %v1187_v36  ;;  %v1188_v60 = vld [vmem:[#allocation4 + $0x170] sm:$0xff]  ;;  %v1191_v61 = vld [vmem:[#allocation4 + $0x188] sm:$0xff]  ;;  %v1193_v63 = vld [vmem:[#allocation4 + $0x198] sm:$0xff] }
 0x140   : > { %1739 = vmatprep.subr.bf16.mxu1 %v1738_v2  ;;  %v630_v2 = vld [vmem:[#allocation2 + $0x250] sm:$0xff]  ;;  %v1197_v18 = vld [vmem:[#allocation4 + $0x1b8] sm:$0xff] }
 0x141   : > { %1833 = vmatpush1.bf16.msra.mxu0 %v1832_v9  ;;  %v643_v9 = vld [vmem:[#allocation2 + $0x2b8] sm:$0xff]  ;;  %v1752_v55 = vpack.c.bf16 %v634_v10, %v630_v2  ;;  %v658_v2 = vld [vmem:[#allocation2 + $0x330] sm:$0xff] }
 0x142   : > { %1835 = vmatprep.subr.bf16.mxu0 %v1834_v13  ;;  %v1178_v13 = vld [vmem:[#allocation4 + $0x120] sm:$0xff]  ;;  %v663_v10 = vld [vmem:[#allocation2 + $0x358] sm:$0xff]  ;;  %v670_v38 = vld [vmem:[#allocation2 + $0x390] sm:$0xff] }
 0x143   : > { %1741 = vmatpush1.bf16.msra.mxu1 %v1740_v21  ;;  %v1754_v21 = vpack.c.bf16 %v643_v9, %v639_v8  ;;  %v1848_v27 = vpack.c.bf16 %v1180_v14, %v1178_v13  ;;  %v1858_v9 = vpack.c.bf16 %v1193_v63, %v1191_v61  ;;  %v1192_v13 = vld [vmem:[#allocation4 + $0x190] sm:$0xff]  ;;  %v1195_v14 = vld [vmem:[#allocation4 + $0x1a8] sm:$0xff]  ;;  %v1201_v3 = vld [vmem:[#allocation4 + $0x1d8] sm:$0xff] }
 0x144   : > { %1743 = vmatprep.subr.bf16.mxu1 %v1742_v24  ;;  %v638_v24 = vld [vmem:[#allocation2 + $0x290] sm:$0xff] }
 0x145   : > { %1837 = vmatpush1.bf16.msra.mxu0 %v1836_v28  ;;  %v651_v28 = vld [vmem:[#allocation2 + $0x2f8] sm:$0xff]  ;;  %v1756_v39 = vpack.c.bf16 %v642_v25, %v638_v24  ;;  %v666_v24 = vld [vmem:[#allocation2 + $0x370] sm:$0xff] }
 0x146   : > { %1839 = vmatprep.subr.bf16.mxu0 %v1838_v33  ;;  %v1182_v33 = vld [vmem:[#allocation4 + $0x140] sm:$0xff]  ;;  %v671_v25 = vld [vmem:[#allocation2 + $0x398] sm:$0xff]  ;;  %v710_v23 = vld [vmem:[#allocation2 + $0x4d0] sm:$0xff] }
 0x147   : > { %1745 = vmatpush1.bf16.msra.mxu1 %v1744_v40  ;;  %v1758_v40 = vpack.c.bf16 %v651_v28, %v647_v26  ;;  %v1852_v45 = vpack.c.bf16 %v1184_v35, %v1182_v33  ;;  %v1862_v28 = vpack.c.bf16 %v1197_v18, %v1195_v14  ;;  %v1196_v33 = vld [vmem:[#allocation4 + $0x1b0] sm:$0xff] }
 0x148   : > { %1747 = vmatprep.subr.bf16.mxu1 %v1746_v41  ;;  %v646_v41 = vld [vmem:[#allocation2 + $0x2d0] sm:$0xff] }
 0x149   : > { %1841 = vmatpush1.bf16.msra.mxu0 %v1840_v46  ;;  %v659_v46 = vld [vmem:[#allocation2 + $0x338] sm:$0xff]  ;;  %v1760_v1 = vpack.c.bf16 %v650_v42, %v646_v41  ;;  %v718_v44 = vld [vmem:[#allocation2 + $0x510] sm:$0xff] }
 0x14a   : > { %1843 = vmatprep.subr.bf16.mxu0 %v1842_v48  ;;  %v1186_v48 = vld [vmem:[#allocation4 + $0x160] sm:$0xff]  ;;  %v679_v41 = vld [vmem:[#allocation2 + $0x3d8] sm:$0xff]  ;;  %v730_v12 = vld [vmem:[#allocation2 + $0x570] sm:$0xff] }
 0x14b   : > { %1749 = vmatpush1.bf16.msra.mxu1 %v1748_v4  ;;  %v1762_v4 = vpack.c.bf16 %v659_v46, %v655_v43  ;;  %v1856_v8 = vpack.c.bf16 %v1188_v60, %v1186_v48  ;;  %v683_v42 = vld [vmem:[#allocation2 + $0x3f8] sm:$0xff]  ;;  %v678_v46 = vld [vmem:[#allocation2 + $0x3d0] sm:$0xff] }
 0x14c   : > { %1751 = vmatprep.subr.bf16.mxu1 %v1750_v5  ;;  %v654_v5 = vld [vmem:[#allocation2 + $0x310] sm:$0xff]  ;;  %v687_v48 = vld [vmem:[#allocation2 + $0x418] sm:$0xff] }
 0x14d   : > { %1845 = vmatpush1.bf16.msra.mxu0 %v1844_v56  ;;  %v667_v56 = vld [vmem:[#allocation2 + $0x378] sm:$0xff]  ;;  %v1764_v54 = vpack.c.bf16 %v658_v2, %v654_v5 }
 0x14e   : > { %1847 = vmatprep.subr.bf16.mxu0 %v1846_v11  ;;  %v1190_v11 = vld [vmem:[#allocation4 + $0x180] sm:$0xff]  ;;  %v691_v60 = vld [vmem:[#allocation2 + $0x438] sm:$0xff] }
 0x14f   : > { %1753 = vmatpush1.bf16.msra.mxu1 %v1752_v55  ;;  %v1766_v55 = vpack.c.bf16 %v667_v56, %v663_v10  ;;  %v1860_v26 = vpack.c.bf16 %v1192_v13, %v1190_v11  ;;  %v1778_v63 = vpack.c.bf16 %v691_v60, %v687_v48  ;;  %v695_v5 = vld [vmem:[#allocation2 + $0x458] sm:$0xff]  ;;  %v694_v56 = vld [vmem:[#allocation2 + $0x450] sm:$0xff] }
 0x150   : > { %1755 = vmatprep.subr.bf16.mxu1 %v1754_v21  ;;  %v662_v21 = vld [vmem:[#allocation2 + $0x350] sm:$0xff]  ;;  %v699_v2 = vld [vmem:[#allocation2 + $0x478] sm:$0xff] }
 0x151   : > { %1849 = vmatpush1.bf16.msra.mxu0 %v1848_v27  ;;  %v675_v27 = vld [vmem:[#allocation2 + $0x3b8] sm:$0xff]  ;;  %v1768_v35 = vpack.c.bf16 %v666_v24, %v662_v21  ;;  %v742_v48 = vld [vmem:[#allocation2 + $0x5d0] sm:$0xff] }
 0x152   : > { %1851 = vmatprep.subr.bf16.mxu0 %v1850_v32  ;;  %v1194_v32 = vld [vmem:[#allocation4 + $0x1a0] sm:$0xff]  ;;  %v1770_v36 = vpack.c.bf16 %v675_v27, %v671_v25  ;;  %v703_v11 = vld [vmem:[#allocation2 + $0x498] sm:$0xff] }
 0x153   : > { %1757 = vmatpush1.bf16.msra.mxu1 %v1756_v39  ;;  %v674_v39 = vld [vmem:[#allocation2 + $0x3b0] sm:$0xff]  ;;  %v707_v13 = vld [vmem:[#allocation2 + $0x4b8] sm:$0xff] }
 0x154   : > { %1759 = vmatprep.subr.bf16.mxu1 %v1758_v40  ;;  %v1864_v40 = vpack.c.bf16 %v1196_v33, %v1194_v32  ;;  %v1772_v43 = vpack.c.bf16 %v674_v39, %v670_v38  ;;  %v1786_v18 = vpack.c.bf16 %v707_v13, %v703_v11  ;;  %v711_v21 = vld [vmem:[#allocation2 + $0x4d8] sm:$0xff]  ;;  %v738_v38 = vld [vmem:[#allocation2 + $0x5b0] sm:$0xff] }
 0x155   : > { %1853 = vmatpush1.bf16.msra.mxu0 %v1852_v45  ;;  %v1774_v45 = vpack.c.bf16 %v683_v42, %v679_v41  ;;  %v715_v24 = vld [vmem:[#allocation2 + $0x4f8] sm:$0xff]  ;;  %v1199_v41 = vld [vmem:[#allocation4 + $0x1c8] sm:$0xff] }
 0x156   : > { %1855 = vmatprep.subr.bf16.mxu0 %v1854_v47  ;;  %v682_v47 = vld [vmem:[#allocation2 + $0x3f0] sm:$0xff]  ;;  %v719_v25 = vld [vmem:[#allocation2 + $0x518] sm:$0xff]  ;;  %v1866_v42 = vpack.c.bf16 %v1201_v3, %v1199_v41 }
 0x157   : > { %1761 = vmatpush1.bf16.msra.mxu1 %v1760_v1  ;;  %v1776_v61 = vpack.c.bf16 %v682_v47, %v678_v46  ;;  %v686_v1 = vld [vmem:[#allocation2 + $0x410] sm:$0xff]  ;;  %v727_v27 = vld [vmem:[#allocation2 + $0x558] sm:$0xff] }
 0x158   : > { %1763 = vmatprep.subr.bf16.mxu1 %v1762_v4  ;;  %v690_v4 = vld [vmem:[#allocation2 + $0x430] sm:$0xff]  ;;  %v739_v33 = vld [vmem:[#allocation2 + $0x5b8] sm:$0xff] }
 0x159   : > { %1857 = vmatpush1.bf16.msra.mxu0 %v1856_v8  ;;  %v1780_v10 = vpack.c.bf16 %v690_v4, %v686_v1  ;;  %v1782_v8 = vpack.c.bf16 %v699_v2, %v695_v5  ;;  %v1205_v1 = vld [vmem:[#allocation4 + $0x1f8] sm:$0xff]  ;;  %v1202_v5 = vld [vmem:[#allocation4 + $0x1e0] sm:$0xff]  ;;  %v1204_v2 = vld [vmem:[#allocation4 + $0x1f0] sm:$0xff] }
 0x15a   : > { %1859 = vmatprep.subr.bf16.mxu0 %v1858_v9  ;;  %v698_v9 = vld [vmem:[#allocation2 + $0x470] sm:$0xff] }
 0x15b   : > { %1765 = vmatpush1.bf16.msra.mxu1 %v1764_v54  ;;  %v1784_v14 = vpack.c.bf16 %v698_v9, %v694_v56  ;;  %v702_v54 = vld [vmem:[#allocation2 + $0x490] sm:$0xff]  ;;  %v1207_v56 = vld [vmem:[#allocation4 + $0x208] sm:$0xff]  ;;  %v1209_v9 = vld [vmem:[#allocation4 + $0x218] sm:$0xff] }
 0x15c   : > { %1767 = vmatprep.subr.bf16.mxu1 %v1766_v55  ;;  %v706_v55 = vld [vmem:[#allocation2 + $0x4b0] sm:$0xff]  ;;  %v1874_v11 = vpack.c.bf16 %v1209_v9, %v1207_v56  ;;  %v1218_v56 = vld [vmem:[#allocation4 + $0x260] sm:$0xff] }
 0x15d   : > { %1861 = vmatpush1.bf16.msra.mxu0 %v1860_v26  ;;  %v1788_v59 = vpack.c.bf16 %v706_v55, %v702_v54  ;;  %v723_v26 = vld [vmem:[#allocation2 + $0x538] sm:$0xff]  ;;  %v1220_v9 = vld [vmem:[#allocation4 + $0x270] sm:$0xff] }
 0x15e   : > { %1863 = vmatprep.subr.bf16.mxu0 %v1862_v28  ;;  %v731_v28 = vld [vmem:[#allocation2 + $0x578] sm:$0xff] }
 0x15f   : > { %1769 = vmatpush1.bf16.msra.mxu1 %v1768_v35  ;;  %v1798_v37 = vpack.c.bf16 %v731_v28, %v727_v27  ;;  %v1210_v27 = vld [vmem:[#allocation4 + $0x220] sm:$0xff]  ;;  %v1212_v28 = vld [vmem:[#allocation4 + $0x230] sm:$0xff] }
 0x160   : > { %1771 = vmatprep.subr.bf16.mxu1 %v1770_v36  ;;  %v734_v36 = vld [vmem:[#allocation2 + $0x590] sm:$0xff] }
 0x161   : > { %1865 = vmatpush1.bf16.msra.mxu0 %v1864_v40  ;;  %v743_v40 = vld [vmem:[#allocation2 + $0x5d8] sm:$0xff]  ;;  %v1804_v47 = vpack.c.bf16 %v738_v38, %v734_v36 }
 0x162   : > { %1867 = vmatprep.subr.bf16.mxu0 %v1866_v42  ;;  %v1216_v42 = vld [vmem:[#allocation4 + $0x250] sm:$0xff] }
 0x163   : > { %1773 = vmatpush1.bf16.msra.mxu1 %v1772_v43  ;;  %v1198_v43 = vld [vmem:[#allocation4 + $0x1c0] sm:$0xff] }
 0x164   : > { %1775 = vmatprep.subr.bf16.mxu1 %v1774_v45  ;;  %v1200_v45 = vld [vmem:[#allocation4 + $0x1d0] sm:$0xff] }
 0x165   : > { %v1868_v46 = vpack.c.bf16 %v1200_v45, %v1198_v43  ;;  %v1219_v45 = vld [vmem:[#allocation4 + $0x268] sm:$0xff] }
 0x167   : > { %1777 = vmatpush1.bf16.msra.mxu1 %v1776_v61  ;;  %v746_v61 = vld [vmem:[#allocation2 + $0x5f0] sm:$0xff]  ;;  %1869 = vmatpush1.bf16.msra.mxu0 %v1868_v46  ;;  %v1221_v46 = vld [vmem:[#allocation4 + $0x278] sm:$0xff] }
 0x168   : > { %1779 = vmatprep.subr.bf16.mxu1 %v1778_v63  ;;  %v1203_v63 = vld [vmem:[#allocation4 + $0x1e8] sm:$0xff] }
 0x169   : > { %v1870_v4 = vpack.c.bf16 %v1205_v1, %v1203_v63 }
 0x16a   : > { %1013 = vmatmul.mubr.f32.vlgmr.msra.gmra.mrb[12].mxu1 %v544_v15  ;;  %v1790_v15 = vpack.c.bf16 %v715_v24, %v711_v21  ;;  %v1211_v24 = vld [vmem:[#allocation4 + $0x228] sm:$0xff] }
 0x16b   : > { %1018 = vmatprep.mubr.f32.mxu1 %v548_v34  ;;  %1781 = vmatpush1.bf16.msra.mxu1 %v1780_v10  ;;  %v714_v34 = vld [vmem:[#allocation2 + $0x4f0] sm:$0xff]  ;;  %v1872_v10 = vpack.c.bf16 %v1204_v2, %v1202_v5 }
 0x16c   : > { %1783 = vmatprep.subr.bf16.mxu1 %v1782_v8  ;;  %v1792_v16 = vpack.c.bf16 %v714_v34, %v710_v23  ;;  %v1808_v8 = vpack.c.bf16 %v746_v61, %v742_v48  ;;  %1871 = vmatprep.subr.bf16.mxu0 %v1870_v4 }
 0x16d   : > { %1873 = vmatpush1.bf16.msra.mxu0 %v1872_v10 }
 0x16e   : > { %1019 = vmatmul.mubr.f32.gmra.mrb[14].mxu1 %v547_v30  ;;  %v1794_v30 = vpack.c.bf16 %v723_v26, %v719_v25  ;;  %1875 = vmatprep.subr.bf16.mxu0 %v1874_v11 }
 0x16f   : > { %1024 = vmatprep.mubr.f32.mxu1 %v551_v62  ;;  %1785 = vmatpush1.bf16.msra.mxu1 %v1784_v14  ;;  %v722_v62 = vld [vmem:[#allocation2 + $0x530] sm:$0xff] }
 0x170   : > { %1787 = vmatprep.subr.bf16.mxu1 %v1786_v18  ;;  %v1796_v32 = vpack.c.bf16 %v722_v62, %v718_v44 }
 0x172   : > { %1025 = vmatmul.mubr.f32.gmra.mrb[16].mxu1 %v550_v51  ;;  %v726_v51 = vld [vmem:[#allocation2 + $0x550] sm:$0xff] }
 0x173   : > { %1030 = vmatprep.mubr.f32.mxu1 %v554_v22  ;;  %1789 = vmatpush1.bf16.msra.mxu1 %v1788_v59  ;;  %v735_v22 = vld [vmem:[#allocation2 + $0x598] sm:$0xff]  ;;  %v1800_v35 = vpack.c.bf16 %v730_v12, %v726_v51 }
 0x174   : > { %1791 = vmatprep.subr.bf16.mxu1 %v1790_v15  ;;  %v1802_v39 = vpack.c.bf16 %v739_v33, %v735_v22  ;;  %v1213_v59 = vld [vmem:[#allocation4 + $0x238] sm:$0xff] }
 0x175   : > { %v1878_v62 = vpack.c.bf16 %v1213_v59, %v1211_v24  ;;  %v1217_v51 = vld [vmem:[#allocation4 + $0x258] sm:$0xff]  ;;  %v1228_v24 = vld [vmem:[#allocation4 + $0x2b0] sm:$0xff]  ;;  %v1231_v59 = vld [vmem:[#allocation4 + $0x2c8] sm:$0xff] }
 0x176   : > { %1031 = vmatmul.mubr.f32.gmra.mrb[18].mxu1 %v553_v19  ;;  %v747_v19 = vld [vmem:[#allocation2 + $0x5f8] sm:$0xff] }
 0x177   : > { %1793 = vmatpush1.bf16.msra.mxu1 %v1792_v16  ;;  %1101 = vmatprep.mubr.f32.mxu1 %v2099_v0  ;;  %v1806_v60 = vpack.c.bf16 %v747_v19, %v743_v40  ;;  %v1880_v40 = vpack.c.bf16 %v1212_v28, %v1210_v27  ;;  %v1214_v19 = vld [vmem:[#allocation4 + $0x240] sm:$0xff]  ;;  %v1236_v28 = vld [vmem:[#allocation4 + $0x2f0] sm:$0xff] }
 0x178   : > { %1795 = vmatprep.subr.bf16.mxu1 %v1794_v30  ;;  %v1884_v5 = vpack.c.bf16 %v1216_v42, %v1214_v19  ;;  %v1234_v27 = vld [vmem:[#allocation4 + $0x2e0] sm:$0xff]  ;;  %v1249_v19 = vld [vmem:[#allocation4 + $0x358] sm:$0xff] }
 0x17b   : > { %1797 = vmatpush1.bf16.msra.mxu1 %v1796_v32 }
 0x17c   : > { %1799 = vmatprep.subr.bf16.mxu1 %v1798_v37  ;;  %v1215_v37 = vld [vmem:[#allocation4 + $0x248] sm:$0xff] }
 0x17d   : > { %v1882_v3 = vpack.c.bf16 %v1217_v51, %v1215_v37  ;;  %v1241_v37 = vld [vmem:[#allocation4 + $0x318] sm:$0xff]  ;;  %v1904_v51 = vpack.c.bf16 %v1236_v28, %v1234_v27 }
 0x17f   : > { %1801 = vmatpush1.bf16.msra.mxu1 %v1800_v35 }
 0x180   : > { %1803 = vmatprep.subr.bf16.mxu1 %v1802_v39 }
 0x183   : > { %1805 = vmatpush1.bf16.msra.mxu1 %v1804_v47 }
 0x184   : > { %1807 = vmatprep.subr.bf16.mxu1 %v1806_v60 }
 0x187   : > { %1809 = vmatpush1.bf16.msra.mxu1 %v1808_v8  ;;  %v1886_v8 = vpack.c.bf16 %v1221_v46, %v1219_v45  ;;  %v1246_v45 = vld [vmem:[#allocation4 + $0x340] sm:$0xff]  ;;  %v1248_v46 = vld [vmem:[#allocation4 + $0x350] sm:$0xff] }
 0x18a   : > { %1102 = vmatmul.mubr.f32.vlgmr.msra.gmra.mrb[12].mxu1 %v546_v17  ;;  %v753_v17 = vrot.slane %v2429_v7, %v2304_v50 }
 0x18b   : > { %1107 = vmatprep.mubr.f32.mxu1 %v2099_v0 }
 0x18e   : > { %1108 = vmatmul.mubr.f32.gmra.mrb[14].mxu1 %v549_v29 }
 0x18f   : > { %1113 = vmatprep.mubr.f32.mxu1 %v2099_v0 }
 0x192   : > { %1114 = vmatmul.mubr.f32.gmra.mrb[16].mxu1 %v552_v58 }
 0x193   : > { %1119 = vmatprep.mubr.f32.mxu1 %v2099_v0 }
 0x196   : > { %1120 = vmatmul.mubr.f32.gmra.mrb[18].mxu1 %v555_v20  ;;  %v1208_v20 = vld [vmem:[#allocation4 + $0x210] sm:$0xff] }
 0x197   : > { %v1876_v16 = vpack.c.bf16 %v1208_v20, %v1206_v57  ;;  %v1224_v57 = vld [vmem:[#allocation4 + $0x290] sm:$0xff]  ;;  %v1227_v20 = vld [vmem:[#allocation4 + $0x2a8] sm:$0xff] }
 0x1fd   : > { %v836_v29 = vpop.f32.mrb[4].mxu1 }
 0x1fe   : > { %v925_v13 = vpop.f32.mrb[8].mxu0  ;;  %v837_v31 = vadd.f32 %v836_v29, %v753_v17  ;;  %v838_v58 = vpop.f32.mrb[5].mxu1  ;;  %v1223_v29 = vld [vmem:[#allocation4 + $0x288] sm:$0xff] }
 0x1ff   : > { %v927_v14 = vpop.f32.mrb[9].mxu0  ;;  %v839_v0 = vadd.f32 %v838_v58, %v757_v6 }
 0x200   : > { %v926_v18 = vadd.f32 %v925_v13, %v837_v31  ;;  %v1225_v13 = vld [vmem:[#allocation4 + $0x298] sm:$0xff] }
 0x201   : > { %v928_v54 = vadd.f32 %v927_v14, %v839_v0  ;;  %v842_v55 = vpop.f32.mrb[6].mxu1  ;;  %v1888_v14 = vpack.c.bf16 %v1220_v9, %v1218_v56  ;;  %v1890_v0 = vpack.c.bf16 %v1225_v13, %v1223_v29  ;;  %v1256_v56 = vld [vmem:[#allocation4 + $0x390] sm:$0xff]  ;;  %v1259_v9 = vld [vmem:[#allocation4 + $0x3a8] sm:$0xff] }
 0x202   : > { %v931_v21 = vpop.f32.mrb[10].mxu0  ;;  %v843_v15 = vadd.f32 %v842_v55, %v753_v17  ;;  %v844_v23 = vpop.f32.mrb[7].mxu1  ;;  %v1126_v30 = vmax.f32 %v926_v18, 0.0  ;;  %v1222_v18 = vld [vmem:[#allocation4 + $0x280] sm:$0xff] }
 0x203   : > { %v933_v34 = vpop.f32.mrb[11].mxu0  ;;  %v1127_v25 = vmax.f32 %v928_v54, 0.0  ;;  %v845_v26 = vadd.f32 %v844_v23, %v757_v6  ;;  %v1892_v54 = vpack.c.bf16 %v1224_v57, %v1222_v18  ;;  %v1262_v57 = vld [vmem:[#allocation4 + $0x3c0] sm:$0xff] }
 0x204   : > { %v932_v44 = vadd.f32 %v931_v21, %v843_v15  ;;  %v1226_v21 = vld [vmem:[#allocation4 + $0x2a0] sm:$0xff]  ;;  %v1233_v15 = vld [vmem:[#allocation4 + $0x2d8] sm:$0xff] }
 0x205   : > { %1346 = vmatprep.mubr.f32.mxu0 %v1127_v25  ;;  %v934_v32 = vadd.f32 %v933_v34, %v845_v26  ;;  %v848_v12 = vpop.f32.mrb[8].mxu1  ;;  %v1896_v23 = vpack.c.bf16 %v1228_v24, %v1226_v21  ;;  %v1898_v34 = vpack.c.bf16 %v1233_v15, %v1231_v59  ;;  %v1230_v25 = vld [vmem:[#allocation4 + $0x2c0] sm:$0xff]  ;;  %v1232_v26 = vld [vmem:[#allocation4 + $0x2d0] sm:$0xff] }
 0x206   : > { %v937_v22 = vpop.f32.mrb[12].mxu0  ;;  %1347 = vmatmul.mubr.f32.vlgmr.msra.gmra.mrb[16].mxu0 %v1126_v30  ;;  %v1130_v33 = vmax.f32 %v932_v44, 0.0  ;;  %v849_v35 = vadd.f32 %v848_v12, %v753_v17  ;;  %v850_v36 = vpop.f32.mrb[9].mxu1  ;;  %v1237_v30 = vld [vmem:[#allocation4 + $0x2f8] sm:$0xff]  ;;  %v1900_v44 = vpack.c.bf16 %v1232_v26, %v1230_v25  ;;  %v1266_v24 = vld [vmem:[#allocation4 + $0x3e0] sm:$0xff]  ;;  %v1268_v59 = vld [vmem:[#allocation4 + $0x3f0] sm:$0xff] }
 0x207   : > { %v939_v38 = vpop.f32.mrb[13].mxu0  ;;  %v1131_v39 = vmax.f32 %v934_v32, 0.0  ;;  %1877 = vmatpush1.bf16.msra.mxu0 %v1876_v16  ;;  %v851_v41 = vadd.f32 %v850_v36, %v757_v6  ;;  %v1235_v16 = vld [vmem:[#allocation4 + $0x2e8] sm:$0xff]  ;;  %v1245_v36 = vld [vmem:[#allocation4 + $0x338] sm:$0xff]  ;;  %v1936_v15 = vpack.c.bf16 %v1268_v59, %v1266_v24 }
 0x208   : > { %1879 = vmatprep.subr.bf16.mxu0 %v1878_v62  ;;  %v938_v43 = vadd.f32 %v937_v22, %v849_v35  ;;  %v1902_v62 = vpack.c.bf16 %v1237_v30, %v1235_v16  ;;  %v1239_v32 = vld [vmem:[#allocation4 + $0x308] sm:$0xff]  ;;  %v1238_v22 = vld [vmem:[#allocation4 + $0x300] sm:$0xff] }
 0x209   : > { %1352 = vmatprep.mubr.f32.mxu0 %v1131_v39  ;;  %v940_v47 = vadd.f32 %v939_v38, %v851_v41  ;;  %v854_v48 = vpop.f32.mrb[10].mxu1  ;;  %v1906_v12 = vpack.c.bf16 %v1241_v37, %v1239_v32  ;;  %v1243_v35 = vld [vmem:[#allocation4 + $0x328] sm:$0xff]  ;;  %v1244_v41 = vld [vmem:[#allocation4 + $0x330] sm:$0xff] }
 0x20a   : > { %v943_v60 = vpop.f32.mrb[14].mxu0  ;;  %1353 = vmatmul.mubr.f32.gmra.mrb[18].mxu0 %v1130_v33  ;;  %v1134_v61 = vmax.f32 %v938_v43, 0.0  ;;  %v855_v63 = vadd.f32 %v854_v48, %v753_v17  ;;  %v856_v1 = vpop.f32.mrb[11].mxu1  ;;  %v1240_v33 = vld [vmem:[#allocation4 + $0x310] sm:$0xff]  ;;  %v1910_v39 = vpack.c.bf16 %v1245_v36, %v1243_v35  ;;  %v1253_v48 = vld [vmem:[#allocation4 + $0x378] sm:$0xff] }
 0x20b   : > { %v945_v4 = vpop.f32.mrb[15].mxu0  ;;  %1881 = vmatpush1.bf16.msra.mxu0 %v1880_v40  ;;  %v1135_v2 = vmax.f32 %v940_v47, 0.0  ;;  %v857_v10 = vadd.f32 %v856_v1, %v757_v6  ;;  %v1229_v6 = vld [vmem:[#allocation4 + $0x2b8] sm:$0xff]  ;;  %v1908_v38 = vpack.c.bf16 %v1240_v33, %v1238_v22  ;;  %v1242_v40 = vld [vmem:[#allocation4 + $0x320] sm:$0xff]  ;;  %v1251_v47 = vld [vmem:[#allocation4 + $0x368] sm:$0xff] }
 0x20c   : > { %1883 = vmatprep.subr.bf16.mxu0 %v1882_v3  ;;  %v944_v11 = vadd.f32 %v943_v60, %v855_v63  ;;  %v1894_v55 = vpack.c.bf16 %v1229_v6, %v1227_v20  ;;  %v1247_v3 = vld [vmem:[#allocation4 + $0x348] sm:$0xff]  ;;  %v1912_v42 = vpack.c.bf16 %v1244_v41, %v1242_v40  ;;  %v1916_v60 = vpack.c.bf16 %v1248_v46, %v1246_v45  ;;  %v1250_v63 = vld [vmem:[#allocation4 + $0x360] sm:$0xff]  ;;  %v1252_v1 = vld [vmem:[#allocation4 + $0x370] sm:$0xff] }
 0x20d   : > { %v946_v31 = vadd.f32 %v945_v4, %v857_v10  ;;  %1358 = vmatprep.mubr.f32.mxu0 %v1135_v2  ;;  %v1914_v43 = vpack.c.bf16 %v1249_v19, %v1247_v3  ;;  %v1255_v4 = vld [vmem:[#allocation4 + $0x388] sm:$0xff]  ;;  %v1920_v2 = vpack.c.bf16 %v1252_v1, %v1250_v63  ;;  %v1264_v20 = vld [vmem:[#allocation4 + $0x3d0] sm:$0xff] }
 0x20e   : > { %v1138_v58 = vmax.f32 %v944_v11, 0.0  ;;  %1359 = vmatmul.mubr.f32.gmra.mrb[20].mxu0 %v1134_v61  ;;  %v1918_v61 = vpack.c.bf16 %v1253_v48, %v1251_v47  ;;  %v1261_v11 = vld [vmem:[#allocation4 + $0x3b8] sm:$0xff]  ;;  %v1267_v6 = vld [vmem:[#allocation4 + $0x3e8] sm:$0xff] }
 0x20f   : > { %1885 = vmatpush1.bf16.msra.mxu0 %v1884_v5  ;;  %v1139_v17 = vmax.f32 %v946_v31, 0.0  ;;  %v1257_v5 = vld [vmem:[#allocation4 + $0x398] sm:$0xff]  ;;  %v1926_v13 = vpack.c.bf16 %v1261_v11, %v1259_v9  ;;  %v1258_v31 = vld [vmem:[#allocation4 + $0x3a0] sm:$0xff] }
 0x210   : > { %1887 = vmatprep.subr.bf16.mxu0 %v1886_v8  ;;  %v1922_v10 = vpack.c.bf16 %v1257_v5, %v1255_v4  ;;  %v1254_v8 = vld [vmem:[#allocation4 + $0x380] sm:$0xff] }
 0x211   : > { %1364 = vmatprep.mubr.f32.mxu0 %v1139_v17  ;;  %v1924_v29 = vpack.c.bf16 %v1256_v56, %v1254_v8  ;;  %v1265_v17 = vld [vmem:[#allocation4 + $0x3d8] sm:$0xff] }
 0x212   : > { %1365 = vmatmul.mubr.f32.gmra.mrb[22].mxu0 %v1138_v58  ;;  %v1260_v58 = vld [vmem:[#allocation4 + $0x3b0] sm:$0xff] }
 0x213   : > { %1889 = vmatpush1.bf16.msra.mxu0 %v1888_v14  ;;  %v1263_v14 = vld [vmem:[#allocation4 + $0x3c8] sm:$0xff] }
 0x214   : > { %1891 = vmatprep.subr.bf16.mxu0 %v1890_v0  ;;  %v1928_v0 = vpack.c.bf16 %v1260_v58, %v1258_v31  ;;  %v1930_v18 = vpack.c.bf16 %v1265_v17, %v1263_v14 }
 0x217   : > { %1893 = vmatpush1.bf16.msra.mxu0 %v1892_v54  ;;  %v1269_v54 = vld [vmem:[#allocation4 + $0x3f8] sm:$0xff] }
 0x218   : > { %1895 = vmatprep.subr.bf16.mxu0 %v1894_v55  ;;  %v1932_v55 = vpack.c.bf16 %v1264_v20, %v1262_v57  ;;  %v1934_v21 = vpack.c.bf16 %v1269_v54, %v1267_v6 }
 0x21b   : > { %1897 = vmatpush1.bf16.msra.mxu0 %v1896_v23  ;;  %v764_v23 = vsub.s32 3, %v2301_v49 }
 0x21c   : > { %1899 = vmatprep.subr.bf16.mxu0 %v1898_v34  ;;  %v761_v34 = vrot.slane %v2429_v7, %v342_v53 }
 0x21d   : > { %v765_v25 = vrot.slane %v2429_v7, %v764_v23 }
 0x21f   : > { %1901 = vmatpush1.bf16.msra.mxu0 %v1900_v44 }
 0x220   : > { %1903 = vmatprep.subr.bf16.mxu0 %v1902_v62 }
 0x223   : > { %1905 = vmatpush1.bf16.msra.mxu0 %v1904_v51 }
 0x224   : > { %1907 = vmatprep.subr.bf16.mxu0 %v1906_v12 }
 0x227   : > { %1909 = vmatpush1.bf16.msra.mxu0 %v1908_v38 }
 0x228   : > { %1911 = vmatprep.subr.bf16.mxu0 %v1910_v39 }
 0x22b   : > { %1913 = vmatpush1.bf16.msra.mxu0 %v1912_v42  ;;  %v1270_v42 = vld [vmem:[%s2458_s6] sm:$0x3] }
 0x22c   : > { %1915 = vmatprep.subr.bf16.mxu0 %v1914_v43  ;;  %v1275_v43 = vrot.slane %v1270_v42, %v2304_v50  ;;  %v1279_v45 = vrot.slane %v1270_v42, %v2310_v52 }
 0x22f   : > { %1917 = vmatpush1.bf16.msra.mxu0 %v1916_v60 }
 0x230   : > { %1919 = vmatprep.subr.bf16.mxu0 %v1918_v61 }
 0x233   : > { %1921 = vmatpush1.bf16.msra.mxu0 %v1920_v2 }
 0x234   : > { %1923 = vmatprep.subr.bf16.mxu0 %v1922_v10 }
 0x237   : > { %1925 = vmatpush1.bf16.msra.mxu0 %v1924_v29 }
 0x238   : > { %1927 = vmatprep.subr.bf16.mxu0 %v1926_v13 }
 0x23b   : > { %1929 = vmatpush1.bf16.msra.mxu0 %v1928_v0 }
 0x23c   : > { %1931 = vmatprep.subr.bf16.mxu0 %v1930_v18 }
 0x23f   : > { %1933 = vmatpush1.bf16.msra.mxu0 %v1932_v55 }
 0x240   : > { %1935 = vmatprep.subr.bf16.mxu0 %v1934_v21 }
 0x243   : > { %1937 = vmatpush1.bf16.msra.mxu0 %v1936_v15 }
 0x25d   : > { %v1103_v26 = vpop.f32.mrb[12].mxu1 }
 0x25e   : > { %v1954_v16 = vadd.f32 %v1103_v26, %v761_v34  ;;  %v1105_v30 = vpop.f32.mrb[13].mxu1 }
 0x25f   : > { %v1955_v44 = vadd.f32 %v1105_v30, %v765_v25 }
 0x260   : > { %v1128_v28 = vmax.f32 %v1954_v16, 0.0 }
 0x261   : > { %v1129_v62 = vmax.f32 %v1955_v44, 0.0  ;;  %v1109_v27 = vpop.f32.mrb[14].mxu1 }
 0x262   : > { %v1956_v32 = vadd.f32 %v1109_v27, %v761_v34  ;;  %v1111_v37 = vpop.f32.mrb[15].mxu1 }
 0x263   : > { %v1957_v51 = vadd.f32 %v1111_v37, %v765_v25  ;;  %1435 = vmatprep.mubr.f32.mxu0 %v1129_v62 }
 0x264   : > { %1436 = vmatmul.mubr.f32.vlgmr.msra.gmra.mrb[16].mxu0 %v1128_v28  ;;  %v1132_v33 = vmax.f32 %v1956_v32, 0.0 }
 0x265   : > { %v1133_v12 = vmax.f32 %v1957_v51, 0.0  ;;  %v1115_v22 = vpop.f32.mrb[16].mxu1 }
 0x266   : > { %v1958_v49 = vadd.f32 %v1115_v22, %v761_v34  ;;  %v1117_v35 = vpop.f32.mrb[17].mxu1 }
 0x267   : > { %v1959_v53 = vadd.f32 %v1117_v35, %v765_v25  ;;  %1441 = vmatprep.mubr.f32.mxu0 %v1133_v12 }
 0x268   : > { %1442 = vmatmul.mubr.f32.gmra.mrb[18].mxu0 %v1132_v33  ;;  %v1136_v38 = vmax.f32 %v1958_v49, 0.0 }
 0x269   : > { %v1137_v7 = vmax.f32 %v1959_v53, 0.0  ;;  %v1121_v36 = vpop.f32.mrb[18].mxu1 }
 0x26a   : > { %v1960_v39 = vadd.f32 %v1121_v36, %v761_v34  ;;  %v1123_v40 = vpop.f32.mrb[19].mxu1 }
 0x26b   : > { %v1961_v41 = vadd.f32 %v1123_v40, %v765_v25  ;;  %1447 = vmatprep.mubr.f32.mxu0 %v1137_v7 }
 0x26c   : > { %1448 = vmatmul.mubr.f32.gmra.mrb[20].mxu0 %v1136_v38  ;;  %v1140_v19 = vmax.f32 %v1960_v39, 0.0 }
 0x26d   : > { %v1141_v3 = vmax.f32 %v1961_v41, 0.0 }
 0x26f   : > { %1453 = vmatprep.mubr.f32.mxu0 %v1141_v3 }
 0x270   : > { %1454 = vmatmul.mubr.f32.gmra.mrb[22].mxu0 %v1140_v19 }
 0x337   : > { %v1437_v46 = vpop.f32.mrb[16].mxu0 }
 0x338   : > { %v1962_v47 = vadd.f32 %v1437_v46, %v1275_v43  ;;  %v1439_v48 = vpop.f32.mrb[17].mxu0 }
 0x339   : > { %v1963_v60 = vadd.f32 %v1439_v48, %v1279_v45 }
 0x33a   : > { %1460 = vst [vmem:[%s312_s26] sm:$0xff] %v1962_v47 }
 0x33b   : > { %1461 = vst [vmem:[%s312_s26 + $0x8] sm:$0xff] %v1963_v60  ;;  %v1443_v61 = vpop.f32.mrb[18].mxu0 }
 0x33c   : > { %v1964_v63 = vadd.f32 %v1443_v61, %v1275_v43  ;;  %v1445_v1 = vpop.f32.mrb[19].mxu0 }
 0x33d   : > { %v1965_v4 = vadd.f32 %v1445_v1, %v1279_v45 }
 0x33e   : > { %1462 = vst [vmem:[%s312_s26 + $0x10] sm:$0xff] %v1964_v63 }
 0x33f   : > { %1463 = vst [vmem:[%s312_s26 + $0x18] sm:$0xff] %v1965_v4  ;;  %v1449_v5 = vpop.f32.mrb[20].mxu0 }
 0x340   : > { %v1966_v50 = vadd.f32 %v1449_v5, %v1275_v43  ;;  %v1451_v2 = vpop.f32.mrb[21].mxu0 }
 0x341   : > { %v1967_v52 = vadd.f32 %v1451_v2, %v1279_v45 }
 0x342   : > { %1464 = vst [vmem:[%s312_s26 + $0x20] sm:$0xff] %v1966_v50 }
 0x343   : > { %1465 = vst [vmem:[%s312_s26 + $0x28] sm:$0xff] %v1967_v52  ;;  %v1455_v10 = vpop.f32.mrb[22].mxu0 }
 0x344   : > { %v1968_v8 = vadd.f32 %v1455_v10, %v1275_v43  ;;  %v1457_v56 = vpop.f32.mrb[23].mxu0 }
 0x345   : > { %v1969_v9 = vadd.f32 %v1457_v56, %v1279_v45 }
 0x346   : > { %1466 = vst [vmem:[%s312_s26 + $0x30] sm:$0xff] %v1968_v8 }
 0x347   : > { %1467 = vst [vmem:[%s312_s26 + $0x38] sm:$0xff] %v1969_v9 }
 0x348 PF: > { %s19_s24 = sadd.s32 1, %s2091_s24  }
 0x349   : > { %p16_p2 = scmp.ge.s32.totalorder %s19_s24, 4  }
 0x34b   :  { %18 = sbr.rel (!%p16_p2) target bundleno = 2 (0x2), region = 87 }
 0x352   :  { %1492 = vsyncpa [#allocation3], 1 }
 0x353   :  { %1494 = vsyncpa [#allocation3 + $0x1], 1 }
 0x354   :  { %1495 = vsyncpa [#allocation5], 1 }

</bundles_post_ra>
